<compile_context>
chip_gen: v7x
topology: tpu7x:2x2x1
jax: 0.10.0
libtpu: 0.0.40
codegen_flags: <defaults>
</compile_context>

<pallas_src>
import functools

import jax
import jax.numpy as jnp
from jax.experimental import pallas as pl
from jax.experimental.pallas import tpu as pltpu

NEG_SLOPE = 0.01   # nn.LeakyReLU default negative_slope
BN_EPS = 1e-5      # nn.BatchNorm2d default eps


def _leaky(y):
    return jnp.where(y >= 0, y, NEG_SLOPE * y)


# ------------------------------ fused kernel ---------------------------------
def _block_cs_kernel(*refs, TH, W, K, planes, downsample, stack_taps):
    if K == 1:
        (x_ref, w1_ref, b1_ref, w2_ref, b2_ref, w4_ref, b4_ref, o_ref) = refs
    else:
        (x_ref, xp_ref, xn_ref, w1_ref, b1_ref, w2_ref, b2_ref,
         w4_ref, b4_ref, o_ref) = refs

    t = pl.program_id(1)
    n_tiles = pl.num_programs(1)
    cin = x_ref.shape[-1]
    M = TH * W

    w1 = w1_ref[...]
    b1 = b1_ref[...]

    # ---- conv1 (1x1) + folded BN1 + LeakyReLU on the owned rows -------------
    x2d = x_ref[...].reshape(M, cin)                               # bf16
    h1 = _leaky(jnp.dot(x2d, w1, preferred_element_type=jnp.float32) + b1
                ).astype(jnp.bfloat16)

    # ---- grouped KxK conv + folded BN2 ---------------------------------------
    if K == 1:
        acc = jnp.dot(h1, w2_ref[...], preferred_element_type=jnp.float32)
    else:
        # conv1 on the two 1-row halos (row above / below this H-tile); zeroed
        # at the image top/bottom, which realizes conv2's zero padding in H.
        hprev = _leaky(jnp.dot(xp_ref[0, 0], w1,
                               preferred_element_type=jnp.float32) + b1)
        hnext = _leaky(jnp.dot(xn_ref[0, 0], w1,
                               preferred_element_type=jnp.float32) + b1)
        hprev = jnp.where(t == 0, 0.0, hprev).astype(jnp.bfloat16)
        hnext = jnp.where(t == n_tiles - 1, 0.0, hnext).astype(jnp.bfloat16)

        # Flatten [halo_prev ; h1 ; halo_next] row-major (one row per pixel,
        # stride W per image row): a (kh, kw) tap of the 3x3 conv is then a
        # contiguous M-row window of this buffer.
        body = jnp.concatenate([hprev, h1, hnext], axis=0)   # (M + 2W, planes)
        nrows = M + 2 * W

        # W-edge zero padding: a left tap (kw=0) must never read column W-1,
        # a right tap (kw=2) must never read column 0.
        col = jax.lax.broadcasted_iota(jnp.int32, (nrows, 1), 0) % W
        zero_body = jnp.zeros_like(body)
        masked = (jnp.where(col == W - 1, zero_body, body),   # kw = 0 (left)
                  body,                                       # kw = 1 (center)
                  jnp.where(col == 0, zero_body, body))       # kw = 2 (right)

        # Bake the +-1 column shift of each kw into the zero-pad offset so that
        # every tap slice below starts at E + kh*W, sublane aligned (W % 8 == 0).
        E = 16

        def shifted(kw):
            s = 1 - kw
            return jnp.concatenate(
                [jnp.zeros((E + s, planes), jnp.bfloat16), masked[kw],
                 jnp.zeros((E - s, planes), jnp.bfloat16)], axis=0)

        variants = [shifted(kw) for kw in range(3)]

        def tap(kh, kw):
            start = E + kh * W                     # aligned slice start
            return jax.lax.slice_in_dim(variants[kw], start, start + M)

        if stack_taps:
            # Stack all 9 taps on the contraction axis -> one well-filled MXU
            # pass: (M, 9*planes) x (9*planes, planes).
            im2col = jnp.concatenate(
                [tap(kh, kw) for kh in range(3) for kw in range(3)], axis=-1)
            acc = jnp.dot(im2col, w2_ref[...],
                          preferred_element_type=jnp.float32)
        else:
            acc = jnp.zeros((M, planes), jnp.float32)
            for kh in range(3):
                for kw in range(3):
                    i0 = (kh * 3 + kw) * planes
                    acc = acc + jnp.dot(tap(kh, kw),
                                        w2_ref[i0:i0 + planes, :],
                                        preferred_element_type=jnp.float32)

    h2 = _leaky(acc + b2_ref[...]).astype(jnp.bfloat16)

    # ---- conv4 (1x1) + folded BN4, fused with the residual path --------------
    if downsample:
        # One matmul: [h2 | x] @ [w4 ; wd]  (+ b4 + bd); contraction planes+Cin.
        y = jnp.dot(jnp.concatenate([h2, x2d], axis=-1), w4_ref[...],
                    preferred_element_type=jnp.float32) + b4_ref[...]
    else:
        # Identity residual.  NOTE: x was cast to bf16 in the wrapper, so the
        # skip adds the bf16 input (documented precision difference vs f32 x).
        y = (jnp.dot(h2, w4_ref[...], preferred_element_type=jnp.float32)
             + b4_ref[...] + x2d.astype(jnp.float32))

    o_ref[...] = _leaky(y).astype(o_ref.dtype)


# ------------------------------ host-side wrapper -----------------------------
def block_cs_forward(x_nchw, params, *, kernel_size, downsample, tile_h=64,
                     stack_taps=None, out_dtype=jnp.bfloat16):
    N, Cin, H, W = x_nchw.shape
    planes = params["w1"].shape[1]
    outplanes = params["b4"].shape[1]
    K = kernel_size
    assert K in (1, 3), "padding rule keeps spatial size only for k in {1, 3}"
    assert W % 8 == 0 and H % 8 == 0, \
        "H and W must be multiples of 8 (sublane-clean flattening/tap offsets)"
    if not downsample:
        assert Cin == outplanes, "identity residual needs inplanes == outplanes"

    # Largest H-tile that is a multiple of 8, divides H and is <= tile_h; back
    # off if needed so the grid has >= 2 steps (both v7x TensorCores get work).
    def pick_th(cap):
        th = 8
        for cand in range(8, min(cap, H) + 1, 8):
            if H % cand == 0:
                th = cand
        return th

    TH = pick_th(tile_h)
    if N * (H // TH) < 2 and TH > 8:
        TH = pick_th(TH // 2)
    nT = H // TH
    M = TH * W

    if stack_taps is None:
        stack_taps = planes < 256   # per-tap matmuls under-fill the MXU below this

    # Fold the 1x1 downsample into conv4: one matmul over [h2 | x].
    if downsample:
        w4 = jnp.concatenate([params["w4"], params["wd"]], axis=0)
        b4 = params["b4"] + params["bd"]
    else:
        w4, b4 = params["w4"], params["b4"]

    # NCHW -> NHWC (channels on lanes) + bf16 for the MXU.
    # TODO(synk): when Block_cs blocks are chained, keep activations in
    # NHWC/bf16 between blocks and only convert at network entry/exit.
    x_nhwc = jnp.transpose(x_nchw, (0, 2, 3, 1)).astype(jnp.bfloat16)

    kernel = functools.partial(_block_cs_kernel, TH=TH, W=W, K=K, planes=planes,
                               downsample=downsample, stack_taps=stack_taps)

    def const(shape):
        return pl.BlockSpec(shape, lambda n, t: (0,) * len(shape))

    in_specs = [pl.BlockSpec((1, TH, W, Cin), lambda n, t: (n, t, 0, 0))]
    args = [x_nhwc]
    if K == 3:
        # 1-row halo views (row above / row below the tile), clamped at the
        # image border and zeroed in-kernel there.
        in_specs += [
            pl.BlockSpec((1, 1, W, Cin),
                         lambda n, t: (n, jnp.maximum(t * TH - 1, 0), 0, 0)),
            pl.BlockSpec((1, 1, W, Cin),
                         lambda n, t: (n, jnp.minimum((t + 1) * TH, H - 1), 0, 0)),
        ]
        args += [x_nhwc, x_nhwc]
    in_specs += [const((Cin, planes)), const((1, planes)),
                 const((K * K * planes, planes)), const((1, planes)),
                 const(tuple(w4.shape)), const((1, outplanes))]
    # TODO(synk): single-buffer the constant weight blocks
    # (pipeline_mode=pl.Buffered(1)) when weights get large (v7x 64 MiB VMEM).
    args += [params["w1"], params["b1"], params["w2"], params["b2"], w4, b4]

    # VMEM budget: double-buffered tiles + weights + in-kernel intermediates.
    out_bytes = jnp.dtype(out_dtype).itemsize
    est = (2 * M * Cin * 2 + 4 * W * Cin * 2                       # x + halos
           + 2 * M * outplanes * out_bytes                         # out tile
           + 2 * 2 * (Cin * planes + K * K * planes * planes
                      + w4.shape[0] * outplanes)                   # weights
           + (M + 2 * W + 32) * planes * 2 * 5                     # body/variants/h1
           + M * K * K * planes * 2                                # im2col
           + M * planes * 4 * 2 + M * (planes + Cin + outplanes) * 4)
    vmem_limit = int(min(max(2 * est, 32 * 1024 * 1024), 100 * 1024 * 1024))

    out2d = pl.pallas_call(
        kernel,
        out_shape=jax.ShapeDtypeStruct((N * H * W, outplanes), out_dtype),
        grid=(N, nT),
        in_specs=in_specs,
        out_specs=pl.BlockSpec((M, outplanes), lambda n, t: (n * nT + t, 0)),
        compiler_params=pltpu.CompilerParams(
            dimension_semantics=("parallel", "parallel"),
            vmem_limit_bytes=vmem_limit),
    )(*args)

    # TODO(synk): pack the output lane-dense (last dim >= 128) and skip this
    # NHWC->NCHW transpose when blocks are chained.
    return jnp.transpose(out2d.reshape(N, H, W, outplanes), (0, 3, 1, 2))


# --------------------- deterministic parameter construction -------------------
def init_params(key, inplanes, planes, outplanes, kernel_size, groups, downsample):
    ks = jax.random.split(key, 8)
    K = kernel_size
    cpg = planes // groups   # channels per group for conv2 (in == out per group)

    def conv_w(k, cout, cin, kh, kw):
        fan_in = cin * kh * kw
        return jax.random.normal(k, (cout, cin, kh, kw), jnp.float32) / jnp.sqrt(fan_in)

    def bn_fold(k, c):
        k1, k2, k3, k4 = jax.random.split(k, 4)
        gamma = 1.0 + 0.1 * jax.random.normal(k1, (c,), jnp.float32)
        beta = 0.1 * jax.random.normal(k2, (c,), jnp.float32)
        mean = 0.1 * jax.random.normal(k3, (c,), jnp.float32)
        var = 1.0 + 0.1 * jax.random.uniform(k4, (c,), jnp.float32)
        scale = gamma / jnp.sqrt(var + BN_EPS)      # inference-mode BN folding
        bias = beta - mean * scale
        return scale, bias

    # torch-layout (OIHW) weights + BN affine: used by the pure-JAX reference.
    pt = {}
    pt["w1"] = conv_w(ks[0], planes, inplanes, 1, 1)
    pt["w2"] = conv_w(ks[1], planes, cpg, K, K)
    pt["w4"] = conv_w(ks[2], outplanes, planes, 1, 1)
    pt["s1"], pt["b1"] = bn_fold(ks[3], planes)
    pt["s2"], pt["b2"] = bn_fold(ks[4], planes)
    pt["s4"], pt["b4"] = bn_fold(ks[5], outplanes)
    if downsample:
        pt["wd"] = conv_w(ks[6], outplanes, inplanes, 1, 1)
        pt["sd"], pt["bd"] = bn_fold(ks[7], outplanes)

    # kernel params: BN scale folded into the weights, (Cin, Cout) layout,
    # bf16 weights, grouped conv packed block-diagonally and tap-stacked on the
    # contraction axis: row index = (kh*K + kw)*planes + cin.
    p = {}
    p["w1"] = (pt["w1"].reshape(planes, inplanes).T * pt["s1"][None, :]
               ).astype(jnp.bfloat16)
    p["b1"] = pt["b1"].reshape(1, planes)
    w2bd = jnp.zeros((K, K, planes, planes), jnp.float32)
    for g in range(groups):
        blk = jnp.transpose(pt["w2"][g * cpg:(g + 1) * cpg], (2, 3, 1, 0))
        w2bd = w2bd.at[:, :, g * cpg:(g + 1) * cpg,
                       g * cpg:(g + 1) * cpg].set(blk)
    w2bd = w2bd * pt["s2"][None, None, None, :]
    p["w2"] = w2bd.reshape(K * K * planes, planes).astype(jnp.bfloat16)
    p["b2"] = pt["b2"].reshape(1, planes)
    p["w4"] = (pt["w4"].reshape(outplanes, planes).T * pt["s4"][None, :]
               ).astype(jnp.bfloat16)
    p["b4"] = pt["b4"].reshape(1, outplanes)
    if downsample:
        p["wd"] = (pt["wd"].reshape(outplanes, inplanes).T * pt["sd"][None, :]
                   ).astype(jnp.bfloat16)
        p["bd"] = pt["bd"].reshape(1, outplanes)
    return pt, p


# ------------------------------ pure-JAX reference ----------------------------
def block_cs_reference(x_nchw, pt, *, kernel_size, groups, downsample):
    def conv(x, w, padding, fg=1):
        return jax.lax.conv_general_dilated(
            x, w, (1, 1), [(padding, padding), (padding, padding)],
            feature_group_count=fg,
            dimension_numbers=("NCHW", "OIHW", "NCHW"))

    def bn(x, scale, bias):
        return x * scale.reshape(1, -1, 1, 1) + bias.reshape(1, -1, 1, 1)

    pad = 0 if kernel_size == 1 else 1
    out = _leaky(bn(conv(x_nchw, pt["w1"], 0), pt["s1"], pt["b1"]))
    out = _leaky(bn(conv(out, pt["w2"], pad, groups), pt["s2"], pt["b2"]))
    out = bn(conv(out, pt["w4"], 0), pt["s4"], pt["b4"])
    if downsample:
        res = bn(conv(x_nchw, pt["wd"], 0), pt["sd"], pt["bd"])
    else:
        res = x_nchw
    return _leaky(out + res)


if __name__ == "__main__":
    key = jax.random.PRNGKey(0)

    def run_case(kx, kp, *, N, inplanes, planes, outplanes, H, W, kernel_size,
                 groups, downsample, tile_h, stack_taps):
        x = jax.random.normal(kx, (N, inplanes, H, W), jnp.float32)
        pt, p = init_params(kp, inplanes, planes, outplanes, kernel_size,
                            groups, downsample)
        fwd = jax.jit(functools.partial(
            block_cs_forward, kernel_size=kernel_size, downsample=downsample,
            tile_h=tile_h, stack_taps=stack_taps))
        out = jax.block_until_ready(fwd(x, p)).astype(jnp.float32)
        assert out.shape == (N, outplanes, H, W)
        ref = block_cs_reference(x, pt, kernel_size=kernel_size,
                                 groups=groups, downsample=downsample)
        # bf16 weights / activations / output vs. a pure-f32 reference.
        err = jnp.abs(out - ref) / (1.0 + jnp.abs(ref))
        max_err, mean_err = float(jnp.max(err)), float(jnp.mean(err))
        assert max_err < 1e-1 and mean_err < 1e-2, (max_err, mean_err)

    keys = jax.random.split(key, 4)
    # 3x3 grouped conv + 1x1 downsample, two H-tiles (exercises the cross-tile
    # halo path), stacked-tap single-matmul MXU path.
    run_case(keys[0], keys[1], N=2, inplanes=16, planes=16, outplanes=32,
             H=32, W=16, kernel_size=3, groups=2, downsample=True,
             tile_h=16, stack_taps=None)
    # identity residual, single H-tile, per-tap MXU fallback path.
    run_case(keys[2], keys[3], N=2, inplanes=32, planes=16, outplanes=32,
             H=16, W=16, kernel_size=3, groups=4, downsample=False,
             tile_h=64, stack_taps=False)

    print("KERNEL_OK")
</pallas_src>

<mosaic_0001>
module attributes {stable_mosaic.version = 11 : i64} {
  func.func @_block_cs_kernel(%arg0: i32, %arg1: i32, %arg2: memref<1x16x16x16xbf16, #tpu.memory_space<vmem>>, %arg3: memref<1x1x16x16xbf16, #tpu.memory_space<vmem>>, %arg4: memref<1x1x16x16xbf16, #tpu.memory_space<vmem>>, %arg5: memref<16x16xbf16, #tpu.memory_space<vmem>>, %arg6: memref<1x16xf32, #tpu.memory_space<vmem>>, %arg7: memref<144x16xbf16, #tpu.memory_space<vmem>>, %arg8: memref<1x16xf32, #tpu.memory_space<vmem>>, %arg9: memref<32x32xbf16, #tpu.memory_space<vmem>>, %arg10: memref<1x32xf32, #tpu.memory_space<vmem>>, %arg11: memref<256x32xbf16, #tpu.memory_space<vmem>>) attributes {dimension_semantics = [#tpu.dimension_semantics<parallel>, #tpu.dimension_semantics<parallel>], iteration_bounds = array<i64: 2, 2>, scalar_prefetch = 0 : i64, scratch_operands = 0 : i64, tpu.core_type = #tpu.core_type<tc>, window_params = [{transform_indices = @transform_0, window_bounds = array<i64: 1, 16, 16, 16>}, {transform_indices = @transform_1, window_bounds = array<i64: 1, 1, 16, 16>}, {transform_indices = @transform_2, window_bounds = array<i64: 1, 1, 16, 16>}, {pipeline_mode = #tpu.pipeline_mode<synchronous>, transform_indices = @transform_3, window_bounds = array<i64: 16, 16>}, {pipeline_mode = #tpu.pipeline_mode<synchronous>, transform_indices = @transform_4, window_bounds = array<i64: 1, 16>}, {pipeline_mode = #tpu.pipeline_mode<synchronous>, transform_indices = @transform_5, window_bounds = array<i64: 144, 16>}, {pipeline_mode = #tpu.pipeline_mode<synchronous>, transform_indices = @transform_6, window_bounds = array<i64: 1, 16>}, {pipeline_mode = #tpu.pipeline_mode<synchronous>, transform_indices = @transform_7, window_bounds = array<i64: 32, 32>}, {pipeline_mode = #tpu.pipeline_mode<synchronous>, transform_indices = @transform_8, window_bounds = array<i64: 1, 32>}, {transform_indices = @transform_9, window_bounds = array<i64: 256, 32>}]} {
    %c0 = arith.constant 0 : index
    %c0_0 = arith.constant 0 : index
    %0 = vector.load %arg5[%c0, %c0_0] : memref<16x16xbf16, #tpu.memory_space<vmem>>, vector<16x16xbf16>
    %c0_1 = arith.constant 0 : index
    %c0_2 = arith.constant 0 : index
    %1 = vector.load %arg6[%c0_1, %c0_2] : memref<1x16xf32, #tpu.memory_space<vmem>>, vector<1x16xf32>
    %c0_3 = arith.constant 0 : index
    %c0_4 = arith.constant 0 : index
    %c0_5 = arith.constant 0 : index
    %c0_6 = arith.constant 0 : index
    %2 = vector.load %arg2[%c0_3, %c0_4, %c0_5, %c0_6] : memref<1x16x16x16xbf16, #tpu.memory_space<vmem>>, vector<1x16x16x16xbf16>
    %3 = vector.shape_cast %2 : vector<1x16x16x16xbf16> to vector<256x16xbf16>
    %cst = arith.constant dense<0.000000e+00> : vector<256x16xf32>
    %4 = tpu.matmul %3, %0, %cst {dimension_numbers = #tpu.dot_dimension_numbers<[1], [0], [0], [1], [0, 0, 1, 1], [], []>} : vector<256x16xbf16>, vector<16x16xbf16>, vector<256x16xf32> -> vector<256x16xf32>
    %5 = vector.broadcast %1 : vector<1x16xf32> to vector<256x16xf32>
    %6 = arith.addf %4, %5 : vector<256x16xf32>
    %cst_7 = arith.constant 0.000000e+00 : f32
    %7 = vector.broadcast %cst_7 : f32 to vector<256x16xf32>
    %8 = arith.cmpf oge, %6, %7 : vector<256x16xf32>
    %cst_8 = arith.constant 0.00999999977 : f32
    %9 = vector.broadcast %cst_8 : f32 to vector<256x16xf32>
    %10 = arith.mulf %9, %6 : vector<256x16xf32>
    %11 = arith.select %8, %6, %10 : vector<256x16xi1>, vector<256x16xf32>
    %12 = arith.truncf %11 : vector<256x16xf32> to vector<256x16xbf16>
    %c0_9 = arith.constant 0 : index
    %c0_10 = arith.constant 0 : index
    %c0_11 = arith.constant 0 : index
    %c0_12 = arith.constant 0 : index
    %13 = vector.load %arg3[%c0_9, %c0_10, %c0_11, %c0_12] : memref<1x1x16x16xbf16, #tpu.memory_space<vmem>>, vector<1x1x16x16xbf16>
    %14 = vector.shape_cast %13 : vector<1x1x16x16xbf16> to vector<16x16xbf16>
    %cst_13 = arith.constant dense<0.000000e+00> : vector<16x16xf32>
    %15 = tpu.matmul %14, %0, %cst_13 {dimension_numbers = #tpu.dot_dimension_numbers<[1], [0], [0], [1], [0, 0, 1, 1], [], []>} : vector<16x16xbf16>, vector<16x16xbf16>, vector<16x16xf32> -> vector<16x16xf32>
    %16 = vector.broadcast %1 : vector<1x16xf32> to vector<16x16xf32>
    %17 = arith.addf %15, %16 : vector<16x16xf32>
    %cst_14 = arith.constant 0.000000e+00 : f32
    %18 = vector.broadcast %cst_14 : f32 to vector<16x16xf32>
    %19 = arith.cmpf oge, %17, %18 : vector<16x16xf32>
    %cst_15 = arith.constant 0.00999999977 : f32
    %20 = vector.broadcast %cst_15 : f32 to vector<16x16xf32>
    %21 = arith.mulf %20, %17 : vector<16x16xf32>
    %22 = arith.select %19, %17, %21 : vector<16x16xi1>, vector<16x16xf32>
    %c0_16 = arith.constant 0 : index
    %c0_17 = arith.constant 0 : index
    %c0_18 = arith.constant 0 : index
    %c0_19 = arith.constant 0 : index
    %23 = vector.load %arg4[%c0_16, %c0_17, %c0_18, %c0_19] : memref<1x1x16x16xbf16, #tpu.memory_space<vmem>>, vector<1x1x16x16xbf16>
    %24 = vector.shape_cast %23 : vector<1x1x16x16xbf16> to vector<16x16xbf16>
    %cst_20 = arith.constant dense<0.000000e+00> : vector<16x16xf32>
    %25 = tpu.matmul %24, %0, %cst_20 {dimension_numbers = #tpu.dot_dimension_numbers<[1], [0], [0], [1], [0, 0, 1, 1], [], []>} : vector<16x16xbf16>, vector<16x16xbf16>, vector<16x16xf32> -> vector<16x16xf32>
    %26 = vector.broadcast %1 : vector<1x16xf32> to vector<16x16xf32>
    %27 = arith.addf %25, %26 : vector<16x16xf32>
    %cst_21 = arith.constant 0.000000e+00 : f32
    %28 = vector.broadcast %cst_21 : f32 to vector<16x16xf32>
    %29 = arith.cmpf oge, %27, %28 : vector<16x16xf32>
    %cst_22 = arith.constant 0.00999999977 : f32
    %30 = vector.broadcast %cst_22 : f32 to vector<16x16xf32>
    %31 = arith.mulf %30, %27 : vector<16x16xf32>
    %32 = arith.select %29, %27, %31 : vector<16x16xi1>, vector<16x16xf32>
    %c0_i32 = arith.constant 0 : i32
    %33 = arith.cmpi eq, %arg1, %c0_i32 : i32
    %cst_23 = arith.constant 0.000000e+00 : f32
    %34 = vector.broadcast %cst_23 : f32 to vector<16x16xf32>
    %35 = arith.select %33, %34, %22 : vector<16x16xf32>
    %36 = arith.truncf %35 : vector<16x16xf32> to vector<16x16xbf16>
    %c1_i32 = arith.constant 1 : i32
    %37 = arith.cmpi eq, %arg1, %c1_i32 : i32
    %cst_24 = arith.constant 0.000000e+00 : f32
    %38 = vector.broadcast %cst_24 : f32 to vector<16x16xf32>
    %39 = arith.select %37, %38, %32 : vector<16x16xf32>
    %40 = arith.truncf %39 : vector<16x16xf32> to vector<16x16xbf16>
    %41 = tpu.concatenate %36, %12, %40 in 0 : vector<16x16xbf16>, vector<256x16xbf16>, vector<16x16xbf16> -> vector<288x16xbf16>
    %42 = tpu.iota {dimensions = array<i32: 0>} : vector<288x1xi32>
    %c16_i32 = arith.constant 16 : i32
    %c0_i32_25 = arith.constant 0 : i32
    %43 = arith.cmpi eq, %c16_i32, %c0_i32_25 : i32
    %c1_i32_26 = arith.constant 1 : i32
    %44 = arith.select %43, %c1_i32_26, %c16_i32 : i32
    %45 = vector.broadcast %44 : i32 to vector<288x1xi32>
    %46 = arith.remsi %42, %45 : vector<288x1xi32>
    %c0_i32_27 = arith.constant 0 : i32
    %47 = vector.broadcast %c0_i32_27 : i32 to vector<288x1xi32>
    %48 = arith.cmpi ne, %46, %47 : vector<288x1xi32>
    %c0_i32_28 = arith.constant 0 : i32
    %49 = vector.broadcast %c0_i32_28 : i32 to vector<288x1xi32>
    %50 = arith.cmpi slt, %46, %49 : vector<288x1xi32>
    %c0_i32_29 = arith.constant 0 : i32
    %51 = arith.cmpi slt, %44, %c0_i32_29 : i32
    %52 = vector.broadcast %51 : i1 to vector<288x1xi1>
    %53 = vector.broadcast %52 : vector<288x1xi1> to vector<288x1xi1>
    %54 = arith.xori %50, %53 : vector<288x1xi1>
    %55 = arith.andi %54, %48 : vector<288x1xi1>
    %56 = vector.broadcast %44 : i32 to vector<288x1xi32>
    %57 = arith.addi %46, %56 : vector<288x1xi32>
    %58 = arith.select %55, %57, %46 : vector<288x1xi1>, vector<288x1xi32>
    %cst_30 = arith.constant 0.000000e+00 : bf16
    %59 = vector.broadcast %cst_30 : bf16 to vector<288x16xbf16>
    %c15_i32 = arith.constant 15 : i32
    %60 = vector.broadcast %c15_i32 : i32 to vector<288x1xi32>
    %61 = arith.cmpi eq, %58, %60 : vector<288x1xi32>
    %62 = vector.shape_cast %61 : vector<288x1xi1> to vector<288x1xi1>
    %63 = vector.broadcast %62 : vector<288x1xi1> to vector<288x16xi1>
    %64 = arith.select %63, %59, %41 : vector<288x16xi1>, vector<288x16xbf16>
    %c0_i32_31 = arith.constant 0 : i32
    %65 = vector.broadcast %c0_i32_31 : i32 to vector<288x1xi32>
    %66 = arith.cmpi eq, %58, %65 : vector<288x1xi32>
    %67 = vector.shape_cast %66 : vector<288x1xi1> to vector<288x1xi1>
    %68 = vector.broadcast %67 : vector<288x1xi1> to vector<288x16xi1>
    %69 = arith.select %68, %59, %41 : vector<288x16xi1>, vector<288x16xbf16>
    %cst_32 = arith.constant 0.000000e+00 : bf16
    %70 = vector.broadcast %cst_32 : bf16 to vector<17x16xbf16>
    %cst_33 = arith.constant 0.000000e+00 : bf16
    %71 = vector.broadcast %cst_33 : bf16 to vector<15x16xbf16>
    %72 = tpu.concatenate %70, %64, %71 in 0 : vector<17x16xbf16>, vector<288x16xbf16>, vector<15x16xbf16> -> vector<320x16xbf16>
    %cst_34 = arith.constant 0.000000e+00 : bf16
    %73 = vector.broadcast %cst_34 : bf16 to vector<16x16xbf16>
    %cst_35 = arith.constant 0.000000e+00 : bf16
    %74 = vector.broadcast %cst_35 : bf16 to vector<16x16xbf16>
    %75 = tpu.concatenate %73, %41, %74 in 0 : vector<16x16xbf16>, vector<288x16xbf16>, vector<16x16xbf16> -> vector<320x16xbf16>
    %cst_36 = arith.constant 0.000000e+00 : bf16
    %76 = vector.broadcast %cst_36 : bf16 to vector<15x16xbf16>
    %cst_37 = arith.constant 0.000000e+00 : bf16
    %77 = vector.broadcast %cst_37 : bf16 to vector<17x16xbf16>
    %78 = tpu.concatenate %76, %69, %77 in 0 : vector<15x16xbf16>, vector<288x16xbf16>, vector<17x16xbf16> -> vector<320x16xbf16>
    %79 = vector.extract_strided_slice %72 {offsets = [16, 0], sizes = [256, 16], strides = [1, 1]} : vector<320x16xbf16> to vector<256x16xbf16>
    %80 = vector.extract_strided_slice %75 {offsets = [16, 0], sizes = [256, 16], strides = [1, 1]} : vector<320x16xbf16> to vector<256x16xbf16>
    %81 = vector.extract_strided_slice %78 {offsets = [16, 0], sizes = [256, 16], strides = [1, 1]} : vector<320x16xbf16> to vector<256x16xbf16>
    %82 = vector.extract_strided_slice %72 {offsets = [32, 0], sizes = [256, 16], strides = [1, 1]} : vector<320x16xbf16> to vector<256x16xbf16>
    %83 = vector.extract_strided_slice %75 {offsets = [32, 0], sizes = [256, 16], strides = [1, 1]} : vector<320x16xbf16> to vector<256x16xbf16>
    %84 = vector.extract_strided_slice %78 {offsets = [32, 0], sizes = [256, 16], strides = [1, 1]} : vector<320x16xbf16> to vector<256x16xbf16>
    %85 = vector.extract_strided_slice %72 {offsets = [48, 0], sizes = [256, 16], strides = [1, 1]} : vector<320x16xbf16> to vector<256x16xbf16>
    %86 = vector.extract_strided_slice %75 {offsets = [48, 0], sizes = [256, 16], strides = [1, 1]} : vector<320x16xbf16> to vector<256x16xbf16>
    %87 = vector.extract_strided_slice %78 {offsets = [48, 0], sizes = [256, 16], strides = [1, 1]} : vector<320x16xbf16> to vector<256x16xbf16>
    %88 = tpu.concatenate %79, %80, %81, %82, %83, %84, %85, %86, %87 in 1 : vector<256x16xbf16>, vector<256x16xbf16>, vector<256x16xbf16>, vector<256x16xbf16>, vector<256x16xbf16>, vector<256x16xbf16>, vector<256x16xbf16>, vector<256x16xbf16>, vector<256x16xbf16> -> vector<256x144xbf16>
    %c0_38 = arith.constant 0 : index
    %c0_39 = arith.constant 0 : index
    %89 = vector.load %arg7[%c0_38, %c0_39] : memref<144x16xbf16, #tpu.memory_space<vmem>>, vector<144x16xbf16>
    %cst_40 = arith.constant dense<0.000000e+00> : vector<256x16xf32>
    %90 = tpu.matmul %88, %89, %cst_40 {dimension_numbers = #tpu.dot_dimension_numbers<[1], [0], [0], [1], [0, 0, 1, 1], [], []>} : vector<256x144xbf16>, vector<144x16xbf16>, vector<256x16xf32> -> vector<256x16xf32>
    %c0_41 = arith.constant 0 : index
    %c0_42 = arith.constant 0 : index
    %91 = vector.load %arg8[%c0_41, %c0_42] : memref<1x16xf32, #tpu.memory_space<vmem>>, vector<1x16xf32>
    %92 = vector.broadcast %91 : vector<1x16xf32> to vector<256x16xf32>
    %93 = arith.addf %90, %92 : vector<256x16xf32>
    %cst_43 = arith.constant 0.000000e+00 : f32
    %94 = vector.broadcast %cst_43 : f32 to vector<256x16xf32>
    %95 = arith.cmpf oge, %93, %94 : vector<256x16xf32>
    %cst_44 = arith.constant 0.00999999977 : f32
    %96 = vector.broadcast %cst_44 : f32 to vector<256x16xf32>
    %97 = arith.mulf %96, %93 : vector<256x16xf32>
    %98 = arith.select %95, %93, %97 : vector<256x16xi1>, vector<256x16xf32>
    %99 = arith.truncf %98 : vector<256x16xf32> to vector<256x16xbf16>
    %100 = tpu.concatenate %99, %3 in 1 : vector<256x16xbf16>, vector<256x16xbf16> -> vector<256x32xbf16>
    %c0_45 = arith.constant 0 : index
    %c0_46 = arith.constant 0 : index
    %101 = vector.load %arg9[%c0_45, %c0_46] : memref<32x32xbf16, #tpu.memory_space<vmem>>, vector<32x32xbf16>
    %cst_47 = arith.constant dense<0.000000e+00> : vector<256x32xf32>
    %102 = tpu.matmul %100, %101, %cst_47 {dimension_numbers = #tpu.dot_dimension_numbers<[1], [0], [0], [1], [0, 0, 1, 1], [], []>} : vector<256x32xbf16>, vector<32x32xbf16>, vector<256x32xf32> -> vector<256x32xf32>
    %c0_48 = arith.constant 0 : index
    %c0_49 = arith.constant 0 : index
    %103 = vector.load %arg10[%c0_48, %c0_49] : memref<1x32xf32, #tpu.memory_space<vmem>>, vector<1x32xf32>
    %104 = vector.broadcast %103 : vector<1x32xf32> to vector<256x32xf32>
    %105 = arith.addf %102, %104 : vector<256x32xf32>
    %cst_50 = arith.constant 0.000000e+00 : f32
    %106 = vector.broadcast %cst_50 : f32 to vector<256x32xf32>
    %107 = arith.cmpf oge, %105, %106 : vector<256x32xf32>
    %cst_51 = arith.constant 0.00999999977 : f32
    %108 = vector.broadcast %cst_51 : f32 to vector<256x32xf32>
    %109 = arith.mulf %108, %105 : vector<256x32xf32>
    %110 = arith.select %107, %105, %109 : vector<256x32xi1>, vector<256x32xf32>
    %111 = arith.truncf %110 : vector<256x32xf32> to vector<256x32xbf16>
    %c0_52 = arith.constant 0 : index
    %c0_53 = arith.constant 0 : index
    %112 = vector.load %arg11[%c0_52, %c0_53] : memref<256x32xbf16, #tpu.memory_space<vmem>>, vector<256x32xbf16>
    tpu.vector_store %arg11[%c0_52, %c0_53], %111 {strides = array<i32>} : memref<256x32xbf16, #tpu.memory_space<vmem>>, vector<256x32xbf16>,
    return
  }
  func.func @transform_0(%arg0: i32, %arg1: i32) -> (i32, i32, i32, i32) {
    %c0_i32 = arith.constant 0 : i32
    %c0_i32_0 = arith.constant 0 : i32
    %c0_i32_1 = arith.constant 0 : i32
    return %arg0, %arg1, %c0_i32, %c0_i32_0 : i32, i32, i32, i32
  }
  func.func @transform_1(%arg0: i32, %arg1: i32) -> (i32, i32, i32, i32) {
    %c16_i32 = arith.constant 16 : i32
    %0 = arith.muli %arg1, %c16_i32 : i32
    %c1_i32 = arith.constant 1 : i32
    %1 = arith.subi %0, %c1_i32 : i32
    %c0_i32 = arith.constant 0 : i32
    %2 = arith.maxsi %1, %c0_i32 : i32
    %c0_i32_0 = arith.constant 0 : i32
    %c0_i32_1 = arith.constant 0 : i32
    %c0_i32_2 = arith.constant 0 : i32
    return %arg0, %2, %c0_i32_0, %c0_i32_1 : i32, i32, i32, i32
  }
  func.func @transform_2(%arg0: i32, %arg1: i32) -> (i32, i32, i32, i32) {
    %c1_i32 = arith.constant 1 : i32
    %0 = arith.addi %arg1, %c1_i32 : i32
    %c16_i32 = arith.constant 16 : i32
    %1 = arith.muli %0, %c16_i32 : i32
    %c31_i32 = arith.constant 31 : i32
    %2 = arith.minsi %1, %c31_i32 : i32
    %c0_i32 = arith.constant 0 : i32
    %c0_i32_0 = arith.constant 0 : i32
    %c0_i32_1 = arith.constant 0 : i32
    return %arg0, %2, %c0_i32, %c0_i32_0 : i32, i32, i32, i32
  }
  func.func @transform_3(%arg0: i32, %arg1: i32) -> (i32, i32) {
    %c0_i32 = arith.constant 0 : i32
    %c0_i32_0 = arith.constant 0 : i32
    %c0_i32_1 = arith.constant 0 : i32
    return %c0_i32, %c0_i32_0 : i32, i32
  }
  func.func @transform_4(%arg0: i32, %arg1: i32) -> (i32, i32) {
    %c0_i32 = arith.constant 0 : i32
    %c0_i32_0 = arith.constant 0 : i32
    %c0_i32_1 = arith.constant 0 : i32
    return %c0_i32, %c0_i32_0 : i32, i32
  }
  func.func @transform_5(%arg0: i32, %arg1: i32) -> (i32, i32) {
    %c0_i32 = arith.constant 0 : i32
    %c0_i32_0 = arith.constant 0 : i32
    %c0_i32_1 = arith.constant 0 : i32
    return %c0_i32, %c0_i32_0 : i32, i32
  }
  func.func @transform_6(%arg0: i32, %arg1: i32) -> (i32, i32) {
    %c0_i32 = arith.constant 0 : i32
    %c0_i32_0 = arith.constant 0 : i32
    %c0_i32_1 = arith.constant 0 : i32
    return %c0_i32, %c0_i32_0 : i32, i32
  }
  func.func @transform_7(%arg0: i32, %arg1: i32) -> (i32, i32) {
    %c0_i32 = arith.constant 0 : i32
    %c0_i32_0 = arith.constant 0 : i32
    %c0_i32_1 = arith.constant 0 : i32
    return %c0_i32, %c0_i32_0 : i32, i32
  }
  func.func @transform_8(%arg0: i32, %arg1: i32) -> (i32, i32) {
    %c0_i32 = arith.constant 0 : i32
    %c0_i32_0 = arith.constant 0 : i32
    %c0_i32_1 = arith.constant 0 : i32
    return %c0_i32, %c0_i32_0 : i32, i32
  }
  func.func @transform_9(%arg0: i32, %arg1: i32) -> (i32, i32) {
    %c2_i32 = arith.constant 2 : i32
    %0 = arith.muli %arg0, %c2_i32 : i32
    %1 = arith.addi %0, %arg1 : i32
    %c0_i32 = arith.constant 0 : i32
    %c0_i32_0 = arith.constant 0 : i32
    return %1, %c0_i32 : i32, i32
  }
}

</mosaic_0001>

<bundles_post_ra>
// kernel: block_cs_forward.1
= control target key start
LH: loop header
LB: loop body
LE: loop exit
PB: predicated region body
PF: predicated region fallthrough
CT: control target
= control target key end

     0   :  { %s4531_s30 = smov 0   ;;  %s4533_s10 = smov 0   ;;  %s6406_s0 = inlined_call_operand.vmem [shape: bf16[2,32,16,16], index: 0, kind: input, shape index: {}, may-alias: {0,1,2}]   ;;  %s6407_s1 = inlined_call_operand.vmem [shape: bf16[2,32,16,16], index: 1, kind: input, shape index: {}, may-alias: {0,1,2}]   ;;  %s6408_s2 = inlined_call_operand.vmem [shape: bf16[2,32,16,16], index: 2, kind: input, shape index: {}, may-alias: {0,1,2}]   ;;  %s6409_s3 = inlined_call_operand.vmem [shape: bf16[16,16], index: 3, kind: input, shape index: {}]   ;;  %s6410_s4 = inlined_call_operand.vmem [shape: f32[1,16], index: 4, kind: input, shape index: {}]   ;;  %s6411_s5 = inlined_call_operand.vmem [shape: bf16[144,16], index: 5, kind: input, shape index: {}]   ;;  %s6412_s6 = inlined_call_operand.vmem [shape: f32[1,16], index: 6, kind: input, shape index: {}]   ;;  %s6413_s7 = inlined_call_operand.vmem [shape: bf16[32,32], index: 7, kind: input, shape index: {}]   ;;  %s6414_s8 = inlined_call_operand.vmem [shape: f32[1,32], index: 8, kind: input, shape index: {}]   ;;  %s6415_s9 = inlined_call_operand.vmem [shape: bf16[1024,32], index: 9, kind: output, shape index: {}]  }
   0x1   :  { %s4535_s11 = smov 0   ;;  %s4537_s12 = smov 0  }
   0x2   :  { %s4539_s13 = smov 0  }
   0x3 LB: > { %s28_s14 = sadd.s32 1, %s4461_s11  ;;  %s31_s15 = sadd.s32 1, %s4465_s12  ;;  %s4469_s13 = sphi %s4539_s13, %s19_s13   ;;  %s4465_s12 = sphi %s4537_s12, %s6587_s12   ;;  %s4461_s11 = sphi %s4535_s11, %s6586_s11   ;;  %s4457_s10 = sphi %s4533_s10, %s6585_s10   ;;  %s4453_s30 = sphi %s4531_s30, %s6584_s30  }
   0x4   : > { %p29_p0 = scmp.ge.s32.totalorder %s28_s14, 2  ;;  %p3978_p1 = scmp.ge.s32.totalorder %s4469_s13, 1 }
   0x5   : > { %p375_p2 = scmp.lt.s32.totalorder %s4469_s13, 5 }
   0x6   : > { %s6589_s14 = smov (%p29_p0, %s28_s14), 0  ;;  %s6591_s15 = smov (!%p29_p0, %s31_s15), %s4465_s12 }
   0x7   : > { %p376_p3 = pnand %p3978_p1, %p375_p2  ;;  %p33_p4 = scmp.ge.s32.totalorder %s6591_s15, 2 }
   0x9   : > { %s6593_s15 = smov (%p33_p4, %s6591_s15), 0  ;;  %379 = sbr.rel (%p376_p3) target bundleno = 1034 (0x40a), region = 56 }
  0x10   : > { %v4385_v0 = vld [vmem:[%s6409_s3] sm:$0xff]   ;;  %v4471_v1 = vmov 0.0   ;;  %s3979_s18 = sshll.u32 %s4453_s30, 4  ;;  %p445_p5 = scmp.lt.s32.totalorder %s4457_s10, 1  ;;  %vm4472_vm0 = vmmov 0   ;;  %v4473_v2 = vmov 0   ;;  %v1079_v21 = vlaneseq }
  0x11   : > { %4269 = vmatprep.subr.bf16.mxu1 %v4471_v1  ;;  %4235 = vmatprep.subr.bf16.mxu0 %v4385_v0  ;;  %p447_p6 = scmp.lt.s32.totalorder %s3979_s18, 31  ;;  %s3984_s19 = sadd.s32 4294967295, %s3979_s18  ;;  %vm6416_vm1 = vcmask 130048   ;;  %vm1656_vm3 = vmpackc.low %vm4472_vm0, %vm4472_vm0 }
  0x12   : > { %4270 = vmatpush3.bf16.msra.mxu1 %v4385_v0  ;;  %4236 = vmatpush3.bf16.msra.mxu0 %v4385_v0  ;;  %s446_s20 = scalar_select %p445_p5, %s4457_s10, 1  ;;  %v4633_v22 = vshrl.u32 %v1079_v21, 7  ;;  %v4670_v46 = vsel %vm1656_vm3, 65537, %v4473_v2 }
  0x13   : > { %4271 = vmatprep.mubr.msk.bf16.mxu1 %vm4472_vm0, %v4471_v1  ;;  %s448_s21 = scalar_select %p447_p6, %s3979_s18, 31  ;;  %4275 = vmatprep.subr.bf16.mxu1 %v4471_v1 }
  0x14   : > { %3015 = vmatprep.subr.bf16.mxu0 %v4473_v2  ;;  %s4573_s22 = sshll.u32 %s446_s20, 6  ;;  %p457_p7 = scmp.gt.s32.totalorder %s3984_s19, 0  ;;  %v1084_v23 = vadd.s32 32, %v4633_v22  ;;  %v1085_v24 = vadd.s32 40, %v4633_v22  ;;  %v1083_v25 = vadd.s32 24, %v4633_v22  ;;  %v1086_v27 = vadd.s32 48, %v4633_v22 }
  0x15   : > { %s3980_s23 = sshll.u32 %s448_s21, 1  ;;  %p3985_p8 = scmp.lt.s32.totalorder %s3984_s19, 31  ;;  %v1081_v29 = vadd.s32 8, %v4633_v22  ;;  %v1088_v31 = vadd.s32 64, %v4633_v22  ;;  %v1120_v33 = vand.u32 15, %v4633_v22  ;;  %v1082_v34 = vadd.s32 16, %v4633_v22 }
  0x16   : > { %s451_s24 = sadd.s32 %s4573_s22, %s3980_s23  ;;  %s4163_s25 = sadd.s32 16, %s3979_s18  ;;  %v1148_v26 = vand.u32 15, %v1084_v23  ;;  %v1155_v28 = vand.u32 15, %v1085_v24  ;;  %v1141_v30 = vand.u32 15, %v1083_v25  ;;  %v1162_v35 = vand.u32 15, %v1086_v27 }
  0x17   : > { %s3982_s26 = sshll.u32 %s451_s24, 2  ;;  %p4576_p9 = scmp.lt.s32.totalorder %s4163_s25, 31  ;;  %v1090_v36 = vadd.s32 80, %v4633_v22  ;;  %v1127_v38 = vand.u32 15, %v1081_v29  ;;  %v1089_v39 = vadd.s32 72, %v4633_v22  ;;  %v1176_v41 = vand.u32 15, %v1088_v31 }
  0x18   : > { %s4583_s16 = scalar_lea.vmem %s6406_s0, %s3982_s26  ;;  %s6595_s19 = smov (!%p457_p7, %s3984_s19), 0  ;;  %vm4641_vm2 = vcmp.eq.s32.totalorder %v1148_v26, 0  ;;  %vm4650_vm4 = vcmp.eq.s32.totalorder %v1155_v28, 15  ;;  %vm4658_vm6 = vcmp.eq.s32.totalorder %v1141_v30, 15  ;;  %v1087_v42 = vadd.s32 56, %v4633_v22 }
  0x19   : > { %v4386_v3 = vld [vmem:[%s4583_s16] sm:$0xff]   ;;  %v4387_v4 = vld [vmem:[%s4583_s16 + $0x8] sm:$0xff]   ;;  %s6597_s25 = smov (!%p4576_p9, %s4163_s25), 31  ;;  %s6599_s19 = smov (!%p3985_p8, %s6595_s19), 31  ;;  %v4389_v5 = vld [vmem:[%s4583_s16 + $0x10] sm:$0xff]   ;;  %vm4664_vm7 = vcmp.eq.s32.totalorder %v1120_v33, 0 }
  0x1a   : > { %4237 = vmatprep.mubr.msk.bf16.mxu0 %vm6416_vm1, %v4386_v3  ;;  %s6601_s25 = smov (!%p4576_p9, %s6597_s25), 31  ;;  %s3990_s17 = sshll.u32 %s6599_s19, 1  ;;  %v4390_v6 = vld [vmem:[%s4583_s16 + $0x18] sm:$0xff]   ;;  %v4391_v7 = vld [vmem:[%s4583_s16 + $0x20] sm:$0xff]   ;;  %v4392_v9 = vld [vmem:[%s4583_s16 + $0x28] sm:$0xff]   ;;  %v1134_v44 = vand.u32 15, %v1082_v34 }
  0x1b   : > { %4238 = vmatmul.mubr.msk.bf16.vlgmr.msra.gmra.mrb[0].mxu0 %vm6416_vm1, %v4387_v4  ;;  %s465_s18 = sadd.s32 %s3990_s17, %s4573_s22  ;;  %s3997_s20 = sshll.u32 %s6601_s25, 1  ;;  %v4393_v10 = vld [vmem:[%s4583_s16 + $0x30] sm:$0xff]   ;;  %v4394_v12 = vld [vmem:[%s4583_s16 + $0x38] sm:$0xff]   ;;  %v4395_v13 = vld [vmem:[%s4583_s16 + $0x40] sm:$0xff]   ;;  %v1091_v45 = vadd.s32 88, %v4633_v22  ;;  %vm4672_vm8 = vcmp.eq.s32.totalorder %v1162_v35, 0 }
  0x1c   : > { %4241 = vmatprep.mubr.msk.bf16.mxu0 %vm6416_vm1, %v4389_v5  ;;  %s3992_s21 = sshll.u32 %s465_s18, 2  ;;  %s482_s28 = sadd.s32 %s3997_s20, %s4573_s22  ;;  %v4396_v14 = vld [vmem:[%s4583_s16 + $0x48] sm:$0xff]   ;;  %v4397_v15 = vld [vmem:[%s4583_s16 + $0x50] sm:$0xff]   ;;  %v4398_v16 = vld [vmem:[%s4583_s16 + $0x58] sm:$0xff]   ;;  %v1190_v48 = vand.u32 15, %v1090_v36  ;;  %v1092_v49 = vadd.s32 96, %v4633_v22 }
  0x1d   : > { %s467_s26 = scalar_lea.vmem %s6407_s1, %s3992_s21  ;;  %s3999_s19 = sshll.u32 %s482_s28, 2  ;;  %v4399_v17 = vld [vmem:[%s4583_s16 + $0x60] sm:$0xff]   ;;  %v4400_v18 = vld [vmem:[%s4583_s16 + $0x68] sm:$0xff]   ;;  %v4401_v19 = vld [vmem:[%s4583_s16 + $0x70] sm:$0xff]   ;;  %vm4686_vm11 = vcmp.eq.s32.totalorder %v1127_v38, 15  ;;  %v1183_v52 = vand.u32 15, %v1089_v39 }
  0x1e   : > { %v4388_v8 = vld [vmem:[%s467_s26] sm:$0xff]   ;;  %s484_s22 = scalar_lea.vmem %s6408_s2, %s3999_s19  ;;  %v4402_v20 = vld [vmem:[%s4583_s16 + $0x78] sm:$0xff]   ;;  %vm1930_vm5 = vmpackc.low %vm4641_vm2, %vm4641_vm2  ;;  %p1065_p10 = scmp.eq.s32.totalorder %s4453_s30, 0  ;;  %v1093_v53 = vadd.s32 104, %v4633_v22  ;;  %vm4694_vm13 = vcmp.eq.s32.totalorder %v1176_v41, 0  ;;  %v1169_v55 = vand.u32 15, %v1087_v42 }
  0x1f   : > { %4272 = vmatmul.mubr.msk.bf16.vlgmr.msra.gmra.mrb[0].mxu1 %vm6416_vm1, %v4388_v8  ;;  %v4403_v11 = vld [vmem:[%s484_s22] sm:$0xff]   ;;  %vm1661_vm9 = vmpackc.low %vm4650_vm4, %vm4650_vm4  ;;  %v4681_v50 = vsel %vm1930_vm5, 65537, %v4473_v2  ;;  %v1095_v56 = vadd.s32 120, %v4633_v22  ;;  %vm4706_vm15 = vcmp.eq.s32.totalorder %v1134_v44, 0  ;;  %v1197_v58 = vand.u32 15, %v1091_v45  ;;  %s4474_s20 = smov 112  }
  0x20   : > { %4276 = vmatpush3.bf16.msra.mxu1 %v4385_v0  ;;  %4277 = vmatprep.mubr.msk.bf16.mxu1 %vm4472_vm0, %v4471_v1  ;;  %vm1659_vm10 = vmpackc.low %vm4658_vm6, %vm4658_vm6  ;;  %s4704_s29 = scalar_select %p1065_p10, 1, 0  ;;  %v1094_v59 = vadd.s32 112, %v4633_v22  ;;  %v4061_v60 = vcombine.low %v4681_v50, %v4670_v46  ;;  %vm4713_vm0 = vcmp.eq.s32.totalorder %v1190_v48, 0  ;;  %v1204_v62 = vand.u32 15, %v1092_v49 }
  0x21   : > { %4317 = vmatprep.subr.bf16.mxu1 %v4473_v2  ;;  %vm1926_vm12 = vmpackc.low %vm4664_vm7, %vm4664_vm7  ;;  %v1097_v63 = vadd.s32 136, %v4633_v22  ;;  %v4727_v0 = vsel %vm1659_vm10, 65537, %v4473_v2  ;;  %vm4732_vm5 = vcmp.eq.s32.totalorder %v1183_v52, 15  ;;  %v1211_v3 = vand.u32 15, %v1093_v53  ;;  %s4475_s21 = smov 16   ;;  %s4476_s23 = smov 64  }
  0x22   : > { %vm1932_vm14 = vmpackc.low %vm4672_vm8, %vm4672_vm8  ;;  %v1096_v4 = vadd.s32 128, %v4633_v22  ;;  %v4743_v5 = vsel %vm1661_vm9, 65537, %v4473_v2  ;;  %vm4748_vm10 = vcmp.eq.s32.totalorder %v1169_v55, 15  ;;  %v1098_v8 = vadd.s32 144, %v4633_v22  ;;  %s4477_s22 = smov 32   ;;  %s4479_s24 = smov 48  }
  0x23   : > { %4242 = vmatmul.mubr.msk.bf16.gmra.mrb[4].mxu0 %vm6416_vm1, %v4390_v6  ;;  %vm1657_vm2 = vmpackc.low %vm4686_vm11, %vm4686_vm11  ;;  %vm4765_vm9 = vcmp.eq.s32.totalorder %v1197_v58, 15  ;;  %vm4774_vm6 = vcmp.eq.s32.totalorder %v1204_v62, 0  ;;  %v4795_v21 = vsel %vm1932_vm14, 65537, %v4473_v2  ;;  %v1100_v25 = vadd.s32 160, %v4633_v22  ;;  %s4480_s18 = smov 80   ;;  %p1072_p11 = scmp.eq.s32.totalorder %s4453_s30, 1 }
  0x24   : > { %4245 = vmatprep.mubr.msk.bf16.mxu0 %vm6416_vm1, %v4391_v7  ;;  %vm1934_vm3 = vmpackc.low %vm4694_vm13, %vm4694_vm13  ;;  %v1225_v7 = vand.u32 15, %v1095_v56  ;;  %v1246_v24 = vand.u32 15, %v1098_v8  ;;  %v4819_v27 = vsel %vm1657_vm2, 65537, %v4473_v2  ;;  %v1103_v29 = vadd.s32 184, %v4633_v22  ;;  %v4933_v56 = vld [vmem:[%s6410_s4] ss:$0 sm:$0xff] }
  0x25   : > { %vm1936_vm4 = vmpackc.low %vm4713_vm0, %vm4713_vm0  ;;  %v4811_v26 = vsel %vm1934_vm3, 65537, %v4473_v2  ;;  %v1102_v33 = vadd.s32 176, %v4633_v22  ;;  %v4062_v38 = vcombine.low %v4795_v21, %v4670_v46  ;;  %v1260_v41 = vand.u32 15, %v1100_v25  ;;  %s1073_s27 = scalar_select %p1072_p11, 1, 0 }
  0x26   : > { %vm4800_vm7 = vcmp.eq.s32.totalorder %v1225_v7, 15  ;;  %vm1938_vm8 = vmpackc.low %vm4774_vm6, %vm4774_vm6  ;;  %v4853_v35 = vsel %vm1936_vm4, 65537, %v4473_v2  ;;  %v4063_v42 = vcombine.low %v4811_v26, %v4670_v46  ;;  %v4041_v43 = vcombine.low %v4670_v46, %v4819_v27 }
  0x27   : > { %4278 = vmatmul.mubr.msk.bf16.vlgmr.msra.gmra.mrb[4].mxu1 %vm6416_vm1, %v4403_v11  ;;  %vm6453_vm13 = vmpackc.low %vm4706_vm15, %vm4706_vm15  ;;  %v1281_v45 = vand.u32 15, %v1103_v29  ;;  %v4064_v47 = vcombine.low %v4853_v35, %v4670_v46  ;;  %v1274_v51 = vand.u32 15, %v1102_v33  ;;  %v4921_v54 = vsel %vm1938_vm8, 65537, %v4473_v2  ;;  %v4404_v35 = vld [vmem:[%s6411_s5] sm:$0xff]  }
  0x28   : > { %v4835_v30 = vsel %vm6453_vm13, 65537, %v4473_v2  ;;  %vm1671_vm15 = vmpackc.low %vm4800_vm7, %vm4800_vm7  ;;  %vm4875_vm13 = vcmp.eq.s32.totalorder %v1246_v24, 0  ;;  %vm4986_vm8 = vcmp.ne.s16.totalorder %v4061_v60, 0  ;;  %v4065_v8 = vcombine.low %v4921_v54, %v4670_v46  ;;  %3016 = vmatpush1.bf16.msra.mxu0 %v4404_v35  ;;  %4326 = vmatpush1.bf16.msra.mxu1 %v4404_v35 }
  0x29   : > { %vm6458_vm0 = vmpackc.low %vm4732_vm5, %vm4732_vm5  ;;  %v4060_v44 = vcombine.low %v4835_v30, %v4670_v46  ;;  %v4941_v57 = vsel %vm1671_vm15, 65537, %v4473_v2  ;;  %3017 = vmatprep.subr.bf16.mxu0 %v4473_v2  ;;  %4318 = vmatprep.subr.bf16.mxu1 %v4473_v2 }
  0x2a   : > { %v4870_v39 = vsel %vm6458_vm0, 65537, %v4473_v2  ;;  %vm6461_vm0 = vmpackc.low %vm4748_vm10, %vm4748_vm10 }
  0x2b   : > { %4246 = vmatmul.mubr.msk.bf16.gmra.mrb[8].mxu0 %vm6416_vm1, %v4392_v9  ;;  %v1067_v9 = vstv %s4704_s29  ;;  %v4896_v48 = vsel %vm6461_vm0, 65537, %v4473_v2  ;;  %v4045_v53 = vcombine.low %v4670_v46, %v4870_v39  ;;  %vm1944_vm10 = vmpackc.low %vm4875_vm13, %vm4875_vm13  ;;  %s4478_s29 = smov 96  }
  0x2c   : > { %4249 = vmatprep.mubr.msk.bf16.mxu0 %vm6416_vm1, %v4393_v10  ;;  %v4760_v10 = vsel %vm1926_vm12, 65537, %v4473_v2  ;;  %vm4784_vm12 = vcmp.eq.s32.totalorder %v1211_v3, 15  ;;  %v4044_v62 = vcombine.low %v4670_v46, %v4896_v48  ;;  %v5000_v11 = vsel %vm1944_vm10, 65537, %v4473_v2 }
  0x2d   : > { %v4059_v34 = vcombine.low %v4760_v10, %v4670_v46 }
  0x33   : > { %4250 = vmatmul.mubr.msk.bf16.gmra.mrb[12].mxu0 %vm6416_vm1, %v4394_v12  ;;  %v1218_v12 = vand.u32 15, %v1094_v59 }
  0x34   : > { %4253 = vmatprep.mubr.msk.bf16.mxu0 %vm6416_vm1, %v4395_v13  ;;  %v4042_v13 = vcombine.low %v4670_v46, %v4727_v0 }
  0x35   : > { %vm4824_vm14 = vcmp.eq.s32.totalorder %v1218_v12, 0 }
  0x36   : > { %vm6467_vm6 = vmpackc.low %vm4824_vm14, %vm4824_vm14 }
  0x37   : > { %v4957_v59 = vsel %vm6467_vm6, 65537, %v4473_v2 }
  0x3b   : > { %4254 = vmatmul.mubr.msk.bf16.gmra.mrb[16].mxu0 %vm6416_vm1, %v4396_v14  ;;  %v4048_v14 = vcombine.low %v4670_v46, %v4941_v57 }
  0x3c   : > { %4257 = vmatprep.mubr.msk.bf16.mxu0 %vm6416_vm1, %v4397_v15  ;;  %v1239_v15 = vand.u32 15, %v1097_v63 }
  0x3e   : > { %vm4837_vm11 = vcmp.eq.s32.totalorder %v1239_v15, 15 }
  0x3f   : > { %vm1673_vm5 = vmpackc.low %vm4837_vm11, %vm4837_vm11  ;;  %vm5005_vm11 = vcmp.eq.s32.totalorder %v1274_v51, 0 }
  0x40   : > { %v4971_v63 = vsel %vm1673_vm5, 65537, %v4473_v2  ;;  %vm5052_vm5 = vcmp.eq.s32.totalorder %v1067_v9, 1 }
  0x43   : > { %4258 = vmatmul.mubr.msk.bf16.gmra.mrb[20].mxu0 %vm6416_vm1, %v4398_v16  ;;  %v1099_v16 = vadd.s32 152, %v4633_v22 }
  0x44   : > { %4261 = vmatprep.mubr.msk.bf16.mxu0 %vm6416_vm1, %v4399_v17  ;;  %v4043_v17 = vcombine.low %v4670_v46, %v4743_v5 }
  0x45   : > { %v1253_v32 = vand.u32 15, %v1099_v16  ;;  %v4066_v16 = vcombine.low %v4957_v59, %v4670_v46 }
  0x46   : > { %vm5076_vm6 = vcmp.ne.s16.totalorder %v4043_v17, 0 }
  0x47   : > { %vm4901_vm2 = vcmp.eq.s32.totalorder %v1253_v32, 15 }
  0x48   : > { %vm1675_vm7 = vmpackc.low %vm4901_vm2, %vm4901_vm2 }
  0x49   : > { %v5030_v24 = vsel %vm1675_vm7, 65537, %v4473_v2  ;;  %vm1948_vm2 = vmpackc.low %vm5005_vm11, %vm5005_vm11 }
  0x4a   : > { %v5081_v55 = vsel %vm1948_vm2, 65537, %v4473_v2  ;;  %vm5128_vm2 = vcmp.ne.s16.totalorder %v4063_v42, 0 }
  0x4b   : > { %4262 = vmatmul.mubr.msk.bf16.gmra.mrb[24].mxu0 %vm6416_vm1, %v4400_v18 }
  0x4c   : > { %4265 = vmatprep.mubr.msk.bf16.mxu0 %vm6416_vm1, %v4401_v19  ;;  %v1232_v19 = vand.u32 15, %v1096_v4 }
  0x4e   : > { %vm4858_vm3 = vcmp.eq.s32.totalorder %v1232_v19, 0 }
  0x4f   : > { %vm1942_vm4 = vmpackc.low %vm4858_vm3, %vm4858_vm3 }
  0x50   : > { %v4974_v1 = vsel %vm1942_vm4, 65537, %v4473_v2 }
  0x53   : > { %4266 = vmatmul.mubr.msk.bf16.gmra.mrb[28].mxu0 %vm6416_vm1, %v4402_v20  ;;  %v1101_v20 = vadd.s32 168, %v4633_v22  ;;  %vm1667_vm1 = vmpackc.low %vm4765_vm9, %vm4765_vm9  ;;  %vm4959_vm9 = vcmp.eq.s32.totalorder %v1260_v41, 0 }
  0x54   : > { %v4911_v52 = vsel %vm1667_vm1, 65537, %v4473_v2  ;;  %vm6466_vm1 = vmpackc.low %vm4784_vm12, %vm4784_vm12  ;;  %vm4979_vm12 = vcmp.eq.s32.totalorder %v1281_v45, 15 }
  0x55   : > { %v1267_v37 = vand.u32 15, %v1101_v20  ;;  %v4949_v58 = vsel %vm6466_vm1, 65537, %v4473_v2  ;;  %v4046_v7 = vcombine.low %v4670_v46, %v4911_v52  ;;  %vm1946_vm15 = vmpackc.low %vm4959_vm9, %vm4959_vm9  ;;  %v4049_v20 = vcombine.low %v4670_v46, %v4971_v63 }
  0x56   : > { %v4047_v15 = vcombine.low %v4670_v46, %v4949_v58  ;;  %vm1679_vm4 = vmpackc.low %vm4979_vm12, %vm4979_vm12  ;;  %v5062_v40 = vsel %vm1946_vm15, 65537, %v4473_v2  ;;  %vm5069_vm1 = vcmp.ne.s16.totalorder %v4042_v13, 0  ;;  %vm5102_vm9 = vcmp.ne.s16.totalorder %v4059_v34, 0 }
  0x57   : > { %vm4926_vm3 = vcmp.eq.s32.totalorder %v1267_v37, 15  ;;  %v5089_v0 = vsel %vm1679_vm4, 65537, %v4473_v2  ;;  %v4069_v17 = vcombine.low %v5062_v40, %v4670_v46  ;;  %vm5117_vm12 = vcmp.ne.s16.totalorder %v4062_v38, 0 }
  0x58   : > { %vm1677_vm14 = vmpackc.low %vm4926_vm3, %vm4926_vm3  ;;  %v6512_v58 = vcombine.low %v4974_v1, %v4670_v46 }
  0x59   : > { %v5044_v32 = vsel %vm1677_vm14, 65537, %v4473_v2 }
  0x5a   : > { %v4051_v5 = vcombine.low %v4670_v46, %v5044_v32 }
  0xee   : > { %v4239_v4 = vpop.f32.mrb[0].mxu0 }
  0xef   : > { %v721_v60 = vadd.f32 %v4239_v4, %v4933_v56  ;;  %v712_v12 = vpop.f32.mrb[1].mxu0 }
  0xf0   : > { %v713_v18 = vadd.f32 %v4933_v56, %v712_v12  ;;  %v4240_v19 = vpop.f32.mrb[2].mxu0 }
  0xf1   : > { %v873_v25 = vmul.f32 0.01, %v721_v60  ;;  %v724_v28 = vadd.f32 %v4240_v19, %v4933_v56  ;;  %v715_v29 = vpop.f32.mrb[3].mxu0  ;;  %vm841_vm13 = vcmp.ge.f32.partialorder %v721_v60, 0.0 }
  0xf2   : > { %v871_v33 = vmul.f32 0.01, %v713_v18  ;;  %v716_v36 = vadd.f32 %v4933_v56, %v715_v29  ;;  %vm839_vm0 = vcmp.ge.f32.partialorder %v713_v18, 0.0  ;;  %v995_v4 = vpop.f32.mrb[0].mxu1 }
  0xf3   : > { %vm842_vm10 = vcmp.ge.f32.partialorder %v724_v28, 0.0  ;;  %v874_v41 = vmul.f32 0.01, %v724_v28  ;;  %v905_v13 = vsel %vm841_vm13, %v721_v60, %v873_v25  ;;  %v996_v19 = vadd.f32 %v4933_v56, %v995_v4  ;;  %v4273_v45 = vpop.f32.mrb[1].mxu1 }
  0xf4   : > { %vm840_vm3 = vcmp.ge.f32.partialorder %v716_v36, 0.0  ;;  %v872_v49 = vmul.f32 0.01, %v716_v36  ;;  %v903_v50 = vsel %vm839_vm0, %v713_v18, %v871_v33  ;;  %v998_v23 = vpop.f32.mrb[2].mxu1  ;;  %vm2236_vm13 = vsmask.f32 7424 }
  0xf5   : > { %v906_v61 = vsel %vm842_vm10, %v724_v28, %v874_v41  ;;  %vm1002_vm7 = vcmp.ge.f32.partialorder %v996_v19, 0.0  ;;  %v999_v41 = vadd.f32 %v4933_v56, %v998_v23  ;;  %v4274_v34 = vpop.f32.mrb[3].mxu1  ;;  %vm2088_vm0 = vsmask.f32 256  ;;  %v4405_v45 = vld [vmem:[%s6411_s5 + $0x8] sm:$0xff]  }
  0xf6   : > { %v936_v12 = vpack.c.bf16 %v906_v61, %v905_v13  ;;  %v904_v29 = vsel %vm840_vm3, %v716_v36, %v872_v49  ;;  %v4243_v31 = vpop.f32.mrb[4].mxu0  ;;  %v1004_v36 = vmul.f32 0.01, %v996_v19  ;;  %3018 = vmatpush1.bf16.msra.mxu0 %v4405_v45  ;;  %4327 = vmatpush1.bf16.msra.mxu1 %v4405_v45 }
  0xf7   : > { %v5096_v3 = vpack.c.bf16 %v904_v29, %v903_v50  ;;  %v737_v60 = vadd.f32 %v4243_v31, %v4933_v56  ;;  %v728_v25 = vpop.f32.mrb[5].mxu0  ;;  %vm1003_vm11 = vcmp.ge.f32.partialorder %v999_v41, 0.0  ;;  %v1005_v50 = vmul.f32 0.01, %v999_v41  ;;  %3019 = vmatprep.subr.bf16.mxu0 %v4473_v2  ;;  %4319 = vmatprep.subr.bf16.mxu1 %v4473_v2 }
  0xf8   : > { %v729_v31 = vadd.f32 %v4933_v56, %v728_v25  ;;  %2594 = vrot.lane.b32.xlu1 %v936_v12, %s4474_s20  ;;  %2404 = vrot.lane.b32.xlu0 %v936_v12, %s4475_s21  ;;  %v4244_v10 = vpop.f32.mrb[6].mxu0  ;;  %v2072_v61 = vsel %vm4986_vm8, 0, %v936_v12  ;;  %v1006_v4 = vsel %vm1002_vm7, %v996_v19, %v1004_v36  ;;  %v5152_v37 = vsel %vm5076_vm6, 0, %v936_v12 }
  0xf9   : > { %vm845_vm14 = vcmp.ge.f32.partialorder %v737_v60, 0.0  ;;  %v877_v49 = vmul.f32 0.01, %v737_v60  ;;  %v740_v23 = vadd.f32 %v4244_v10, %v4933_v56  ;;  %v731_v13 = vpop.f32.mrb[7].mxu0  ;;  %v1007_v10 = vsel %vm1003_vm11, %v999_v41, %v1005_v50 }
  0xfa   : > { %vm843_vm15 = vcmp.ge.f32.partialorder %v729_v31, 0.0  ;;  %v875_v25 = vmul.f32 0.01, %v729_v31  ;;  %v732_v6 = vadd.f32 %v4933_v56, %v731_v13  ;;  %v2253_v19 = vshll.u32 %v2072_v61, 16 }
  0xfb   : > { %v909_v29 = vsel %vm845_vm14, %v737_v60, %v877_v49  ;;  %vm846_vm4 = vcmp.ge.f32.partialorder %v740_v23, 0.0  ;;  %v878_v21 = vmul.f32 0.01, %v740_v23  ;;  %v2257_v36 = vshrl.u32 %v2072_v61, 16 }
  0xfc   : > { %2499 = vrot.lane.b32.xlu1 %v936_v12, %s4476_s23  ;;  %v907_v34 = vsel %vm843_vm15, %v729_v31, %v875_v25  ;;  %v1069_v49 = vsel %vm5052_vm5, 0.0, %v1006_v4  ;;  %v1070_v26 = vsel %vm5052_vm5, 0.0, %v1007_v10  ;;  %vm844_vm8 = vcmp.ge.f32.partialorder %v732_v6, 0.0 }
  0xfd   : > { %v910_v60 = vsel %vm846_vm4, %v740_v23, %v878_v21  ;;  %v876_v18 = vmul.f32 0.01, %v732_v6  ;;  %v5140_v50 = vrot.slane %v2253_v19, 1  ;;  %v5143_v61 = vpack.c.bf16 %v1070_v26, %v1069_v49 }
  0xfe   : > { %v5138_v42 = vpack.c.bf16 %v910_v60, %v909_v29  ;;  %v4247_v41 = vpop.f32.mrb[8].mxu0  ;;  %v5148_v31 = vsel %vm5069_vm1, 0, %v5096_v3  ;;  %vm5157_vm5 = vcmp.ne.s16.totalorder %v4064_v47, 0  ;;  %vm5183_vm1 = vcmp.ne.s16.totalorder %v4041_v43, 0 }
  0xff   : > { %v753_v13 = vadd.f32 %v4247_v41, %v4933_v56  ;;  %v744_v33 = vpop.f32.mrb[9].mxu0  ;;  %v908_v4 = vsel %vm844_vm8, %v732_v6, %v876_v18  ;;  %v2259_v51 = vor.u32 %v2257_v36, %v5140_v50  ;;  %v2097_v12 = vshrl.u32 %v5148_v31, 16 }
 0x100   : > { %v745_v29 = vadd.f32 %v4933_v56, %v744_v33  ;;  %2598 = vrot.lane.b32.xlu0 %v5138_v42, %s4474_s20  ;;  %v4248_v9 = vpop.f32.mrb[10].mxu0  ;;  %2497 = vrot.lane.b32.xlu1 %v5096_v3, %s4476_s23  ;;  %v5171_v47 = vpack.c.bf16 %v908_v4, %v907_v34  ;;  %v5178_v6 = vsel %vm5102_vm9, 0, %v5143_v61  ;;  %v2105_v41 = vshrl.u32 %v5152_v37, 16 }
 0x101   : > { %vm849_vm10 = vcmp.ge.f32.partialorder %v753_v13, 0.0  ;;  %v881_v18 = vmul.f32 0.01, %v753_v13  ;;  %v756_v33 = vadd.f32 %v4248_v9, %v4933_v56  ;;  %v747_v25 = vpop.f32.mrb[11].mxu0  ;;  %v5202_v26 = vrot.slane %v2097_v12, 7 }
 0x102   : > { %vm847_vm3 = vcmp.ge.f32.partialorder %v745_v29, 0.0  ;;  %v879_v21 = vmul.f32 0.01, %v745_v29  ;;  %v748_v10 = vadd.f32 %v4933_v56, %v747_v25  ;;  %v5190_v60 = vsel %vm5117_vm12, 0, %v5171_v47 }
 0x103   : > { %v913_v36 = vsel %vm849_vm10, %v753_v13, %v881_v18  ;;  %vm850_vm6 = vcmp.ge.f32.partialorder %v756_v33, 0.0  ;;  %v882_v34 = vmul.f32 0.01, %v756_v33  ;;  %v2261_v43 = vshll.u32 %v5190_v60, 16 }
 0x104   : > { %v911_v28 = vsel %vm847_vm3, %v745_v29, %v879_v21  ;;  %vm848_vm9 = vcmp.ge.f32.partialorder %v748_v10, 0.0  ;;  %v880_v27 = vmul.f32 0.01, %v748_v10  ;;  %2503 = vrot.lane.b32.xlu0 %v5138_v42, %s4476_s23  ;;  %2402 = vrot.lane.b32.xlu1 %v5096_v3, %s4475_s21  ;;  %v2108_v13 = vshll.u32 %v5152_v37, 16 }
 0x105   : > { %v914_v49 = vsel %vm850_vm6, %v756_v33, %v882_v34  ;;  %vm5209_vm7 = vcmp.ne.s16.totalorder %v4060_v44, 0  ;;  %v2263_v18 = vrot.slane %v2261_v43, 1  ;;  %v2074_v12 = vsel %vm5128_vm2, 0, %v5138_v42 }
 0x106   : > { %v5213_v29 = vpack.c.bf16 %v914_v49, %v913_v36  ;;  %v912_v9 = vsel %vm848_vm9, %v748_v10, %v880_v27  ;;  %v4251_v35 = vpop.f32.mrb[12].mxu0  ;;  %v5221_v44 = vrot.slane %v2105_v41, 7  ;;  %v2269_v25 = vshll.u32 %v2074_v12, 16 }
 0x107   : > { %v5218_v33 = vpack.c.bf16 %v912_v9, %v911_v28  ;;  %v769_v37 = vadd.f32 %v4251_v35, %v4933_v56  ;;  %v760_v30 = vpop.f32.mrb[13].mxu0  ;;  %v5227_v10 = vsel %vm2236_vm13, %v2259_v51, %v2263_v18  ;;  %v2273_v36 = vshrl.u32 %v2074_v12, 16  ;;  %v4406_v28 = vld [vmem:[%s6411_s5 + $0x10] sm:$0xff]  }
 0x108   : > { %v761_v21 = vadd.f32 %v4933_v56, %v760_v30  ;;  %2408 = vrot.lane.b32.xlu0 %v5138_v42, %s4475_s21  ;;  %v4252_v38 = vpop.f32.mrb[14].mxu0  ;;  %2400 = vrot.lane.b32.xlu1 %v5143_v61, %s4475_s21  ;;  %v2265_v34 = vshrl.u32 %v5190_v60, 16  ;;  %vm6494_vm14 = vcmask 130048   ;;  %v2110_v45 = vor.u32 %v2108_v13, %v5221_v44  ;;  %v4407_v30 = vld [vmem:[%s6411_s5 + $0x18] sm:$0xff]  }
 0x109   : > { %vm853_vm12 = vcmp.ge.f32.partialorder %v769_v37, 0.0  ;;  %v885_v27 = vmul.f32 0.01, %v769_v37  ;;  %4087 = vmatprep.mubr.msk.bf16.mxu0 %vm6494_vm14, %v5227_v10  ;;  %v772_v51 = vadd.f32 %v4252_v38, %v4933_v56  ;;  %v763_v43 = vpop.f32.mrb[15].mxu0  ;;  %v5245_v60 = vsel %vm5157_vm5, 0, %v5218_v33  ;;  %3020 = vmatpush1.bf16.msra.mxu0 %v4406_v28 }
 0x10a   : > { %vm851_vm11 = vcmp.ge.f32.partialorder %v761_v21, 0.0  ;;  %v883_v49 = vmul.f32 0.01, %v761_v21  ;;  %v764_v41 = vadd.f32 %v4933_v56, %v763_v43  ;;  %4328 = vmatpush1.bf16.msra.mxu1 %v4406_v28  ;;  %v5249_v12 = vsel %vm2088_vm0, %v5202_v26, %v2110_v45  ;;  %3021 = vmatprep.subr.bf16.mxu0 %v4473_v2 }
 0x10b   : > { %v917_v9 = vsel %vm853_vm12, %v769_v37, %v885_v27  ;;  %vm854_vm15 = vcmp.ge.f32.partialorder %v772_v51, 0.0  ;;  %v886_v35 = vmul.f32 0.01, %v772_v51  ;;  %vm5254_vm4 = vcmp.ne.s16.totalorder %v4045_v53, 0  ;;  %4320 = vmatprep.subr.bf16.mxu1 %v4473_v2 }
 0x10c   : > { %v915_v23 = vsel %vm851_vm11, %v761_v21, %v883_v49  ;;  %vm852_vm2 = vcmp.ge.f32.partialorder %v764_v41, 0.0  ;;  %v884_v37 = vmul.f32 0.01, %v764_v41  ;;  %2436 = vrot.lane.b32.xlu0 %v5227_v10, %s4477_s22  ;;  %2561 = vrot.lane.b32.xlu1 %v5249_v12, %s4478_s29  ;;  %v2271_v39 = vrot.slane %v2269_v25, 1 }
 0x10d   : > { %vm5267_vm8 = vcmp.ne.s16.totalorder %v4046_v7, 0  ;;  %v918_v21 = vsel %vm854_vm15, %v772_v51, %v886_v35  ;;  %v2277_v38 = vshll.u32 %v5245_v60, 16  ;;  %v2267_v28 = vor.u32 %v2265_v34, %v2263_v18  ;;  %3022 = vmatpush1.bf16.msra.mxu0 %v4407_v30 }
 0x10e   : > { %v5279_v25 = vsel %vm5183_vm1, 0, %v5143_v61  ;;  %vm5284_vm5 = vcmp.ne.s16.totalorder %v4044_v62, 0  ;;  %v5288_v7 = vpack.c.bf16 %v918_v21, %v917_v9  ;;  %v916_v27 = vsel %vm852_vm2, %v764_v41, %v884_v37  ;;  %v4255_v51 = vpop.f32.mrb[16].mxu0  ;;  %4329 = vmatpush1.bf16.msra.mxu1 %v4407_v30  ;;  %3023 = vmatprep.subr.bf16.mxu0 %v4473_v2  ;;  %vm6503_vm1 = vmmov %vm6494_vm14 }
 0x10f   : > { %v2275_v43 = vor.u32 %v2273_v36, %v2271_v39  ;;  %v2090_v45 = vshrl.u32 %v5279_v25, 16  ;;  %v5291_v18 = vpack.c.bf16 %v916_v27, %v915_v23  ;;  %v5293_v61 = vrot.slane %v2277_v38, 1  ;;  %v776_v48 = vpop.f32.mrb[17].mxu0  ;;  %4321 = vmatprep.subr.bf16.mxu1 %v4473_v2  ;;  %v4408_v23 = vld [vmem:[%s6411_s5 + $0x20] sm:$0xff]  }
 0x110   : > { %v785_v19 = vadd.f32 %v4255_v51, %v4933_v56  ;;  %v5297_v62 = vsel %vm2236_vm13, %v2267_v28, %v2271_v39  ;;  %2602 = vrot.lane.b32.xlu0 %v5213_v29, %s4474_s20  ;;  %2466 = vrot.lane.b32.xlu1 %v5249_v12, %s4479_s24  ;;  %v777_v36 = vadd.f32 %v4933_v56, %v776_v48  ;;  %v4256_v34 = vpop.f32.mrb[18].mxu0  ;;  %v2100_v41 = vshll.u32 %v5148_v31, 16  ;;  %v4409_v51 = vld [vmem:[%s6411_s5 + $0x28] sm:$0xff]  }
 0x111   : > { %v5306_v49 = vrot.slane %v2090_v45, 7  ;;  %v2071_v9 = vsel %vm5209_vm7, 0, %v5096_v3  ;;  %vm5315_vm10 = vcmp.ne.s16.totalorder %v4065_v8, 0  ;;  %v5324_v37 = vsel %vm2236_vm13, %v2275_v43, %v5293_v61  ;;  %v779_v3 = vpop.f32.mrb[19].mxu0  ;;  %3024 = vmatpush1.bf16.msra.mxu0 %v4408_v23 }
 0x112   : > { %vm857_vm3 = vcmp.ge.f32.partialorder %v785_v19, 0.0  ;;  %v889_v31 = vmul.f32 0.01, %v785_v19  ;;  %v788_v4 = vadd.f32 %v4256_v34, %v4933_v56  ;;  %4089 = vmatprep.mubr.msk.bf16.mxu1 %vm6503_vm1, %v5324_v37  ;;  %vm855_vm6 = vcmp.ge.f32.partialorder %v777_v36, 0.0  ;;  %3025 = vmatprep.subr.bf16.mxu0 %v4473_v2 }
 0x113   : > { %v887_v54 = vmul.f32 0.01, %v777_v36  ;;  %v780_v8 = vadd.f32 %v4933_v56, %v779_v3  ;;  %v2102_v39 = vor.u32 %v2100_v41, %v5202_v26  ;;  %v2245_v38 = vshll.u32 %v2071_v9, 16  ;;  %4330 = vmatpush1.bf16.msra.mxu1 %v4408_v23 }
 0x114   : > { %v921_v30 = vsel %vm857_vm3, %v785_v19, %v889_v31  ;;  %vm858_vm9 = vcmp.ge.f32.partialorder %v788_v4, 0.0  ;;  %v890_v21 = vmul.f32 0.01, %v788_v4  ;;  %2507 = vrot.lane.b32.xlu0 %v5213_v29, %s4476_s23  ;;  %2501 = vrot.lane.b32.xlu1 %v5171_v47, %s4476_s23  ;;  %vm5343_vm12 = vcmp.ne.s16.totalorder %v4048_v14, 0 }
 0x115   : > { %v919_v28 = vsel %vm855_vm6, %v777_v36, %v887_v54  ;;  %vm856_vm7 = vcmp.ge.f32.partialorder %v780_v8, 0.0  ;;  %v888_v27 = vmul.f32 0.01, %v780_v8  ;;  %v5338_v26 = vsel %vm2088_vm0, %v5306_v49, %v2102_v39  ;;  %4322 = vmatprep.subr.bf16.mxu1 %v4473_v2  ;;  %3026 = vmatpush1.bf16.msra.mxu0 %v4409_v51 }
 0x116   : > { %v922_v45 = vsel %vm858_vm9, %v788_v4, %v890_v21  ;;  %v2247_v19 = vrot.slane %v2245_v38, 1  ;;  %v2249_v48 = vshrl.u32 %v2071_v9, 16  ;;  %v2238_v36 = vshrl.u32 %v5178_v6, 16  ;;  %v4259_v23 = vpop.f32.mrb[20].mxu0  ;;  %3027 = vmatprep.subr.bf16.mxu0 %v4473_v2 }
 0x117   : > { %vm5354_vm14 = vcmp.ne.s16.totalorder %v4049_v20, 0  ;;  %v5359_v57 = vpack.c.bf16 %v922_v45, %v921_v30  ;;  %v920_v14 = vsel %vm856_vm7, %v780_v8, %v888_v27  ;;  %v2240_v41 = vshll.u32 %v5178_v6, 16  ;;  %v792_v3 = vpop.f32.mrb[21].mxu0  ;;  %4331 = vmatpush1.bf16.msra.mxu1 %v4409_v51  ;;  %v4410_v8 = vld [vmem:[%s6411_s5 + $0x30] sm:$0xff]  }
 0x118   : > { %v1804_v9 = vsel %vm5254_vm4, 0, %v5138_v42  ;;  %v5365_v31 = vpack.c.bf16 %v920_v14, %v919_v28  ;;  %v2251_v63 = vor.u32 %v2249_v48, %v2247_v19  ;;  %v1805_v20 = vsel %vm5267_vm8, 0, %v5218_v33  ;;  %2412 = vrot.lane.b32.xlu0 %v5213_v29, %s4475_s21  ;;  %2406 = vrot.lane.b32.xlu1 %v5171_v47, %s4475_s21  ;;  %v4260_v53 = vpop.f32.mrb[22].mxu0 }
 0x119   : > { %v2121_v4 = vshrl.u32 %v1804_v9, 16  ;;  %v2242_v42 = vrot.slane %v2240_v41, 1  ;;  %v2129_v6 = vshrl.u32 %v1805_v20, 16  ;;  %v2132_v13 = vshll.u32 %v1805_v20, 16  ;;  %v795_v28 = vpop.f32.mrb[23].mxu0  ;;  %4323 = vmatprep.subr.bf16.mxu1 %v4473_v2  ;;  %3028 = vmatpush1.bf16.msra.mxu0 %v4410_v8 }
 0x11a   : > { %v1803_v54 = vsel %vm5284_vm5, 0, %v5171_v47  ;;  %v5383_v39 = vsel %vm2236_vm13, %v2251_v63, %v5140_v50  ;;  %v2124_v38 = vshll.u32 %v1804_v9, 16  ;;  %vm5388_vm11 = vcmp.ne.s16.totalorder %v4047_v15, 0  ;;  %3029 = vmatprep.subr.bf16.mxu0 %v4473_v2 }
 0x11b   : > { %v2123_v30 = vrot.slane %v2121_v4, 7  ;;  %v2113_v21 = vshrl.u32 %v1803_v54, 16  ;;  %v2243_v52 = vor.u32 %v2242_v42, %v2238_v36  ;;  %v5393_v51 = vrot.slane %v2129_v6, 7  ;;  %4332 = vmatpush1.bf16.msra.mxu1 %v4410_v8 }
 0x11c   : > { %v801_v45 = vadd.f32 %v4259_v23, %v4933_v56  ;;  %v793_v50 = vadd.f32 %v4933_v56, %v792_v3  ;;  %vm5400_vm15 = vcmp.ne.s16.totalorder %v4066_v16, 0  ;;  %vm5407_vm4 = vcmp.ne.s16.totalorder %v6512_v58, 0  ;;  %2533 = vrot.lane.b32.xlu0 %v5297_v62, %s4480_s18  ;;  %2464 = vrot.lane.b32.xlu1 %v5338_v26, %s4479_s24 }
 0x11d   : > { %v2115_v36 = vrot.slane %v2113_v21, 7  ;;  %v2126_v14 = vor.u32 %v2124_v38, %v2123_v30  ;;  %v5414_v41 = vsel %vm5315_vm10, 0, %v5213_v29  ;;  %v2281_v59 = vshrl.u32 %v5245_v60, 16  ;;  %v4411_v60 = vld [vmem:[%s6411_s5 + $0x38] sm:$0xff]   ;;  %4324 = vmatprep.subr.bf16.mxu1 %v4473_v2 }
 0x11e   : > { %v5423_v1 = vsel %vm2236_vm13, %v2243_v52, %v2247_v19  ;;  %v2134_v16 = vor.u32 %v2132_v13, %v5393_v51  ;;  %vm861_vm2 = vcmp.ge.f32.partialorder %v801_v45, 0.0  ;;  %v893_v35 = vmul.f32 0.01, %v801_v45  ;;  %v4263_v42 = vpop.f32.mrb[24].mxu0  ;;  %3030 = vmatpush1.bf16.msra.mxu0 %v4411_v60 }
 0x11f   : > { %v5430_v9 = vsel %vm2088_vm0, %v2115_v36, %v2126_v14  ;;  %vm859_vm8 = vcmp.ge.f32.partialorder %v793_v50, 0.0  ;;  %v891_v23 = vmul.f32 0.01, %v793_v50  ;;  %v2283_v63 = vor.u32 %v2281_v59, %v5293_v61  ;;  %v808_v21 = vpop.f32.mrb[25].mxu0  ;;  %3031 = vmatprep.subr.bf16.mxu0 %v4473_v2  ;;  %4333 = vmatpush1.bf16.msra.mxu1 %v4411_v60 }
 0x120   : > { %v5435_v19 = vsel %vm2088_vm0, %v2123_v30, %v2134_v16  ;;  %v925_v20 = vsel %vm861_vm2, %v801_v45, %v893_v35  ;;  %v2285_v4 = vshll.u32 %v5414_v41, 16  ;;  %v804_v3 = vadd.f32 %v4260_v53, %v4933_v56  ;;  %2438 = vrot.lane.b32.xlu0 %v5297_v62, %s4477_s22  ;;  %2529 = vrot.lane.b32.xlu1 %v5383_v39, %s4480_s18  ;;  %v4264_v43 = vpop.f32.mrb[26].mxu0  ;;  %v4412_v35 = vld [vmem:[%s6411_s5 + $0x40] sm:$0xff]  }
 0x121   : > { %v923_v6 = vsel %vm859_vm8, %v793_v50, %v891_v23  ;;  %v796_v13 = vadd.f32 %v4933_v56, %v795_v28  ;;  %v2116_v8 = vshll.u32 %v1803_v54, 16  ;;  %v1807_v61 = vsel %vm5343_vm12, 0, %v5291_v18  ;;  %v5453_v45 = vpop.f32.mrb[27].mxu0  ;;  %4325 = vmatprep.subr.bf16.mxu1 %v4473_v2 }
 0x122   : > { %v5448_v53 = vrot.slane %v2285_v4, 1  ;;  %vm862_vm5 = vcmp.ge.f32.partialorder %v804_v3, 0.0  ;;  %v894_v30 = vmul.f32 0.01, %v804_v3  ;;  %v1808_v54 = vsel %vm5354_vm14, 0, %v5288_v7  ;;  %3032 = vmatpush1.bf16.msra.mxu0 %v4412_v35 }
 0x123   : > { %vm860_vm10 = vcmp.ge.f32.partialorder %v796_v13, 0.0  ;;  %v892_v38 = vmul.f32 0.01, %v796_v13  ;;  %v2118_v28 = vor.u32 %v2116_v8, %v2115_v36  ;;  %v2145_v52 = vshrl.u32 %v1807_v61, 16  ;;  %v5467_v36 = vpop.f32.mrb[4].mxu1  ;;  %4334 = vmatpush1.bf16.msra.mxu1 %v4412_v35 }
 0x124   : > { %v6515_v50 = vcombine.low %v5000_v11, %v4670_v46  ;;  %v5465_v34 = vsel %vm2236_vm13, %v2283_v63, %v5448_v53  ;;  %v926_v14 = vsel %vm862_vm5, %v804_v3, %v894_v30  ;;  %v2153_v59 = vshrl.u32 %v1808_v54, 16  ;;  %2606 = vrot.lane.b32.xlu0 %v5288_v7, %s4474_s20  ;;  %2434 = vrot.lane.b32.xlu1 %v5383_v39, %s4477_s22 }
 0x125   : > { %v2156_v16 = vshll.u32 %v1808_v54, 16  ;;  %v5472_v11 = vpack.c.bf16 %v926_v14, %v925_v20  ;;  %v924_v60 = vsel %vm860_vm10, %v796_v13, %v892_v38  ;;  %v5476_v23 = vsel %vm2088_vm0, %v5221_v44, %v2118_v28  ;;  %v4279_v20 = vpop.f32.mrb[5].mxu1 }
 0x126   : > { %vm5458_vm3 = vcmp.ne.s16.totalorder %v6515_v50, 0  ;;  %v2147_v4 = vrot.slane %v2145_v52, 7  ;;  %v6518_v63 = vcombine.low %v4670_v46, %v5030_v24  ;;  %vm5488_vm6 = vcmp.ne.s16.totalorder %v4051_v5, 0  ;;  %v5503_v5 = vpop.f32.mrb[6].mxu1  ;;  %v4267_v52 = vpop.f32.mrb[28].mxu0 }
 0x127   : > { %v5496_v44 = vpack.c.bf16 %v924_v60, %v923_v6  ;;  %v5498_v24 = vrot.slane %v2153_v59, 7  ;;  %v1806_v13 = vsel %vm5388_vm11, 0, %v5213_v29  ;;  %v2148_v32 = vshll.u32 %v1807_v61, 16  ;;  %v4280_v6 = vpop.f32.mrb[7].mxu1  ;;  %v824_v60 = vpop.f32.mrb[29].mxu0 }
 0x128   : > { %vm5481_vm1 = vcmp.ne.s16.totalorder %v6518_v63, 0  ;;  %v2137_v30 = vshrl.u32 %v1806_v13, 16  ;;  %v2140_v54 = vshll.u32 %v1806_v13, 16  ;;  %v2077_v38 = vsel %vm5400_vm15, 0, %v5291_v18  ;;  %2511 = vrot.lane.b32.xlu0 %v5288_v7, %s4476_s23  ;;  %2596 = vrot.lane.b32.xlu1 %v5171_v47, %s4474_s20  ;;  %v4268_v20 = vpop.f32.mrb[30].mxu0 }
 0x129   : > { %v2078_v39 = vsel %vm5407_vm4, 0, %v5288_v7  ;;  %v2158_v28 = vor.u32 %v2156_v16, %v5498_v24  ;;  %v2150_v27 = vor.u32 %v2148_v32, %v2147_v4  ;;  %v2293_v29 = vshll.u32 %v2077_v38, 16  ;;  %v827_v32 = vpop.f32.mrb[31].mxu0 }
 0x12a   : > { %v2297_v61 = vshrl.u32 %v2077_v38, 16  ;;  %v2139_v50 = vrot.slane %v2137_v30, 7  ;;  %v2301_v14 = vshll.u32 %v2078_v39, 16  ;;  %v817_v59 = vadd.f32 %v4263_v42, %v4933_v56 }
 0x12b   : > { %v809_v48 = vadd.f32 %v4933_v56, %v808_v21  ;;  %v5519_v15 = vsel %vm2088_vm0, %v2147_v4, %v2158_v28  ;;  %v2295_v16 = vrot.slane %v2293_v29, 1  ;;  %v2289_v35 = vshrl.u32 %v5414_v41, 16 }
 0x12c   : > { %v820_v63 = vadd.f32 %v4264_v43, %v4933_v56  ;;  %v5524_v42 = vsel %vm2088_vm0, %v2139_v50, %v2150_v27  ;;  %v2142_v21 = vor.u32 %v2140_v54, %v2139_v50  ;;  %v2303_v13 = vrot.slane %v2301_v14, 1  ;;  %2416 = vrot.lane.b32.xlu0 %v5288_v7, %s4475_s21  ;;  %2432 = vrot.lane.b32.xlu1 %v5423_v1, %s4477_s22 }
 0x12d   : > { %vm865_vm9 = vcmp.ge.f32.partialorder %v817_v59, 0.0  ;;  %v2299_v30 = vor.u32 %v2297_v61, %v2295_v16  ;;  %v897_v38 = vmul.f32 0.01, %v817_v59  ;;  %vm863_vm7 = vcmp.ge.f32.partialorder %v809_v48, 0.0 }
 0x12e   : > { %v895_v47 = vmul.f32 0.01, %v809_v48  ;;  %v5528_v4 = vsel %vm2088_vm0, %v5393_v51, %v2142_v21  ;;  %v2291_v41 = vor.u32 %v2289_v35, %v5448_v53  ;;  %vm866_vm12 = vcmp.ge.f32.partialorder %v820_v63, 0.0 }
 0x12f   : > { %v898_v43 = vmul.f32 0.01, %v820_v63  ;;  %v5536_v54 = vsel %vm2236_vm13, %v2299_v30, %v2303_v13  ;;  %v929_v6 = vsel %vm865_vm9, %v817_v59, %v897_v38  ;;  %v5541_v51 = vsel %vm5458_vm3, 0, %v5365_v31 }
 0x130   : > { %v927_v28 = vsel %vm863_vm7, %v809_v48, %v895_v47  ;;  %vm5546_vm14 = vcmp.ne.s16.totalorder %v4069_v17, 0  ;;  %v5551_v7 = vsel %vm2236_vm13, %v2291_v41, %v2295_v16  ;;  %v812_v27 = vadd.f32 %v4933_v56, %v5453_v45  ;;  %2567 = vrot.lane.b32.xlu0 %v5435_v19, %s4478_s29  ;;  %2531 = vrot.lane.b32.xlu1 %v5227_v10, %s4480_s18 }
 0x131   : > { %v930_v1 = vsel %vm866_vm12, %v820_v63, %v898_v43  ;;  %v2305_v29 = vshrl.u32 %v2078_v39, 16  ;;  %v2309_v58 = vshll.u32 %v5541_v51, 16  ;;  %v1809_v40 = vsel %vm5481_vm1, 0, %v5365_v31 }
 0x132   : > { %v5555_v61 = vpack.c.bf16 %v930_v1, %v929_v6  ;;  %v1810_v17 = vsel %vm5488_vm6, 0, %v5359_v57  ;;  %vm864_vm11 = vcmp.ge.f32.partialorder %v812_v27, 0.0  ;;  %v896_v50 = vmul.f32 0.01, %v812_v27 }
 0x133   : > { %v2307_v14 = vor.u32 %v2305_v29, %v2303_v13  ;;  %v2161_v59 = vshrl.u32 %v1809_v40, 16  ;;  %v2311_v45 = vrot.slane %v2309_v58, 1  ;;  %v2169_v39 = vshrl.u32 %v1810_v17, 16 }
 0x134   : > { %v2172_v48 = vshll.u32 %v1810_v17, 16  ;;  %v2093_v3 = vshll.u32 %v5279_v25, 16  ;;  %v928_v16 = vsel %vm864_vm11, %v812_v27, %v896_v50  ;;  %v833_v8 = vadd.f32 %v4267_v52, %v4933_v56  ;;  %2472 = vrot.lane.b32.xlu0 %v5435_v19, %s4479_s24  ;;  %2565 = vrot.lane.b32.xlu1 %v5430_v9, %s4478_s29 }
 0x135   : > { %v2163_v35 = vrot.slane %v2161_v59, 7  ;;  %v6525_v63 = vcombine.low %v4670_v46, %v5089_v0  ;;  %v5577_v13 = vpack.c.bf16 %v928_v16, %v927_v28  ;;  %v5580_v10 = vsel %vm2236_vm13, %v2307_v14, %v2311_v45 }
 0x136   : > { %v5582_v30 = vrot.slane %v2169_v39, 7  ;;  %v5585_v25 = vor.u32 %v2093_v3, %v5306_v49  ;;  %vm869_vm4 = vcmp.ge.f32.partialorder %v833_v8, 0.0  ;;  %v901_v52 = vmul.f32 0.01, %v833_v8 }
 0x137   : > { %vm5573_vm15 = vcmp.ne.s16.totalorder %v6525_v63, 0  ;;  %v825_v38 = vadd.f32 %v4933_v56, %v824_v60  ;;  %v2164_v0 = vshll.u32 %v1809_v40, 16  ;;  %v836_v41 = vadd.f32 %v4268_v20, %v4933_v56 }
 0x138   : > { %v2174_v47 = vor.u32 %v2172_v48, %v5582_v30  ;;  %v828_v43 = vadd.f32 %v4933_v56, %v827_v32  ;;  %v6528_v49 = vcombine.low %v5081_v55, %v4670_v46  ;;  %v933_v60 = vsel %vm869_vm4, %v833_v8, %v901_v52  ;;  %2537 = vrot.lane.b32.xlu0 %v5465_v34, %s4480_s18 }
 0x139   : > { %vm867_vm8 = vcmp.ge.f32.partialorder %v825_v38, 0.0  ;;  %v899_v28 = vmul.f32 0.01, %v825_v38  ;;  %v2166_v1 = vor.u32 %v2164_v0, %v2163_v35  ;;  %vm870_vm5 = vcmp.ge.f32.partialorder %v836_v41, 0.0  ;;  %2470 = vrot.lane.b32.xlu1 %v5430_v9, %s4479_s24 }
 0x13a   : > { %vm5598_vm2 = vcmp.ne.s16.totalorder %v6528_v49, 0  ;;  %v5604_v27 = vsel %vm2088_vm0, %v2163_v35, %v2174_v47  ;;  %v902_v29 = vmul.f32 0.01, %v836_v41  ;;  %vm868_vm10 = vcmp.ge.f32.partialorder %v828_v43, 0.0 }
 0x13b   : > { %6531 = vst [vmem:[#allocation2_spill] sm:$0xff] %v5604_v27  ;;  %v931_v20 = vsel %vm867_vm8, %v825_v38, %v899_v28  ;;  %v5608_v55 = vsel %vm2088_vm0, %v5498_v24, %v2166_v1  ;;  %v900_v32 = vmul.f32 0.01, %v828_v43  ;;  %v2080_v58 = vsel %vm5546_vm14, 0, %v5359_v57 }
 0x13c   : > { %6532 = vst [vmem:[#allocation3_spill] sm:$0xff] %v5608_v55  ;;  %v934_v40 = vsel %vm870_vm5, %v836_v41, %v902_v29  ;;  %v2081_v17 = vsel %vm5598_vm2, 0, %v5496_v44  ;;  %v2317_v50 = vshll.u32 %v2080_v58, 16  ;;  %v2321_v14 = vshrl.u32 %v2080_v58, 16  ;;  %2442 = vrot.lane.b32.xlu0 %v5465_v34, %s4477_s22 }
 0x13d   : > { %v5620_v24 = vpack.c.bf16 %v934_v40, %v933_v60  ;;  %v932_v59 = vsel %vm868_vm10, %v828_v43, %v900_v32  ;;  %v2325_v39 = vshll.u32 %v2081_v17, 16  ;;  %v2313_v53 = vshrl.u32 %v5541_v51, 16  ;;  %2468 = vrot.lane.b32.xlu1 %v5476_v23, %s4479_s24 }
 0x13e   : > { %v5625_v48 = vpack.c.bf16 %v932_v59, %v931_v20  ;;  %v2319_v3 = vrot.slane %v2317_v50, 1  ;;  %v1105_v16 = vadd.s32 200, %v4633_v22  ;;  %v1811_v35 = vsel %vm5573_vm15, 0, %v5496_v44 }
 0x13f   : > { %v2327_v8 = vrot.slane %v2325_v39, 1  ;;  %v2315_v63 = vor.u32 %v2313_v53, %v2311_v45  ;;  %v2177_v52 = vshrl.u32 %v1811_v35, 16  ;;  %v1053_v21 = vadd.f32 %v4933_v56, %v5467_v36 }
 0x140   : > { %v2323_v51 = vor.u32 %v2321_v14, %v2319_v3  ;;  %v1295_v38 = vand.u32 15, %v1105_v16  ;;  %v1074_v41 = vstv %s1073_s27  ;;  %v2180_v49 = vshll.u32 %v1811_v35, 16  ;;  %2414 = vrot.lane.b32.xlu0 %v5291_v18, %s4475_s21 }
 0x141   : > { %v5636_v0 = vsel %vm2236_vm13, %v2315_v63, %v2319_v3  ;;  %v5638_v47 = vrot.slane %v2177_v52, 7  ;;  %vm5645_vm1 = vcmp.eq.s32.totalorder %v1074_v41, 1  ;;  %vm1059_vm9 = vcmp.ge.f32.partialorder %v1053_v21, 0.0  ;;  %2600 = vrot.lane.b32.xlu1 %v5218_v33, %s4474_s20 }
 0x142   : > { %v5643_v45 = vsel %vm2236_vm13, %v2323_v51, %v2327_v8  ;;  %vm1573_vm3 = vcmp.eq.s32.totalorder %v1295_v38, 15  ;;  %v1061_v6 = vmul.f32 0.01, %v1053_v21  ;;  %v1056_v60 = vadd.f32 %v4933_v56, %v5503_v5 }
 0x143   : > { %vm1681_vm6 = vmpackc.low %vm1573_vm3, %vm1573_vm3  ;;  %v1104_v28 = vadd.s32 192, %v4633_v22  ;;  %v2182_v1 = vor.u32 %v2180_v49, %v5638_v47  ;;  %v1106_v29 = vadd.s32 208, %v4633_v22  ;;  %v2329_v59 = vshrl.u32 %v2081_v17, 16 }
 0x144   : > { %v1717_v36 = vsel %vm1681_vm6, 65537, %v4473_v2  ;;  %v1063_v32 = vsel %vm1059_vm9, %v1053_v21, %v1061_v6  ;;  %vm1060_vm7 = vcmp.ge.f32.partialorder %v1056_v60, 0.0  ;;  %v1062_v58 = vmul.f32 0.01, %v1056_v60  ;;  %2478 = vrot.lane.b32.xlu0 %v5519_v15, %s4479_s24 }
 0x145   : > { %v4053_v20 = vcombine.low %v4670_v46, %v1717_v36  ;;  %v1076_v56 = vsel %vm5645_vm1, 0.0, %v1063_v32  ;;  %v5664_v5 = vsel %vm2088_vm0, %v5582_v30, %v2182_v1  ;;  %v1288_v40 = vand.u32 15, %v1104_v28  ;;  %2505 = vrot.lane.b32.xlu1 %v5218_v33, %s4476_s23 }
 0x146   : > { %v1302_v50 = vand.u32 15, %v1106_v29  ;;  %v1064_v14 = vsel %vm1060_vm7, %v1056_v60, %v1062_v58  ;;  %v2331_v35 = vor.u32 %v2329_v59, %v2327_v8  ;;  %v1107_v63 = vadd.s32 216, %v4633_v22 }
 0x147   : > { %vm1794_vm12 = vcmp.ne.s16.totalorder %v4053_v20, 0  ;;  %v1077_v53 = vsel %vm5645_vm1, 0.0, %v1064_v14  ;;  %vm1842_vm14 = vcmp.eq.s32.totalorder %v1288_v40, 0  ;;  %v1109_v52 = vadd.s32 232, %v4633_v22 }
 0x148   : > { %v1812_v39 = vsel %vm1794_vm12, 0, %v5472_v11  ;;  %vm1844_vm11 = vcmp.eq.s32.totalorder %v1302_v50, 0  ;;  %v5673_v16 = vpack.c.bf16 %v1077_v53, %v1076_v56  ;;  %vm1950_vm15 = vmpackc.low %vm1842_vm14, %vm1842_vm14  ;;  %v1108_v51 = vadd.s32 224, %v4633_v22  ;;  %2610 = vrot.lane.b32.xlu0 %v5359_v57, %s4474_s20 }
 0x149   : > { %v2185_v30 = vshrl.u32 %v1812_v39, 16  ;;  %v2188_v3 = vshll.u32 %v1812_v39, 16  ;;  %vm1952_vm4 = vmpackc.low %vm1844_vm11, %vm1844_vm11  ;;  %v1986_v17 = vsel %vm1950_vm15, 65537, %v4473_v2  ;;  %v1110_v43 = vadd.s32 240, %v4633_v22  ;;  %2410 = vrot.lane.b32.xlu1 %v5218_v33, %s4475_s21 }
 0x14a   : > { %v1988_v21 = vsel %vm1952_vm4, 65537, %v4473_v2  ;;  %v4071_v41 = vcombine.low %v1986_v17, %v4670_v46  ;;  %v1309_v49 = vand.u32 15, %v1107_v63  ;;  %v1323_v6 = vand.u32 15, %v1109_v52 }
 0x14b   : > { %v5679_v38 = vrot.slane %v2185_v30, 7  ;;  %v4072_v8 = vcombine.low %v1988_v21, %v4670_v46  ;;  %v1316_v60 = vand.u32 15, %v1108_v51  ;;  %v1330_v36 = vand.u32 15, %v1110_v43 }
 0x14c   : > { %vm2064_vm2 = vcmp.ne.s16.totalorder %v4071_v41, 0  ;;  %v1111_v1 = vadd.s32 248, %v4633_v22  ;;  %vm1575_vm5 = vcmp.eq.s32.totalorder %v1309_v49, 15  ;;  %vm1577_vm10 = vcmp.eq.s32.totalorder %v1323_v6, 15  ;;  %2515 = vrot.lane.b32.xlu0 %v5359_v57, %s4476_s23 }
 0x14d   : > { %v2190_v28 = vor.u32 %v2188_v3, %v5679_v38  ;;  %vm2065_vm8 = vcmp.ne.s16.totalorder %v4072_v8, 0  ;;  %v2082_v29 = vsel %vm2064_vm2, 0, %v5472_v11  ;;  %vm1683_vm3 = vmpackc.low %vm1575_vm5, %vm1575_vm5  ;;  %2563 = vrot.lane.b32.xlu1 %v5476_v23, %s4478_s29  ;;  %vm1846_vm6 = vcmp.eq.s32.totalorder %v1316_v60, 0 }
 0x14e   : > { %v2083_v33 = vsel %vm2065_vm8, 0, %v5577_v13  ;;  %v2333_v32 = vshll.u32 %v2082_v29, 16  ;;  %v2337_v58 = vshrl.u32 %v2082_v29, 16  ;;  %vm1685_vm1 = vmpackc.low %vm1577_vm10, %vm1577_vm10  ;;  %v1719_v40 = vsel %vm1683_vm3, 65537, %v4473_v2 }
 0x14f   : > { %v5694_v20 = vsel %vm2088_vm0, %v5638_v47, %v2190_v28  ;;  %v2341_v56 = vshll.u32 %v2083_v33, 16  ;;  %v2345_v50 = vshrl.u32 %v2083_v33, 16  ;;  %v1721_v47 = vsel %vm1685_vm1, 65537, %v4473_v2  ;;  %vm1954_vm9 = vmpackc.low %vm1846_vm6, %vm1846_vm6 }
 0x150   : > { %6535 = vst [vmem:[#allocation4_spill] sm:$0xff] %v5694_v20  ;;  %v2335_v14 = vrot.slane %v2333_v32, 1  ;;  %v4054_v59 = vcombine.low %v4670_v46, %v1719_v40  ;;  %vm5704_vm7 = vcmp.eq.s32.totalorder %v1330_v36, 0  ;;  %v4055_v30 = vcombine.low %v4670_v46, %v1721_v47  ;;  %2420 = vrot.lane.b32.xlu0 %v5359_v57, %s4475_s21 }
 0x151   : > { %v2343_v53 = vrot.slane %v2341_v56, 1  ;;  %v1990_v3 = vsel %vm1954_vm9, 65537, %v4473_v2  ;;  %vm1956_vm12 = vmpackc.low %vm5704_vm7, %vm5704_vm7  ;;  %v1337_v17 = vand.u32 15, %v1111_v1  ;;  %2535 = vrot.lane.b32.xlu1 %v5324_v37, %s4480_s18  ;;  %v1113_v29 = vadd.s32 264, %v4633_v22 }
 0x152   : > { %v2339_v63 = vor.u32 %v2337_v58, %v2335_v14  ;;  %v5714_v52 = vsel %vm2236_vm13, %v2331_v35, %v2335_v14  ;;  %vm1795_vm14 = vcmp.ne.s16.totalorder %v4054_v59, 0  ;;  %v4073_v51 = vcombine.low %v1990_v3, %v4670_v46 }
 0x153   : > { %vm1796_vm11 = vcmp.ne.s16.totalorder %v4055_v30, 0  ;;  %v1813_v21 = vsel %vm1795_vm14, 0, %v5577_v13  ;;  %v2347_v41 = vor.u32 %v2345_v50, %v2343_v53  ;;  %v1992_v43 = vsel %vm1956_vm12, 65537, %v4473_v2 }
 0x154   : > { %v5724_v8 = vsel %vm2236_vm13, %v2339_v63, %v2343_v53  ;;  %v1814_v35 = vsel %vm1796_vm11, 0, %v5555_v61  ;;  %v2193_v49 = vshrl.u32 %v1813_v21, 16  ;;  %v2196_v6 = vshll.u32 %v1813_v21, 16  ;;  %2571 = vrot.lane.b32.xlu0 %v5524_v42, %s4478_s29 }
 0x155   : > { %v2201_v60 = vshrl.u32 %v1814_v35, 16  ;;  %v2204_v28 = vshll.u32 %v1814_v35, 16  ;;  %vm2066_vm15 = vcmp.ne.s16.totalorder %v4073_v51, 0  ;;  %v4074_v57 = vcombine.low %v1992_v43, %v4670_v46  ;;  %2440 = vrot.lane.b32.xlu1 %v5324_v37, %s4477_s22 }
 0x156   : > { %v2195_v36 = vrot.slane %v2193_v49, 7  ;;  %v2084_v1 = vsel %vm2066_vm15, 0, %v5555_v61  ;;  %vm1579_vm4 = vcmp.eq.s32.totalorder %v1337_v17, 15  ;;  %v1351_v14 = vand.u32 15, %v1113_v29 }
 0x157   : > { %v2203_v33 = vrot.slane %v2201_v60, 7  ;;  %v2349_v32 = vshll.u32 %v2084_v1, 16  ;;  %v2353_v58 = vshrl.u32 %v2084_v1, 16  ;;  %vm2067_vm2 = vcmp.ne.s16.totalorder %v4074_v57, 0  ;;  %vm1687_vm8 = vmpackc.low %vm1579_vm4, %vm1579_vm4 }
 0x158   : > { %v2198_v56 = vor.u32 %v2196_v6, %v2195_v36  ;;  %v2085_v40 = vsel %vm2067_vm2, 0, %v5625_v48  ;;  %v1723_v50 = vsel %vm1687_vm8, 65537, %v4473_v2  ;;  %vm1581_vm5 = vcmp.eq.s32.totalorder %v1351_v14, 15  ;;  %2476 = vrot.lane.b32.xlu0 %v5524_v42, %s4479_s24 }
 0x159   : > { %v2206_v47 = vor.u32 %v2204_v28, %v2203_v33  ;;  %v2351_v59 = vrot.slane %v2349_v32, 1  ;;  %v2357_v39 = vshll.u32 %v2085_v40, 16  ;;  %v4056_v53 = vcombine.low %v4670_v46, %v1723_v50  ;;  %2569 = vrot.lane.b32.xlu1 %v5528_v4, %s4478_s29  ;;  %vm1689_vm10 = vmpackc.low %vm1581_vm5, %vm1581_vm5 }
 0x15a   : > { %v5739_v30 = vsel %vm2088_vm0, %v5679_v38, %v2198_v56  ;;  %v1112_v37 = vadd.s32 256, %v4633_v22  ;;  %v1725_v38 = vsel %vm1689_vm10, 65537, %v4473_v2  ;;  %v1114_v43 = vadd.s32 272, %v4633_v22 }
 0x15b   : > { %v5747_v3 = vsel %vm2088_vm0, %v2195_v36, %v2206_v47  ;;  %v5750_v17 = vsel %vm2236_vm13, %v2347_v41, %v2351_v59  ;;  %v2355_v63 = vor.u32 %v2353_v58, %v2351_v59  ;;  %v2359_v51 = vrot.slane %v2357_v39, 1 }
 0x15c   : > { %vm1797_vm3 = vcmp.ne.s16.totalorder %v4056_v53, 0  ;;  %v1344_v21 = vand.u32 15, %v1112_v37  ;;  %v4057_v6 = vcombine.low %v4670_v46, %v1725_v38  ;;  %v1358_v41 = vand.u32 15, %v1114_v43  ;;  %2541 = vrot.lane.b32.xlu0 %v5536_v54, %s4480_s18 }
 0x15d   : > { %v5755_v35 = vsel %vm2236_vm13, %v2355_v63, %v2359_v51  ;;  %v1815_v49 = vsel %vm1797_vm3, 0, %v5625_v48  ;;  %2474 = vrot.lane.b32.xlu1 %v5528_v4, %s4479_s24  ;;  %v2361_v57 = vshrl.u32 %v2085_v40, 16  ;;  %v1115_v36 = vadd.s32 280, %v4633_v22 }
 0x15e   : > { %v2209_v60 = vshrl.u32 %v1815_v49, 16  ;;  %v2212_v28 = vshll.u32 %v1815_v49, 16  ;;  %vm1850_vm1 = vcmp.eq.s32.totalorder %v1344_v21, 0  ;;  %vm1798_vm6 = vcmp.ne.s16.totalorder %v4057_v6, 0 }
 0x15f   : > { %vm1958_vm9 = vmpackc.low %vm1850_vm1, %vm1850_vm1  ;;  %v1816_v29 = vsel %vm1798_vm6, 0, %v5620_v24  ;;  %vm1852_vm7 = vcmp.eq.s32.totalorder %v1358_v41, 0  ;;  %v1365_v14 = vand.u32 15, %v1115_v36  ;;  %v2363_v37 = vor.u32 %v2361_v57, %v2359_v51 }
 0x160   : > { %v2211_v1 = vrot.slane %v2209_v60, 7  ;;  %v1994_v32 = vsel %vm1958_vm9, 65537, %v4473_v2  ;;  %v2217_v58 = vshrl.u32 %v1816_v29, 16  ;;  %v2220_v56 = vshll.u32 %v1816_v29, 16  ;;  %vm1960_vm12 = vmpackc.low %vm1852_vm7, %vm1852_vm7  ;;  %2446 = vrot.lane.b32.xlu0 %v5536_v54, %s4477_s22 }
 0x161   : > { %v4075_v50 = vcombine.low %v1994_v32, %v4670_v46  ;;  %v1996_v59 = vsel %vm1960_vm12, 65537, %v4473_v2  ;;  %2604 = vrot.lane.b32.xlu1 %v5291_v18, %s4474_s20  ;;  %vm1583_vm11 = vcmp.eq.s32.totalorder %v1365_v14, 15  ;;  %vm2233_vm8 = vcmask 1040384  }
 0x162   : > { %v2214_v47 = vor.u32 %v2212_v28, %v2211_v1  ;;  %v2219_v22 = vrot.slane %v2217_v58, 7  ;;  %v4076_v40 = vcombine.low %v1996_v59, %v4670_v46  ;;  %vm1691_vm15 = vmpackc.low %vm1583_vm11, %vm1583_vm11  ;;  %vm6539_vm10 = vcmask 130048  }
 0x163   : > { %vm2068_vm14 = vcmp.ne.s16.totalorder %v4075_v50, 0  ;;  %v1727_v49 = vsel %vm1691_vm15, 65537, %v4473_v2  ;;  %vm2234_vm5 = vmand %vm2233_vm8, %vm2088_vm0  ;;  %vm2674_vm3 = vcmask 261120   ;;  %vm2707_vm1 = vcmask 392192  }
 0x164   : > { %v5774_v39 = vsel %vm2088_vm0, %v2203_v33, %v2214_v47  ;;  %v2086_v53 = vsel %vm2068_vm14, 0, %v5620_v24  ;;  %v2222_v63 = vor.u32 %v2220_v56, %v2219_v22  ;;  %vm2069_vm4 = vcmp.ne.s16.totalorder %v4076_v40, 0  ;;  %2608 = vrot.lane.b32.xlu0 %v5365_v31, %s4474_s20  ;;  %vm6540_vm12 = vmmov %vm6539_vm10 }
 0x165   : > { %v2365_v38 = vshll.u32 %v2086_v53, 16  ;;  %v2369_v21 = vshrl.u32 %v2086_v53, 16  ;;  %v2087_v43 = vsel %vm2069_vm4, 0, %v5673_v16  ;;  %2509 = vrot.lane.b32.xlu1 %v5291_v18, %s4476_s23  ;;  %v4058_v60 = vcombine.low %v4670_v46, %v1727_v49  ;;  %vm6541_vm14 = vmmov %vm6539_vm10 }
 0x166   : > { %v5784_v33 = vsel %vm2088_vm0, %v2211_v1, %v2222_v63  ;;  %v2373_v51 = vshll.u32 %v2087_v43, 16  ;;  %v2377_v59 = vshrl.u32 %v2087_v43, 16  ;;  %vm2740_vm6 = vcmask 523264   ;;  %vm6542_vm11 = vmmov %vm6539_vm10 }
 0x167   : > { %v2367_v6 = vrot.slane %v2365_v38, 1  ;;  %vm1799_vm2 = vcmp.ne.s16.totalorder %v4058_v60, 0  ;;  %vm2806_vm9 = vcmask 785408   ;;  %vm2839_vm7 = vcmask 916480   ;;  %vm6543_vm15 = vmmov %vm6539_vm10 }
 0x168   : > { %v2375_v57 = vrot.slane %v2373_v51, 1  ;;  %v1817_v2 = vsel %vm1799_vm2, 0, %v5673_v16  ;;  %2513 = vrot.lane.b32.xlu0 %v5365_v31, %s4476_s23  ;;  %vm6544_vm4 = vmmov %vm6539_vm10 }
 0x169   : > { %v5788_v28 = vsel %vm2236_vm13, %v2363_v37, %v2367_v6  ;;  %v2371_v41 = vor.u32 %v2369_v21, %v2367_v6  ;;  %2539 = vrot.lane.b32.xlu1 %v5551_v7, %s4480_s18  ;;  %v2225_v36 = vshrl.u32 %v1817_v2, 16  ;;  %v2228_v1 = vshll.u32 %v1817_v2, 16  ;;  %vm6545_vm2 = vmmov %vm6544_vm4 }
 0x16a   : > { %v5798_v46 = vpop.permute.xlu1 %2594  ;;  %v5804_v58 = vpop.permute.xlu0 %2404  ;;  %v5821_v40 = vor.u32 %v2377_v59, %v2375_v57  ;;  %vm6546_vm8 = vmmov %vm6545_vm2 }
 0x16b   : > { %v5796_v18 = vsel %vm2236_vm13, %v2371_v41, %v2375_v57  ;;  %v2227_v29 = vrot.slane %v2225_v36, 7 }
 0x16c   : > { %2543 = vrot.lane.b32.xlu0 %v5580_v10, %s4480_s18  ;;  %6538 = vst [vmem:[#allocation5_spill] sm:$0xff] %v5821_v40 }
 0x16d   : > { %2444 = vrot.lane.b32.xlu1 %v5551_v7, %s4477_s22  ;;  %v2230_v32 = vor.u32 %v2228_v1, %v2227_v29 }
 0x16e   : > { %v5806_v56 = vpop.permute.xlu1 %2499 }
 0x16f   : > { %v5809_v50 = vsel %vm2088_vm0, %v2219_v22, %v2230_v32  ;;  %v2235_v32 = vsel %vm2234_vm5, 0, %v5585_v25  ;;  %vm2773_vm0 = vcmask 654336   ;;  %vm6547_vm5 = vmmov %vm6545_vm2 }
 0x170   : > { %2448 = vrot.lane.b32.xlu0 %v5580_v10, %s4477_s22 }
 0x171   : > { %2573 = vrot.lane.b32.xlu1 %v5519_v15, %s4478_s29 }
 0x172   : > { %v5815_v14 = vpop.permute.xlu0 %2598  ;;  %v2498_v47 = vpop.permute.xlu1 %2497 }
 0x174   : > { %2577 = vrot.lane.b32.xlu0 %v5604_v27, %s4478_s29 }
 0x175   : > { %2418 = vrot.lane.b32.xlu1 %v5365_v31, %s4475_s21 }
 0x176   : > { %v5823_v22 = vpop.permute.xlu0 %2503  ;;  %v5825_v53 = vpop.permute.xlu1 %2402 }
 0x178   : > { %2614 = vrot.lane.b32.xlu0 %v5472_v11, %s4474_s20 }
 0x179   : > { %2482 = vrot.lane.b32.xlu1 %v5604_v27, %s4479_s24 }
 0x17a   : > { %v5831_v37 = vpop.permute.xlu0 %2408  ;;  %v2401_v63 = vpop.permute.xlu1 %2400 }
 0x17b   : > { %v2628_v59 = vsel %vm6539_vm10, %v2235_v32, %v2401_v63  ;;  %vm6548_vm10 = vmmov %vm6545_vm2 }
 0x17c   : > { %2519 = vrot.lane.b32.xlu0 %v5472_v11, %s4476_s23 }
 0x17d   : > { %2612 = vrot.lane.b32.xlu1 %v5496_v44, %s4474_s20 }
 0x17e   : > { %v5837_v31 = vpop.permute.xlu0 %2436  ;;  %v2562_v38 = vpop.permute.xlu1 %2561 }
 0x180   : > { %2424 = vrot.lane.b32.xlu0 %v5472_v11, %s4475_s21 }
 0x181   : > { %2517 = vrot.lane.b32.xlu1 %v5496_v44, %s4476_s23 }
 0x182   : > { %v5843_v21 = vpop.permute.xlu0 %2602  ;;  %v5845_v43 = vpop.permute.xlu1 %2466 }
 0x184   : > { %2575 = vrot.lane.b32.xlu0 %v5608_v55, %s4478_s29 }
 0x185   : > { %2422 = vrot.lane.b32.xlu1 %v5496_v44, %s4475_s21 }
 0x186   : > { %v5851_v49 = vpop.permute.xlu0 %2507  ;;  %v5853_v6 = vpop.permute.xlu1 %2501 }
 0x188   : > { %2480 = vrot.lane.b32.xlu0 %v5608_v55, %s4479_s24 }
 0x189   : > { %2547 = vrot.lane.b32.xlu1 %v5643_v45, %s4480_s18 }
 0x18a   : > { %v5859_v11 = vpop.permute.xlu0 %2412  ;;  %v5861_v51 = vpop.permute.xlu1 %2406 }
 0x18c   : > { %2545 = vrot.lane.b32.xlu0 %v5636_v0, %s4480_s18 }
 0x18d   : > { %2452 = vrot.lane.b32.xlu1 %v5643_v45, %s4477_s22 }
 0x18e   : > { %v2534_v44 = vpop.permute.xlu0 %2533  ;;  %v2465_v60 = vpop.permute.xlu1 %2464 }
 0x190   : > { %2450 = vrot.lane.b32.xlu0 %v5636_v0, %s4477_s22 }
 0x191   : > { %2581 = vrot.lane.b32.xlu1 %v5694_v20, %s4478_s29 }
 0x192   : > { %v5871_v41 = vpop.permute.xlu0 %2438  ;;  %v2530_v57 = vpop.permute.xlu1 %2529 }
 0x194   : > { %2618 = vrot.lane.b32.xlu0 %v5555_v61, %s4474_s20 }
 0x195   : > { %2486 = vrot.lane.b32.xlu1 %v5694_v20, %s4479_s24 }
 0x196   : > { %v5877_v2 = vpop.permute.xlu0 %2606  ;;  %v2435_v36 = vpop.permute.xlu1 %2434 }
 0x198   : > { %2523 = vrot.lane.b32.xlu0 %v5555_v61, %s4476_s23 }
 0x199   : > { %2616 = vrot.lane.b32.xlu1 %v5577_v13, %s4474_s20 }
 0x19a   : > { %v5884_v1 = vpop.permute.xlu0 %2511  ;;  %v5886_v29 = vpop.permute.xlu1 %2596 }
 0x19c   : > { %2428 = vrot.lane.b32.xlu0 %v5555_v61, %s4475_s21 }
 0x19d   : > { %2521 = vrot.lane.b32.xlu1 %v5577_v13, %s4476_s23 }
 0x19e   : > { %v5894_v40 = vpop.permute.xlu0 %2416  ;;  %v2433_v20 = vpop.permute.xlu1 %2432 }
 0x19f   : > { %v2676_v27 = vsel %vm2674_vm3, %v2628_v59, %v2433_v20 }
 0x1a0   : > { %v2709_v55 = vsel %vm2707_vm1, %v2676_v27, %v2465_v60  ;;  %2579 = vrot.lane.b32.xlu0 %v5664_v5, %s4478_s29 }
 0x1a1   : > { %2426 = vrot.lane.b32.xlu1 %v5577_v13, %s4475_s21  ;;  %v2742_v61 = vsel %vm2740_vm6, %v2709_v55, %v2498_v47 }
 0x1a2   : > { %v2775_v25 = vsel %vm2773_vm0, %v2742_v61, %v2530_v57  ;;  %v5904_v63 = vpop.permute.xlu0 %2567  ;;  %v2532_v32 = vpop.permute.xlu1 %2531 }
 0x1a3   : > { %v2808_v20 = vsel %vm2806_vm9, %v2775_v25, %v2562_v38 }
 0x1a4   : > { %2484 = vrot.lane.b32.xlu0 %v5664_v5, %s4479_s24  ;;  %v2841_v13 = vsel %vm2839_vm7, %v2808_v20, %v5798_v46 }
 0x1a5   : > { %2551 = vrot.lane.b32.xlu1 %v5724_v8, %s4480_s18  ;;  %3048 = vmatmul.mubr.bf16.vlgmr.msra.gmra.mrb[32].mxu0 %v2841_v13 }
 0x1a6   : > { %v5913_v27 = vpop.permute.xlu0 %2472  ;;  %4088 = vmatprep.mubr.msk.bf16.mxu0 %vm6540_vm12, %v5297_v62  ;;  %v2566_v55 = vpop.permute.xlu1 %2565  ;;  %v2634_v62 = vsel %vm6541_vm14, %v5249_v12, %v5804_v58  ;;  %vm6549_vm12 = vmmov %vm6545_vm2 }
 0x1a7   : > { %v2680_v46 = vsel %vm2674_vm3, %v2634_v62, %v5837_v31  ;;  %vm6550_vm14 = vmmov %vm6545_vm2 }
 0x1a8   : > { %2549 = vrot.lane.b32.xlu0 %v5714_v52, %s4480_s18 }
 0x1a9   : > { %2456 = vrot.lane.b32.xlu1 %v5724_v8, %s4477_s22 }
 0x1aa   : > { %v5921_v47 = vpop.permute.xlu0 %2537 }
 0x1ab   : > { %v2471_v38 = vpop.permute.xlu1 %2470 }
 0x1ac   : > { %2454 = vrot.lane.b32.xlu0 %v5714_v52, %s4477_s22 }
 0x1ad   : > { %2585 = vrot.lane.b32.xlu1 %v5747_v3, %s4478_s29 }
 0x1ae   : > { %v5932_v60 = vpop.permute.xlu0 %2442 }
 0x1af   : > { %v2469_v57 = vpop.permute.xlu1 %2468 }
 0x1b0   : > { %v2713_v59 = vsel %vm2707_vm1, %v2680_v46, %v2469_v57  ;;  %2622 = vrot.lane.b32.xlu0 %v5620_v24, %s4474_s20 }
 0x1b1   : > { %v2746_v61 = vsel %vm2740_vm6, %v2713_v59, %v5853_v6  ;;  %2490 = vrot.lane.b32.xlu1 %v5747_v3, %s4479_s24  ;;  %v2631_v6 = vsel %vm6542_vm11, %v5338_v26, %v5825_v53  ;;  %vm6551_vm11 = vmmov %vm6545_vm2 }
 0x1b2   : > { %v2779_v25 = vsel %vm2773_vm0, %v2746_v61, %v2534_v44  ;;  %v5942_v12 = vpop.permute.xlu0 %2414 }
 0x1b3   : > { %v2601_v58 = vpop.permute.xlu1 %2600  ;;  %v2812_v31 = vsel %vm2806_vm9, %v2779_v25, %v2566_v55  ;;  %v2678_v55 = vsel %vm2674_vm3, %v2631_v6, %v2435_v36 }
 0x1b4   : > { %v2847_v20 = vsel %vm2839_vm7, %v2812_v31, %v5815_v14  ;;  %2583 = vrot.lane.b32.xlu0 %v5739_v30, %s4478_s29  ;;  %v2711_v14 = vsel %vm2707_vm1, %v2678_v55, %v5845_v43 }
 0x1b5   : > { %2620 = vrot.lane.b32.xlu1 %v5625_v48, %s4474_s20  ;;  %3064 = vmatmul.mubr.bf16.vlgmr.msra.gmra.mrb[8].mxu1 %v2847_v20  ;;  %v2744_v53 = vsel %vm2740_vm6, %v2711_v14, %v5806_v56 }
 0x1b6   : > { %4090 = vmatprep.mubr.msk.bf16.mxu1 %vm6543_vm15, %v5465_v34  ;;  %v5956_v44 = vpop.permute.xlu0 %2478  ;;  %v2637_v34 = vsel %vm6544_vm4, %v5476_v23, %v5861_v51  ;;  %v2777_v43 = vsel %vm2773_vm0, %v2744_v53, %v2532_v32  ;;  %vm6552_vm15 = vmmov %vm6545_vm2 }
 0x1b7   : > { %v2506_v13 = vpop.permute.xlu1 %2505  ;;  %v2682_v36 = vsel %vm2674_vm3, %v2637_v34, %v5871_v41  ;;  %v4415_v34 = vld [vmem:[%s4583_s16 + $0x8] sm:$0xff]   ;;  %vm6553_vm4 = vmmov %vm6545_vm2 }
 0x1b8   : > { %2488 = vrot.lane.b32.xlu0 %v5739_v30, %s4479_s24  ;;  %v2715_v59 = vsel %vm2707_vm1, %v2682_v36, %v2471_v38  ;;  %v2640_v38 = vsel %vm6545_vm2, %v5430_v9, %v5831_v37  ;;  %v4416_v36 = vld [vmem:[%s4583_s16] sm:$0xff]  }
 0x1b9   : > { %2525 = vrot.lane.b32.xlu1 %v5625_v48, %s4476_s23  ;;  %v2748_v56 = vsel %vm2740_vm6, %v2715_v59, %v5823_v22 }
 0x1ba   : > { %v5965_v62 = vpop.permute.xlu0 %2610 }
 0x1bb   : > { %v2411_v26 = vpop.permute.xlu1 %2410 }
 0x1bc   : > { %2553 = vrot.lane.b32.xlu0 %v5750_v17, %s4480_s18 }
 0x1bd   : > { %2430 = vrot.lane.b32.xlu1 %v5625_v48, %s4475_s21 }
 0x1be   : > { %v5979_v46 = vpop.permute.xlu0 %2515 }
 0x1bf   : > { %v2564_v57 = vpop.permute.xlu1 %2563 }
 0x1c0   : > { %v2810_v61 = vsel %vm2806_vm9, %v2777_v43, %v2564_v57  ;;  %2458 = vrot.lane.b32.xlu0 %v5750_v17, %s4477_s22  ;;  %v4417_v43 = vld [vmem:[%s4583_s16 + $0x18] sm:$0xff]   ;;  %v2646_v57 = vsel %vm6549_vm12, %v5528_v4, %v5859_v11  ;;  %vm6559_vm12 = vmmov %vm6545_vm2 }
 0x1c1   : > { %2555 = vrot.lane.b32.xlu1 %v5755_v35, %s4480_s18  ;;  %v2844_v23 = vsel %vm2839_vm7, %v2810_v61, %v5886_v29 }
 0x1c2   : > { %3056 = vmatmul.mubr.bf16.gmra.mrb[36].mxu0 %v2844_v23  ;;  %v5989_v48 = vpop.permute.xlu0 %2420 }
 0x1c3   : > { %v2536_v51 = vpop.permute.xlu1 %2535 }
 0x1c4   : > { %v2781_v41 = vsel %vm2773_vm0, %v2748_v56, %v2536_v51  ;;  %2587 = vrot.lane.b32.xlu0 %v5774_v39, %s4478_s29  ;;  %v4418_v56 = vld [vmem:[%s4583_s16 + $0x10] sm:$0xff]   ;;  %v4419_v51 = vld [vmem:[%s4583_s16 + $0x28] sm:$0xff]  }
 0x1c5   : > { %2460 = vrot.lane.b32.xlu1 %v5755_v35, %s4477_s22  ;;  %v2814_v32 = vsel %vm2806_vm9, %v2781_v41, %v5904_v63 }
 0x1c6   : > { %v2850_v29 = vsel %vm2839_vm7, %v2814_v32, %v2601_v58  ;;  %v2572_v25 = vpop.permute.xlu0 %2571 }
 0x1c7   : > { %3072 = vmatmul.mubr.bf16.gmra.mrb[12].mxu1 %v2850_v29  ;;  %v2441_v22 = vpop.permute.xlu1 %2440 }
 0x1c8   : > { %v2684_v31 = vsel %vm2674_vm3, %v2640_v38, %v2441_v22  ;;  %4091 = vmatprep.mubr.msk.bf16.mxu1 %vm6546_vm8, %v5551_v7  ;;  %2492 = vrot.lane.b32.xlu0 %v5774_v39, %s4479_s24  ;;  %v4420_v38 = vld [vmem:[%s4583_s16 + $0x20] sm:$0xff]   ;;  %vm6554_vm8 = vmmov %vm6545_vm2 }
 0x1c9   : > { %v2717_v20 = vsel %vm2707_vm1, %v2684_v31, %v5913_v27  ;;  %2589 = vrot.lane.b32.xlu1 %v5784_v33, %s4478_s29 }
 0x1ca   : > { %v2750_v63 = vsel %vm2740_vm6, %v2717_v20, %v2506_v13  ;;  %v2477_v9 = vpop.permute.xlu0 %2476  ;;  %v4422_v20 = vld [vmem:[%s4583_s16 + $0x30] sm:$0xff]  }
 0x1cb   : > { %v2783_v37 = vsel %vm2773_vm0, %v2750_v63, %v5921_v47  ;;  %v2570_v58 = vpop.permute.xlu1 %2569  ;;  %v4423_v63 = vld [vmem:[%s4583_s16 + $0x48] sm:$0xff]  }
 0x1cc   : > { %v2816_v6 = vsel %vm2806_vm9, %v2783_v37, %v2570_v58  ;;  %2557 = vrot.lane.b32.xlu0 %v5788_v28, %s4480_s18  ;;  %v4424_v37 = vld [vmem:[%s4583_s16 + $0x40] sm:$0xff]   ;;  %v4425_v58 = vld [vmem:[%s4583_s16 + $0x58] sm:$0xff]  }
 0x1cd   : > { %2494 = vrot.lane.b32.xlu1 %v5784_v33, %s4479_s24  ;;  %v2853_v7 = vsel %vm2839_vm7, %v2816_v6, %v5843_v21  ;;  %v2643_v33 = vsel %vm6548_vm10, %v5435_v19, %v2411_v26  ;;  %vm6558_vm10 = vmmov %vm6545_vm2  ;;  %s4000_s24 = sshll.u32 %s4457_s10, 1 }
 0x1ce   : > { %v2542_v27 = vpop.permute.xlu0 %2541  ;;  %s490_s17 = sadd.s32 %s4453_s30, %s4000_s24 }
 0x1cf   : > { %3080 = vmatmul.mubr.bf16.gmra.mrb[16].mxu1 %v2853_v7  ;;  %v2475_v13 = vpop.permute.xlu1 %2474 }
 0x1d0   : > { %4092 = vmatprep.mubr.msk.bf16.mxu1 %vm6547_vm5, %v5536_v54  ;;  %2527 = vrot.lane.b32.xlu0 %v5620_v24, %s4476_s23  ;;  %v2686_v54 = vsel %vm2674_vm3, %v2643_v33, %v5932_v60  ;;  %vm6556_vm5 = vmmov %vm6545_vm2 }
 0x1d1   : > { %2559 = vrot.lane.b32.xlu1 %v5796_v18, %s4480_s18  ;;  %v2719_v14 = vsel %vm2707_vm1, %v2686_v54, %v2475_v13  ;;  %v4426_v13 = vld [vmem:[%s4583_s16 + $0x50] sm:$0xff]   ;;  %s4001_s18 = sshll.u32 %s490_s17, 5 }
 0x1d2   : > { %v2447_v47 = vpop.permute.xlu0 %2446  ;;  %v2752_v26 = vsel %vm2740_vm6, %v2719_v14, %v5851_v49  ;;  %v4428_v14 = vld [vmem:[%s4583_s16 + $0x60] sm:$0xff]   ;;  %p492_p12 = scmp.lt.s32.totalorder %s4001_s18, 127 }
 0x1d3   : > { %v2605_v55 = vpop.permute.xlu1 %2604 }
 0x1d4   : > { %2462 = vrot.lane.b32.xlu0 %v5788_v28, %s4477_s22  ;;  %s6603_s18 = smov (!%p492_p12, %s4001_s18), 127 }
 0x1d5   : > { %2624 = vrot.lane.b32.xlu1 %v5673_v16, %s4474_s20  ;;  %s4002_s19 = sshll.u32 %s6603_s18, 2 }
 0x1d6   : > { %v6037_v24 = vpop.permute.xlu0 %2608  ;;  %s6297_s25 = scalar_lea.vmem %s6415_s9, %s4002_s19 }
 0x1d7   : > { %v2510_v21 = vpop.permute.xlu1 %2509 }
 0x1d8   : > { %2591 = vrot.lane.b32.xlu0 %v5809_v50, %s4478_s29 }
 0x1d9   : > { %3290 = vrot.lane.b32.xlu1 %v4415_v34, %s4475_s21 }
 0x1da   : > { %v6044_v19 = vpop.permute.xlu0 %2513 }
 0x1db   : > { %v2540_v16 = vpop.permute.xlu1 %2539 }
 0x1dc   : > { %v2785_v60 = vsel %vm2773_vm0, %v2752_v26, %v2540_v16  ;;  %3288 = vrot.lane.b32.xlu0 %v4416_v36, %s4475_s21 }
 0x1dd   : > { %v2818_v53 = vsel %vm2806_vm9, %v2785_v60, %v2572_v25  ;;  %3294 = vrot.lane.b32.xlu1 %v4417_v43, %s4475_s21  ;;  %v4421_v25 = vld [vmem:[%s4583_s16 + $0x38] sm:$0xff]   ;;  %v4430_v60 = vld [vmem:[%s4583_s16 + $0x70] sm:$0xff]  }
 0x1de   : > { %v2856_v50 = vsel %vm2839_vm7, %v2818_v53, %v2605_v55  ;;  %v2544_v49 = vpop.permute.xlu0 %2543  ;;  %v4427_v55 = vld [vmem:[%s4583_s16 + $0x68] sm:$0xff]   ;;  %v2652_v53 = vsel %vm6553_vm4, %v5519_v15, %v5894_v40  ;;  %vm6564_vm4 = vmmov %vm6545_vm2 }
 0x1df   : > { %3088 = vmatmul.mubr.bf16.gmra.mrb[20].mxu1 %v2856_v50  ;;  %v2445_v59 = vpop.permute.xlu1 %2444 }
 0x1e0   : > { %v2688_v61 = vsel %vm2674_vm3, %v2646_v57, %v2445_v59  ;;  %4093 = vmatprep.mubr.msk.bf16.mxu1 %vm6550_vm14, %v5580_v10  ;;  %3292 = vrot.lane.b32.xlu0 %v4418_v56, %s4475_s21  ;;  %vm6560_vm14 = vmmov %vm6545_vm2 }
 0x1e1   : > { %v2721_v23 = vsel %vm2707_vm1, %v2688_v61, %v2477_v9  ;;  %3298 = vrot.lane.b32.xlu1 %v4419_v51, %s4475_s21  ;;  %v6555_v51 = vld [vmem:[#allocation3_spill] sm:$0xff] }
 0x1e2   : > { %v2754_v4 = vsel %vm2740_vm6, %v2721_v23, %v2510_v21  ;;  %v2449_v11 = vpop.permute.xlu0 %2448 }
 0x1e3   : > { %v2787_v41 = vsel %vm2773_vm0, %v2754_v4, %v2542_v27  ;;  %v2574_v32 = vpop.permute.xlu1 %2573  ;;  %v2692_v36 = vsel %vm2674_vm3, %v2652_v53, %v2449_v11  ;;  %v6562_v53 = vld [vmem:[#allocation4_spill] sm:$0xff] }
 0x1e4   : > { %v2820_v29 = vsel %vm2806_vm9, %v2787_v41, %v2574_v32  ;;  %3296 = vrot.lane.b32.xlu0 %v4420_v38, %s4475_s21 }
 0x1e5   : > { %v2859_v10 = vsel %vm2839_vm7, %v2820_v29, %v5877_v2  ;;  %3302 = vrot.lane.b32.xlu1 %v4421_v25, %s4475_s21 }
 0x1e6   : > { %v2578_v22 = vpop.permute.xlu0 %2577 }
 0x1e7   : > { %3096 = vmatmul.mubr.bf16.gmra.mrb[24].mxu1 %v2859_v10  ;;  %v2419_v31 = vpop.permute.xlu1 %2418 }
 0x1e8   : > { %4094 = vmatprep.mubr.msk.bf16.mxu1 %vm6551_vm11, %v5636_v0  ;;  %3300 = vrot.lane.b32.xlu0 %v4422_v20, %s4475_s21  ;;  %v2649_v0 = vsel %vm6552_vm15, %v5524_v42, %v5942_v12  ;;  %v4429_v42 = vld [vmem:[%s4583_s16 + $0x78] sm:$0xff]   ;;  %v6557_v20 = vld [vmem:[#allocation2_spill] sm:$0xff]  ;;  %vm6561_vm11 = vmmov %vm6545_vm2 }
 0x1e9   : > { %3306 = vrot.lane.b32.xlu1 %v4423_v63, %s4475_s21  ;;  %v2690_v27 = vsel %vm2674_vm3, %v2649_v0, %v2447_v47  ;;  %v2658_v63 = vsel %vm6558_vm10, %v6557_v20, %v5989_v48  ;;  %v4413_v48 = vld [vmem:[%s6413_s7] sm:$0xff]   ;;  %vm6563_vm15 = vmmov %vm6545_vm2  ;;  %v6568_v20 = vld [vmem:[#allocation5_spill] sm:$0xff] }
 0x1ea   : > { %v6081_v2 = vpop.permute.xlu0 %2614  ;;  %v2723_v33 = vsel %vm2707_vm1, %v2690_v27, %v5956_v44  ;;  %4281 = vmatprep.subr.bf16.mxu0 %v4413_v48  ;;  %vm6567_vm10 = vmmov %vm6545_vm2 }
 0x1eb   : > { %v2483_v9 = vpop.permute.xlu1 %2482  ;;  %v2756_v12 = vsel %vm2740_vm6, %v2723_v33, %v5884_v1  ;;  %4282 = vmatpush3.bf16.msra.mxu0 %v4413_v48 }
 0x1ec   : > { %3304 = vrot.lane.b32.xlu0 %v4424_v37, %s4475_s21  ;;  %v2789_v47 = vsel %vm2773_vm0, %v2756_v12, %v2544_v49 }
 0x1ed   : > { %3310 = vrot.lane.b32.xlu1 %v4425_v58, %s4475_s21 }
 0x1ee   : > { %v6090_v6 = vpop.permute.xlu0 %2519 }
 0x1ef   : > { %v2613_v7 = vpop.permute.xlu1 %2612 }
 0x1f0   : > { %3308 = vrot.lane.b32.xlu0 %v4426_v13, %s4475_s21 }
 0x1f1   : > { %3314 = vrot.lane.b32.xlu1 %v4427_v55, %s4475_s21 }
 0x1f2   : > { %v6099_v54 = vpop.permute.xlu0 %2424 }
 0x1f3   : > { %v2518_v21 = vpop.permute.xlu1 %2517 }
 0x1f4   : > { %3312 = vrot.lane.b32.xlu0 %v4428_v14, %s4475_s21 }
 0x1f5   : > { %3318 = vrot.lane.b32.xlu1 %v4429_v42, %s4475_s21 }
 0x1f6   : > { %v2576_v34 = vpop.permute.xlu0 %2575 }
 0x1f7   : > { %v2423_v26 = vpop.permute.xlu1 %2422  ;;  %v2822_v16 = vsel %vm2806_vm9, %v2789_v47, %v2576_v34  ;;  %v4414_v47 = vld [vmem:[%s6413_s7 + $0x8] sm:$0xff]  }
 0x1f8   : > { %v2862_v44 = vsel %vm2839_vm7, %v2822_v16, %v6037_v24  ;;  %3316 = vrot.lane.b32.xlu0 %v4430_v60, %s4475_s21  ;;  %4283 = vmatprep.subr.bf16.mxu0 %v4414_v47 }
 0x1f9   : > { %3104 = vmatmul.mubr.bf16.gmra.mrb[28].mxu1 %v2862_v44  ;;  %4284 = vmatpush3.bf16.msra.mxu0 %v4414_v47 }
 0x1fa   : > { %v2481_v1 = vpop.permute.xlu0 %2480  ;;  %4095 = vmatprep.mubr.msk.bf16.mxu1 %vm6545_vm2, %v5643_v45 }
 0x1fb   : > { %v2548_v43 = vpop.permute.xlu1 %2547  ;;  %v2725_v50 = vsel %vm2707_vm1, %v2692_v36, %v2481_v1  ;;  %v2664_v36 = vsel %vm6563_vm15, %v6562_v53, %v6099_v54  ;;  %vm6570_vm15 = vmmov %vm6545_vm2 }
 0x1fc   : > { %v2758_v24 = vsel %vm2740_vm6, %v2725_v50, %v6044_v19  ;;  %v2655_v19 = vsel %vm6556_vm5, %v6555_v51, %v2419_v31  ;;  %vm6566_vm5 = vmmov %vm6545_vm2 }
 0x1fe   : > { %v2546_v57 = vpop.permute.xlu0 %2545 }
 0x1ff   : > { %v2453_v49 = vpop.permute.xlu1 %2452  ;;  %v2791_v59 = vsel %vm2773_vm0, %v2758_v24, %v2546_v57 }
 0x200   : > { %v2824_v61 = vsel %vm2806_vm9, %v2791_v59, %v2578_v22 }
 0x201   : > { %v2865_v15 = vsel %vm2839_vm7, %v2824_v61, %v5965_v62 }
 0x202   : > { %v2451_v40 = vpop.permute.xlu0 %2450  ;;  %3112 = vmatmul.mubr.bf16.gmra.mrb[32].mxu1 %v2865_v15 }
 0x203   : > { %v2582_v23 = vpop.permute.xlu1 %2581  ;;  %4096 = vmatprep.mubr.msk.bf16.mxu1 %vm6554_vm8, %v5714_v52  ;;  %v2694_v4 = vsel %vm2674_vm3, %v2655_v19, %v2451_v40  ;;  %vm6565_vm8 = vmmov %vm6545_vm2 }
 0x204   : > { %v2727_v32 = vsel %vm2707_vm1, %v2694_v4, %v2483_v9  ;;  %v2696_v9 = vsel %vm2674_vm3, %v2658_v63, %v2453_v49 }
 0x205   : > { %v2760_v10 = vsel %vm2740_vm6, %v2727_v32, %v5979_v46 }
 0x206   : > { %v2619_v45 = vpop.permute.xlu0 %2618  ;;  %v2793_v52 = vsel %vm2773_vm0, %v2760_v10, %v2548_v43 }
 0x207   : > { %v2487_v56 = vpop.permute.xlu1 %2486 }
 0x20a   : > { %v6131_v11 = vpop.permute.xlu0 %2523 }
 0x20b   : > { %v2617_v41 = vpop.permute.xlu1 %2616 }
 0x20e   : > { %v6134_v29 = vpop.permute.xlu0 %2428 }
 0x20f   : > { %v2522_v62 = vpop.permute.xlu1 %2521  ;;  %v2670_v32 = vsel %vm6566_vm5, %v5747_v3, %v6134_v29 }
 0x212   : > { %v2580_v38 = vpop.permute.xlu0 %2579 }
 0x213   : > { %v2427_v25 = vpop.permute.xlu1 %2426  ;;  %v2826_v22 = vsel %vm2806_vm9, %v2793_v52, %v2580_v38 }
 0x214   : > { %v2868_v31 = vsel %vm2839_vm7, %v2826_v22, %v2613_v7  ;;  %v2667_v15 = vsel %vm6545_vm2, %v5739_v30, %v2427_v25 }
 0x215   : > { %3120 = vmatmul.mubr.bf16.gmra.mrb[36].mxu1 %v2868_v31 }
 0x216   : > { %v2485_v37 = vpop.permute.xlu0 %2484  ;;  %4097 = vmatprep.mubr.msk.bf16.mxu1 %vm6559_vm12, %v5724_v8  ;;  %v2661_v8 = vsel %vm6560_vm14, %v5664_v5, %v2423_v26  ;;  %vm2381_vm12 = vcmask 1047552  }
 0x217   : > { %v2552_v46 = vpop.permute.xlu1 %2551  ;;  %v2729_v58 = vsel %vm2707_vm1, %v2696_v9, %v2485_v37  ;;  %vm2382_vm14 = vmand %vm2381_vm12, %vm2236_vm13 }
 0x218   : > { %v2762_v27 = vsel %vm2740_vm6, %v2729_v58, %v2518_v21  ;;  %v2383_v63 = vsel %vm2382_vm14, %v6568_v20, 0 }
 0x21a   : > { %v2550_v0 = vpop.permute.xlu0 %2549 }
 0x21b   : > { %v2457_v13 = vpop.permute.xlu1 %2456  ;;  %v2795_v7 = vsel %vm2773_vm0, %v2762_v27, %v2550_v0 }
 0x21c   : > { %v2828_v55 = vsel %vm2806_vm9, %v2795_v7, %v2582_v23  ;;  %v2700_v1 = vsel %vm2674_vm3, %v2664_v36, %v2457_v13 }
 0x21d   : > { %v2871_v33 = vsel %vm2839_vm7, %v2828_v55, %v6081_v2 }
 0x21e   : > { %v2455_v14 = vpop.permute.xlu0 %2454  ;;  %3128 = vmatmul.mubr.bf16.gmra.mrb[40].mxu1 %v2871_v33 }
 0x21f   : > { %v2586_v42 = vpop.permute.xlu1 %2585  ;;  %v2698_v21 = vsel %vm2674_vm3, %v2661_v8, %v2455_v14  ;;  %4098 = vmatprep.mubr.msk.bf16.mxu1 %vm6561_vm11, %v5750_v17  ;;  %vm6569_vm11 = vmmov %vm6545_vm2 }
 0x220   : > { %v2731_v12 = vsel %vm2707_vm1, %v2698_v21, %v2487_v56 }
 0x221   : > { %v2764_v5 = vsel %vm2740_vm6, %v2731_v12, %v6090_v6 }
 0x222   : > { %v2623_v2 = vpop.permute.xlu0 %2622  ;;  %v2797_v16 = vsel %vm2773_vm0, %v2764_v5, %v2552_v46 }
 0x223   : > { %v2491_v34 = vpop.permute.xlu1 %2490 }
 0x226   : > { %v2584_v26 = vpop.permute.xlu0 %2583 }
 0x227   : > { %v2621_v44 = vpop.permute.xlu1 %2620  ;;  %v2830_v17 = vsel %vm2806_vm9, %v2797_v16, %v2584_v26 }
 0x228   : > { %v2874_v60 = vsel %vm2839_vm7, %v2830_v17, %v2617_v41 }
 0x229   : > { %3136 = vmatmul.mubr.bf16.gmra.mrb[44].mxu1 %v2874_v60 }
 0x22a   : > { %v2489_v43 = vpop.permute.xlu0 %2488  ;;  %4099 = vmatprep.mubr.msk.bf16.mxu1 %vm6564_vm4, %v5755_v35 }
 0x22b   : > { %v2526_v6 = vpop.permute.xlu1 %2525  ;;  %v2733_v50 = vsel %vm2707_vm1, %v2700_v1, %v2489_v43 }
 0x22c   : > { %v2766_v57 = vsel %vm2740_vm6, %v2733_v50, %v2522_v62 }
 0x22e   : > { %v2554_v24 = vpop.permute.xlu0 %2553 }
 0x22f   : > { %v2431_v49 = vpop.permute.xlu1 %2430  ;;  %v2799_v59 = vsel %vm2773_vm0, %v2766_v57, %v2554_v24 }
 0x230   : > { %v2832_v61 = vsel %vm2806_vm9, %v2799_v59, %v2586_v42  ;;  %v2673_v9 = vsel %vm6570_vm15, %v5774_v39, %v2431_v49  ;;  %v6217_v39 = vld [vmem:[%s6412_s6] ss:$0 sm:$0xff] }
 0x231   : > { %v2877_v54 = vsel %vm2839_vm7, %v2832_v61, %v2619_v45 }
 0x232   : > { %v2459_v40 = vpop.permute.xlu0 %2458  ;;  %3144 = vmatmul.mubr.bf16.gmra.mrb[48].mxu1 %v2877_v54 }
 0x233   : > { %v2556_v23 = vpop.permute.xlu1 %2555  ;;  %v2702_v35 = vsel %vm2674_vm3, %v2667_v15, %v2459_v40  ;;  %4100 = vmatprep.mubr.msk.bf16.mxu1 %vm6565_vm8, %v5788_v28 }
 0x234   : > { %v2735_v56 = vsel %vm2707_vm1, %v2702_v35, %v2491_v34 }
 0x235   : > { %v2768_v51 = vsel %vm2740_vm6, %v2735_v56, %v6131_v11 }
 0x236   : > { %v2801_v19 = vsel %vm2773_vm0, %v2768_v51, %v2556_v23  ;;  %v2588_v4 = vpop.permute.xlu0 %2587 }
 0x237   : > { %v2461_v45 = vpop.permute.xlu1 %2460  ;;  %v2834_v41 = vsel %vm2806_vm9, %v2801_v19, %v2588_v4 }
 0x238   : > { %v2880_v30 = vsel %vm2839_vm7, %v2834_v41, %v2621_v44  ;;  %v2704_v62 = vsel %vm2674_vm3, %v2670_v32, %v2461_v45 }
 0x23a   : > { %v2493_v28 = vpop.permute.xlu0 %2492  ;;  %3152 = vmatmul.mubr.bf16.gmra.mrb[52].mxu1 %v2880_v30 }
 0x23b   : > { %v2590_v10 = vpop.permute.xlu1 %2589  ;;  %v2737_v38 = vsel %vm2707_vm1, %v2704_v62, %v2493_v28  ;;  %4101 = vmatprep.mubr.msk.bf16.mxu1 %vm6567_vm10, %v5796_v18 }
 0x23c   : > { %v2770_v52 = vsel %vm2740_vm6, %v2737_v38, %v2526_v6 }
 0x23e   : > { %v2558_v11 = vpop.permute.xlu0 %2557 }
 0x23f   : > { %v2803_v25 = vsel %vm2773_vm0, %v2770_v52, %v2558_v11  ;;  %v2495_v22 = vpop.permute.xlu1 %2494 }
 0x240   : > { %v2836_v3 = vsel %vm2806_vm9, %v2803_v25, %v2590_v10 }
 0x241   : > { %v2883_v29 = vsel %vm2839_vm7, %v2836_v3, %v2623_v2 }
 0x242   : > { %v2528_v31 = vpop.permute.xlu0 %2527  ;;  %3160 = vmatmul.mubr.bf16.gmra.mrb[56].mxu1 %v2883_v29 }
 0x243   : > { %4102 = vmatprep.mubr.msk.bf16.mxu1 %vm6569_vm11, %v2383_v63  ;;  %v2560_v18 = vpop.permute.xlu1 %2559 }
 0x246   : > { %v2463_v37 = vpop.permute.xlu0 %2462 }
 0x247   : > { %v2706_v46 = vsel %vm2674_vm3, %v2673_v9, %v2463_v37  ;;  %v2625_v7 = vpop.permute.xlu1 %2624 }
 0x248   : > { %v2739_v58 = vsel %vm2707_vm1, %v2706_v46, %v2495_v22 }
 0x249   : > { %v2772_v0 = vsel %vm2740_vm6, %v2739_v58, %v2528_v31 }
 0x24a   : > { %v2592_v27 = vpop.permute.xlu0 %2591  ;;  %v2805_v13 = vsel %vm2773_vm0, %v2772_v0, %v2560_v18  ;;  %vm6571_vm0 = vmmov %vm6545_vm2 }
 0x24b   : > { %v2838_v55 = vsel %vm2806_vm9, %v2805_v13, %v2592_v27  ;;  %v3291_v32 = vpop.permute.xlu1 %3290  ;;  %vm6572_vm5 = vmmov %vm6571_vm0 }
 0x24c   : > { %v2886_v48 = vsel %vm2839_vm7, %v2838_v55, %v2625_v7  ;;  %vm6573_vm10 = vmmov %vm6571_vm0 }
 0x24d   : > { %3168 = vmatmul.mubr.bf16.gmra.mrb[60].mxu1 %v2886_v48  ;;  %vm6574_vm14 = vmmov %vm6571_vm0 }
 0x24e   : > { %v3289_v26 = vpop.permute.xlu0 %3288  ;;  %vm6575_vm15 = vmmov %vm6571_vm0 }
 0x24f   : > { %v3295_v9 = vpop.permute.xlu1 %3294 }
 0x252   : > { %v3293_v62 = vpop.permute.xlu0 %3292 }
 0x256   : > { %v3297_v48 = vpop.permute.xlu0 %3296 }
 0x278   : > { %v3049_v33 = vpop.f32.mrb[32].mxu0 }
 0x279   : > { %v3050_v8 = vadd.f32 %v6217_v39, %v3049_v33  ;;  %v3051_v14 = vpop.f32.mrb[33].mxu0 }
 0x27a   : > { %v3052_v42 = vpop.f32.mrb[34].mxu0 }
 0x27b   : > { %v3208_v21 = vmul.f32 0.01, %v3050_v8  ;;  %v3053_v12 = vadd.f32 %v6217_v39, %v3052_v42  ;;  %v3054_v47 = vpop.f32.mrb[35].mxu0  ;;  %vm3176_vm13 = vcmp.ge.f32.partialorder %v3050_v8, 0.0 }
 0x27d   : > { %vm3177_vm1 = vcmp.ge.f32.partialorder %v3053_v12, 0.0  ;;  %v3209_v2 = vmul.f32 0.01, %v3053_v12  ;;  %v3240_v34 = vsel %vm3176_vm13, %v3050_v8, %v3208_v21 }
 0x27f   : > { %v3241_v5 = vsel %vm3177_vm1, %v3053_v12, %v3209_v2 }
 0x280   : > { %v3272_v16 = vpack.c.bf16 %v3241_v5, %v3240_v34 }
 0x282   : > { %v3322_v44 = vsel %vm6571_vm0, %v3272_v16, %v3289_v26 }
 0x283   : > { %4285 = vmatprep.mubr.msk.bf16.mxu0 %vm2674_vm3, %v3322_v44  ;;  %v3299_v44 = vpop.permute.xlu1 %3298 }
 0x288   : > { %v3065_v17 = vpop.f32.mrb[8].mxu1 }
 0x289   : > { %v3066_v60 = vadd.f32 %v6217_v39, %v3065_v17  ;;  %v3067_v53 = vpop.f32.mrb[9].mxu1 }
 0x28a   : > { %v3068_v36 = vpop.f32.mrb[10].mxu1 }
 0x28b   : > { %v3212_v1 = vmul.f32 0.01, %v3066_v60  ;;  %v3069_v43 = vadd.f32 %v6217_v39, %v3068_v36  ;;  %v3070_v6 = vpop.f32.mrb[11].mxu1  ;;  %vm3180_vm6 = vcmp.ge.f32.partialorder %v3066_v60, 0.0 }
 0x28d   : > { %vm3181_vm9 = vcmp.ge.f32.partialorder %v3069_v43, 0.0  ;;  %v3213_v50 = vmul.f32 0.01, %v3069_v43  ;;  %v3244_v24 = vsel %vm3180_vm6, %v3066_v60, %v3212_v1 }
 0x28f   : > { %v3245_v57 = vsel %vm3181_vm9, %v3069_v43, %v3213_v50 }
 0x290   : > { %v3274_v49 = vpack.c.bf16 %v3245_v57, %v3244_v24 }
 0x292   : > { %v3328_v22 = vsel %vm6573_vm10, %v3274_v49, %v3293_v62 }
 0x295   : > { %v3057_v59 = vpop.f32.mrb[36].mxu0 }
 0x296   : > { %v3058_v61 = vadd.f32 %v6217_v39, %v3057_v59  ;;  %v3059_v54 = vpop.f32.mrb[37].mxu0 }
 0x297   : > { %v3060_v15 = vpop.f32.mrb[38].mxu0 }
 0x298   : > { %v3210_v40 = vmul.f32 0.01, %v3058_v61  ;;  %v3061_v23 = vadd.f32 %v6217_v39, %v3060_v15  ;;  %v3062_v35 = vpop.f32.mrb[39].mxu0  ;;  %vm3178_vm7 = vcmp.ge.f32.partialorder %v3058_v61, 0.0 }
 0x29a   : > { %vm3179_vm4 = vcmp.ge.f32.partialorder %v3061_v23, 0.0  ;;  %v3211_v56 = vmul.f32 0.01, %v3061_v23  ;;  %v3073_v51 = vpop.f32.mrb[12].mxu1  ;;  %v3242_v45 = vsel %vm3178_vm7, %v3058_v61, %v3210_v40  ;;  %v3301_v61 = vpop.permute.xlu0 %3300  ;;  %vm6576_vm7 = vmmov %vm6571_vm0 }
 0x29b   : > { %v3074_v19 = vadd.f32 %v6217_v39, %v3073_v51  ;;  %v3075_v4 = vpop.f32.mrb[13].mxu1 }
 0x29c   : > { %v3243_v41 = vsel %vm3179_vm4, %v3061_v23, %v3211_v56  ;;  %v3076_v30 = vpop.f32.mrb[14].mxu1 }
 0x29d   : > { %v3273_v28 = vpack.c.bf16 %v3243_v41, %v3242_v45  ;;  %v3214_v10 = vmul.f32 0.01, %v3074_v19  ;;  %v3077_v38 = vadd.f32 %v6217_v39, %v3076_v30  ;;  %v3078_v11 = vpop.f32.mrb[15].mxu1  ;;  %vm3182_vm2 = vcmp.ge.f32.partialorder %v3074_v19, 0.0 }
 0x29f   : > { %vm3183_vm8 = vcmp.ge.f32.partialorder %v3077_v38, 0.0  ;;  %v3215_v52 = vmul.f32 0.01, %v3077_v38  ;;  %v3325_v25 = vsel %vm6572_vm5, %v3273_v28, %v3291_v32  ;;  %v3246_v3 = vsel %vm3182_vm2, %v3074_v19, %v3214_v10  ;;  %v3303_v32 = vpop.permute.xlu1 %3302 }
 0x2a0   : > { %4286 = vmatmul.mubr.msk.bf16.vlgmr.msra.gmra.mrb[40].mxu0 %vm2674_vm3, %v3325_v25 }
 0x2a1   : > { %v3247_v29 = vsel %vm3183_vm8, %v3077_v38, %v3215_v52  ;;  %4289 = vmatprep.mubr.msk.bf16.mxu0 %vm2674_vm3, %v3328_v22  ;;  %vm6577_vm8 = vmmov %vm6571_vm0 }
 0x2a2   : > { %v3275_v31 = vpack.c.bf16 %v3247_v29, %v3246_v3  ;;  %v3081_v20 = vpop.f32.mrb[16].mxu1 }
 0x2a3   : > { %v3082_v63 = vadd.f32 %v6217_v39, %v3081_v20  ;;  %v3083_v18 = vpop.f32.mrb[17].mxu1 }
 0x2a4   : > { %v3084_v37 = vpop.f32.mrb[18].mxu1  ;;  %v3331_v27 = vsel %vm6574_vm14, %v3275_v31, %v3295_v9 }
 0x2a5   : > { %v3216_v46 = vmul.f32 0.01, %v3082_v63  ;;  %v3085_v58 = vadd.f32 %v6217_v39, %v3084_v37  ;;  %v3086_v0 = vpop.f32.mrb[19].mxu1  ;;  %vm3184_vm12 = vcmp.ge.f32.partialorder %v3082_v63, 0.0 }
 0x2a7   : > { %vm3185_vm11 = vcmp.ge.f32.partialorder %v3085_v58, 0.0  ;;  %v3217_v13 = vmul.f32 0.01, %v3085_v58  ;;  %v3248_v7 = vsel %vm3184_vm12, %v3082_v63, %v3216_v46  ;;  %v3305_v63 = vpop.permute.xlu0 %3304  ;;  %vm6578_vm12 = vmmov %vm6571_vm0 }
 0x2a8   : > { %4290 = vmatmul.mubr.msk.bf16.gmra.mrb[44].mxu0 %vm2674_vm3, %v3331_v27 }
 0x2a9   : > { %v3249_v55 = vsel %vm3185_vm11, %v3085_v58, %v3217_v13 }
 0x2aa   : > { %v3276_v33 = vpack.c.bf16 %v3249_v55, %v3248_v7 }
 0x2ac   : > { %v3334_v8 = vsel %vm6575_vm15, %v3276_v33, %v3297_v48  ;;  %vm6579_vm15 = vmmov %vm6571_vm0 }
 0x2ad   : > { %4293 = vmatprep.mubr.msk.bf16.mxu0 %vm2674_vm3, %v3334_v8  ;;  %v3307_v8 = vpop.permute.xlu1 %3306 }
 0x2b2   : > { %v3089_v14 = vpop.f32.mrb[20].mxu1 }
 0x2b3   : > { %v3090_v42 = vadd.f32 %v6217_v39, %v3089_v14  ;;  %v3091_v21 = vpop.f32.mrb[21].mxu1 }
 0x2b4   : > { %v3092_v12 = vpop.f32.mrb[22].mxu1 }
 0x2b5   : > { %v3218_v47 = vmul.f32 0.01, %v3090_v42  ;;  %v3093_v2 = vadd.f32 %v6217_v39, %v3092_v12  ;;  %v3094_v34 = vpop.f32.mrb[23].mxu1  ;;  %vm3186_vm13 = vcmp.ge.f32.partialorder %v3090_v42, 0.0 }
 0x2b7   : > { %vm3187_vm1 = vcmp.ge.f32.partialorder %v3093_v2, 0.0  ;;  %v3219_v5 = vmul.f32 0.01, %v3093_v2  ;;  %v3250_v26 = vsel %vm3186_vm13, %v3090_v42, %v3218_v47 }
 0x2b9   : > { %v3251_v16 = vsel %vm3187_vm1, %v3093_v2, %v3219_v5 }
 0x2ba   : > { %v3277_v17 = vpack.c.bf16 %v3251_v16, %v3250_v26  ;;  %v3097_v60 = vpop.f32.mrb[24].mxu1 }
 0x2bb   : > { %v3098_v53 = vadd.f32 %v6217_v39, %v3097_v60  ;;  %v3099_v36 = vpop.f32.mrb[25].mxu1  ;;  %v3309_v60 = vpop.permute.xlu0 %3308 }
 0x2bc   : > { %v3337_v1 = vsel %vm6571_vm0, %v3277_v17, %v3299_v44  ;;  %v3100_v43 = vpop.f32.mrb[26].mxu1 }
 0x2bd   : > { %v3220_v6 = vmul.f32 0.01, %v3098_v53  ;;  %v3101_v50 = vadd.f32 %v6217_v39, %v3100_v43  ;;  %v3102_v24 = vpop.f32.mrb[27].mxu1  ;;  %4294 = vmatmul.mubr.msk.bf16.gmra.mrb[48].mxu0 %vm2674_vm3, %v3337_v1  ;;  %vm3188_vm6 = vcmp.ge.f32.partialorder %v3098_v53, 0.0 }
 0x2bf   : > { %vm3189_vm9 = vcmp.ge.f32.partialorder %v3101_v50, 0.0  ;;  %v3221_v57 = vmul.f32 0.01, %v3101_v50  ;;  %v3252_v49 = vsel %vm3188_vm6, %v3098_v53, %v3220_v6 }
 0x2c1   : > { %v3253_v59 = vsel %vm3189_vm9, %v3101_v50, %v3221_v57 }
 0x2c2   : > { %v3278_v54 = vpack.c.bf16 %v3253_v59, %v3252_v49 }
 0x2c4   : > { %v3340_v15 = vsel %vm6576_vm7, %v3278_v54, %v3301_v61  ;;  %vm6580_vm7 = vmmov %vm6571_vm0 }
 0x2c5   : > { %4297 = vmatprep.mubr.msk.bf16.mxu0 %vm2674_vm3, %v3340_v15  ;;  %v3311_v15 = vpop.permute.xlu1 %3310 }
 0x2cc   : > { %v3105_v40 = vpop.f32.mrb[28].mxu1 }
 0x2cd   : > { %v3106_v23 = vadd.f32 %v6217_v39, %v3105_v40  ;;  %v3107_v35 = vpop.f32.mrb[29].mxu1 }
 0x2ce   : > { %v3108_v56 = vpop.f32.mrb[30].mxu1 }
 0x2cf   : > { %v3222_v51 = vmul.f32 0.01, %v3106_v23  ;;  %v3109_v19 = vadd.f32 %v6217_v39, %v3108_v56  ;;  %v3110_v4 = vpop.f32.mrb[31].mxu1  ;;  %vm3190_vm4 = vcmp.ge.f32.partialorder %v3106_v23, 0.0 }
 0x2d1   : > { %vm3191_vm2 = vcmp.ge.f32.partialorder %v3109_v19, 0.0  ;;  %v3223_v45 = vmul.f32 0.01, %v3109_v19  ;;  %v3254_v41 = vsel %vm3190_vm4, %v3106_v23, %v3222_v51 }
 0x2d3   : > { %v3255_v30 = vsel %vm3191_vm2, %v3109_v19, %v3223_v45 }
 0x2d4   : > { %v3279_v62 = vpack.c.bf16 %v3255_v30, %v3254_v41 }
 0x2d5   : > { %v3113_v28 = vpop.f32.mrb[32].mxu1 }
 0x2d6   : > { %v3114_v10 = vadd.f32 %v6217_v39, %v3113_v28  ;;  %v3343_v38 = vsel %vm6577_vm8, %v3279_v62, %v3303_v32  ;;  %v3115_v11 = vpop.f32.mrb[33].mxu1  ;;  %v3313_v28 = vpop.permute.xlu0 %3312  ;;  %vm6581_vm8 = vmmov %vm6571_vm0 }
 0x2d7   : > { %v3116_v52 = vpop.f32.mrb[34].mxu1  ;;  %4298 = vmatmul.mubr.msk.bf16.gmra.mrb[52].mxu0 %vm2674_vm3, %v3343_v38 }
 0x2d8   : > { %v3224_v25 = vmul.f32 0.01, %v3114_v10  ;;  %v3117_v22 = vadd.f32 %v6217_v39, %v3116_v52  ;;  %v3118_v3 = vpop.f32.mrb[35].mxu1  ;;  %vm3192_vm5 = vcmp.ge.f32.partialorder %v3114_v10, 0.0 }
 0x2da   : > { %vm3193_vm10 = vcmp.ge.f32.partialorder %v3117_v22, 0.0  ;;  %v3225_v29 = vmul.f32 0.01, %v3117_v22  ;;  %v3256_v31 = vsel %vm3192_vm5, %v3114_v10, %v3224_v25 }
 0x2dc   : > { %v3257_v20 = vsel %vm3193_vm10, %v3117_v22, %v3225_v29 }
 0x2dd   : > { %v3280_v18 = vpack.c.bf16 %v3257_v20, %v3256_v31 }
 0x2df   : > { %v3346_v9 = vsel %vm6578_vm12, %v3280_v18, %v3305_v63  ;;  %vm6582_vm12 = vmmov %vm6571_vm0 }
 0x2e0   : > { %4301 = vmatprep.mubr.msk.bf16.mxu0 %vm2674_vm3, %v3346_v9  ;;  %v3315_v9 = vpop.permute.xlu1 %3314 }
 0x2e8   : > { %v3121_v37 = vpop.f32.mrb[36].mxu1 }
 0x2e9   : > { %v3122_v46 = vadd.f32 %v6217_v39, %v3121_v37  ;;  %v3123_v58 = vpop.f32.mrb[37].mxu1 }
 0x2ea   : > { %v3124_v0 = vpop.f32.mrb[38].mxu1 }
 0x2eb   : > { %v3226_v27 = vmul.f32 0.01, %v3122_v46  ;;  %v3125_v13 = vadd.f32 %v6217_v39, %v3124_v0  ;;  %v3126_v7 = vpop.f32.mrb[39].mxu1  ;;  %vm3194_vm14 = vcmp.ge.f32.partialorder %v3122_v46, 0.0 }
 0x2ed   : > { %vm3195_vm11 = vcmp.ge.f32.partialorder %v3125_v13, 0.0  ;;  %v3227_v55 = vmul.f32 0.01, %v3125_v13  ;;  %v3258_v48 = vsel %vm3194_vm14, %v3122_v46, %v3226_v27 }
 0x2ef   : > { %v3259_v33 = vsel %vm3195_vm11, %v3125_v13, %v3227_v55 }
 0x2f0   : > { %v3281_v14 = vpack.c.bf16 %v3259_v33, %v3258_v48 }
 0x2f1   : > { %v3129_v42 = vpop.f32.mrb[40].mxu1 }
 0x2f2   : > { %v3130_v21 = vadd.f32 %v6217_v39, %v3129_v42  ;;  %v3349_v12 = vsel %vm6579_vm15, %v3281_v14, %v3307_v8  ;;  %v3131_v47 = vpop.f32.mrb[41].mxu1  ;;  %v3317_v42 = vpop.permute.xlu0 %3316  ;;  %vm6583_vm15 = vmmov %vm6571_vm0 }
 0x2f3   : > { %v3132_v2 = vpop.f32.mrb[42].mxu1  ;;  %4302 = vmatmul.mubr.msk.bf16.gmra.mrb[56].mxu0 %vm2674_vm3, %v3349_v12 }
 0x2f4   : > { %v3228_v34 = vmul.f32 0.01, %v3130_v21  ;;  %v3133_v5 = vadd.f32 %v6217_v39, %v3132_v2  ;;  %v3134_v26 = vpop.f32.mrb[43].mxu1  ;;  %vm3196_vm13 = vcmp.ge.f32.partialorder %v3130_v21, 0.0 }
 0x2f6   : > { %vm3197_vm1 = vcmp.ge.f32.partialorder %v3133_v5, 0.0  ;;  %v3229_v16 = vmul.f32 0.01, %v3133_v5  ;;  %v3260_v44 = vsel %vm3196_vm13, %v3130_v21, %v3228_v34 }
 0x2f8   : > { %v3261_v17 = vsel %vm3197_vm1, %v3133_v5, %v3229_v16 }
 0x2f9   : > { %v3282_v53 = vpack.c.bf16 %v3261_v17, %v3260_v44 }
 0x2fb   : > { %v3352_v36 = vsel %vm6571_vm0, %v3282_v53, %v3309_v60 }
 0x2fc   : > { %v3137_v1 = vpop.f32.mrb[44].mxu1  ;;  %4305 = vmatprep.mubr.msk.bf16.mxu0 %vm2674_vm3, %v3352_v36  ;;  %v3319_v36 = vpop.permute.xlu1 %3318 }
 0x2fd   : > { %v3138_v43 = vadd.f32 %v6217_v39, %v3137_v1  ;;  %v3139_v6 = vpop.f32.mrb[45].mxu1 }
 0x2fe   : > { %v3140_v50 = vpop.f32.mrb[46].mxu1 }
 0x2ff   : > { %v3230_v24 = vmul.f32 0.01, %v3138_v43  ;;  %v3141_v57 = vadd.f32 %v6217_v39, %v3140_v50  ;;  %v3142_v49 = vpop.f32.mrb[47].mxu1  ;;  %vm3198_vm6 = vcmp.ge.f32.partialorder %v3138_v43, 0.0 }
 0x301   : > { %vm3199_vm9 = vcmp.ge.f32.partialorder %v3141_v57, 0.0  ;;  %v3231_v59 = vmul.f32 0.01, %v3141_v57  ;;  %v3262_v61 = vsel %vm3198_vm6, %v3138_v43, %v3230_v24 }
 0x303   : > { %v3263_v54 = vsel %vm3199_vm9, %v3141_v57, %v3231_v59  ;;  %vm3808_vm9 = vcmask 257024  }
 0x304   : > { %v3283_v40 = vpack.c.bf16 %v3263_v54, %v3262_v61 }
 0x305   : > { %v3145_v23 = vpop.f32.mrb[48].mxu1 }
 0x306   : > { %v3146_v35 = vadd.f32 %v6217_v39, %v3145_v23  ;;  %v3355_v56 = vsel %vm6580_vm7, %v3283_v40, %v3311_v15  ;;  %v3147_v51 = vpop.f32.mrb[49].mxu1 }
 0x307   : > { %v3148_v19 = vpop.f32.mrb[50].mxu1  ;;  %4306 = vmatmul.mubr.msk.bf16.gmra.mrb[60].mxu0 %vm2674_vm3, %v3355_v56 }
 0x308   : > { %v3232_v4 = vmul.f32 0.01, %v3146_v35  ;;  %v3149_v45 = vadd.f32 %v6217_v39, %v3148_v19  ;;  %v3150_v41 = vpop.f32.mrb[51].mxu1  ;;  %vm3200_vm4 = vcmp.ge.f32.partialorder %v3146_v35, 0.0 }
 0x30a   : > { %vm3201_vm2 = vcmp.ge.f32.partialorder %v3149_v45, 0.0  ;;  %v3233_v30 = vmul.f32 0.01, %v3149_v45  ;;  %v3264_v32 = vsel %vm3200_vm4, %v3146_v35, %v3232_v4 }
 0x30c   : > { %v3265_v62 = vsel %vm3201_vm2, %v3149_v45, %v3233_v30 }
 0x30d   : > { %v3284_v10 = vpack.c.bf16 %v3265_v62, %v3264_v32  ;;  %v3153_v38 = vpop.f32.mrb[52].mxu1 }
 0x30e   : > { %v3154_v11 = vadd.f32 %v6217_v39, %v3153_v38  ;;  %v3155_v52 = vpop.f32.mrb[53].mxu1 }
 0x30f   : > { %v3358_v25 = vsel %vm6581_vm8, %v3284_v10, %v3313_v28  ;;  %v3156_v22 = vpop.f32.mrb[54].mxu1 }
 0x310   : > { %v3234_v3 = vmul.f32 0.01, %v3154_v11  ;;  %v3157_v29 = vadd.f32 %v6217_v39, %v3156_v22  ;;  %v3158_v31 = vpop.f32.mrb[55].mxu1  ;;  %4309 = vmatprep.mubr.msk.bf16.mxu0 %vm2674_vm3, %v3358_v25  ;;  %vm3202_vm5 = vcmp.ge.f32.partialorder %v3154_v11, 0.0 }
 0x312   : > { %vm3203_vm10 = vcmp.ge.f32.partialorder %v3157_v29, 0.0  ;;  %v3235_v20 = vmul.f32 0.01, %v3157_v29  ;;  %v3266_v63 = vsel %vm3202_vm5, %v3154_v11, %v3234_v3 }
 0x314   : > { %v3267_v18 = vsel %vm3203_vm10, %v3157_v29, %v3235_v20 }
 0x315   : > { %v3285_v37 = vpack.c.bf16 %v3267_v18, %v3266_v63  ;;  %v3161_v46 = vpop.f32.mrb[56].mxu1 }
 0x316   : > { %v3162_v58 = vadd.f32 %v6217_v39, %v3161_v46  ;;  %v3163_v0 = vpop.f32.mrb[57].mxu1 }
 0x317   : > { %v3361_v27 = vsel %vm6582_vm12, %v3285_v37, %v3315_v9  ;;  %v3164_v13 = vpop.f32.mrb[58].mxu1 }
 0x318   : > { %v3236_v7 = vmul.f32 0.01, %v3162_v58  ;;  %v3165_v55 = vadd.f32 %v6217_v39, %v3164_v13  ;;  %v3166_v48 = vpop.f32.mrb[59].mxu1  ;;  %4310 = vmatmul.mubr.msk.bf16.gmra.mrb[64].mxu0 %vm2674_vm3, %v3361_v27  ;;  %vm3204_vm14 = vcmp.ge.f32.partialorder %v3162_v58, 0.0 }
 0x31a   : > { %vm3205_vm11 = vcmp.ge.f32.partialorder %v3165_v55, 0.0  ;;  %v3237_v33 = vmul.f32 0.01, %v3165_v55  ;;  %v3268_v8 = vsel %vm3204_vm14, %v3162_v58, %v3236_v7 }
 0x31c   : > { %v3269_v14 = vsel %vm3205_vm11, %v3165_v55, %v3237_v33 }
 0x31d   : > { %v3286_v21 = vpack.c.bf16 %v3269_v14, %v3268_v8 }
 0x31f   : > { %v3364_v12 = vsel %vm6583_vm15, %v3286_v21, %v3317_v42 }
 0x320   : > { %v3169_v47 = vpop.f32.mrb[60].mxu1  ;;  %4313 = vmatprep.mubr.msk.bf16.mxu0 %vm2674_vm3, %v3364_v12 }
 0x321   : > { %v3170_v2 = vadd.f32 %v6217_v39, %v3169_v47  ;;  %v3171_v34 = vpop.f32.mrb[61].mxu1 }
 0x322   : > { %v3172_v5 = vpop.f32.mrb[62].mxu1 }
 0x323   : > { %v3238_v26 = vmul.f32 0.01, %v3170_v2  ;;  %v3173_v16 = vadd.f32 %v6217_v39, %v3172_v5  ;;  %v3174_v44 = vpop.f32.mrb[63].mxu1  ;;  %vm3206_vm13 = vcmp.ge.f32.partialorder %v3170_v2, 0.0  ;;  %v6288_v39 = vld [vmem:[%s6414_s8] ss:$0 sm:$0xff] }
 0x325   : > { %vm3207_vm1 = vcmp.ge.f32.partialorder %v3173_v16, 0.0  ;;  %v3239_v17 = vmul.f32 0.01, %v3173_v16  ;;  %v3270_v60 = vsel %vm3206_vm13, %v3170_v2, %v3238_v26 }
 0x327   : > { %v3271_v53 = vsel %vm3207_vm1, %v3173_v16, %v3239_v17 }
 0x328   : > { %v3287_v1 = vpack.c.bf16 %v3271_v53, %v3270_v60 }
 0x32a   : > { %v3367_v43 = vsel %vm6571_vm0, %v3287_v1, %v3319_v36 }
 0x32b   : > { %4314 = vmatmul.mubr.msk.bf16.gmra.mrb[68].mxu0 %vm2674_vm3, %v3367_v43 }
 0x373   : > { %v4287_v6 = vpop.f32.mrb[40].mxu0 }
 0x374   : > { %v3466_v50 = vadd.f32 %v4287_v6, %v6288_v39  ;;  %v3457_v24 = vpop.f32.mrb[41].mxu0 }
 0x375   : > { %v3458_v57 = vadd.f32 %v6288_v39, %v3457_v24  ;;  %v4288_v49 = vpop.f32.mrb[42].mxu0 }
 0x376   : > { %vm3586_vm6 = vcmp.ge.f32.partialorder %v3466_v50, 0.0  ;;  %v3618_v59 = vmul.f32 0.01, %v3466_v50  ;;  %v3469_v61 = vadd.f32 %v4288_v49, %v6288_v39  ;;  %v3460_v54 = vpop.f32.mrb[43].mxu0 }
 0x377   : > { %vm3584_vm3 = vcmp.ge.f32.partialorder %v3458_v57, 0.0  ;;  %v3616_v15 = vmul.f32 0.01, %v3458_v57  ;;  %v3461_v40 = vadd.f32 %v6288_v39, %v3460_v54 }
 0x378   : > { %v3650_v23 = vsel %vm3586_vm6, %v3466_v50, %v3618_v59  ;;  %vm3587_vm7 = vcmp.ge.f32.partialorder %v3469_v61, 0.0  ;;  %v3619_v35 = vmul.f32 0.01, %v3469_v61 }
 0x379   : > { %v4166_v56 = vpack.c.bf16 %v3650_v23, %v3650_v23  ;;  %v3648_v51 = vsel %vm3584_vm3, %v3458_v57, %v3616_v15  ;;  %vm3585_vm4 = vcmp.ge.f32.partialorder %v3461_v40, 0.0  ;;  %v3617_v19 = vmul.f32 0.01, %v3461_v40 }
 0x37a   : > { %v4164_v4 = vpack.c.bf16 %v3648_v51, %v3648_v51  ;;  %v3651_v45 = vsel %vm3587_vm7, %v3469_v61, %v3619_v35 }
 0x37b   : > { %3811 = vst.msk [vmem:[%s6297_s25 + $0x8] sm:$0xf] %vm3808_vm9, %v4166_v56  ;;  %v4167_v41 = vpack.c.bf16 %v3651_v45, %v3651_v45  ;;  %v3649_v30 = vsel %vm3585_vm4, %v3461_v40, %v3617_v19  ;;  %v4291_v32 = vpop.f32.mrb[44].mxu0 }
 0x37c   : > { %3809 = vst.msk [vmem:[%s6297_s25] sm:$0xf] %vm3808_vm9, %v4164_v4  ;;  %v4165_v62 = vpack.c.bf16 %v3649_v30, %v3649_v30  ;;  %v3482_v28 = vadd.f32 %v4291_v32, %v6288_v39  ;;  %v3473_v10 = vpop.f32.mrb[45].mxu0 }
 0x37d   : > { %3812 = vst.msk [vmem:[%s6297_s25 + $0xc] sm:$0xf] %vm3808_vm9, %v4167_v41  ;;  %v3474_v38 = vadd.f32 %v6288_v39, %v3473_v10  ;;  %v4292_v11 = vpop.f32.mrb[46].mxu0 }
 0x37e   : > { %3810 = vst.msk [vmem:[%s6297_s25 + $0x4] sm:$0xf] %vm3808_vm9, %v4165_v62  ;;  %vm3590_vm2 = vcmp.ge.f32.partialorder %v3482_v28, 0.0  ;;  %v3622_v52 = vmul.f32 0.01, %v3482_v28  ;;  %v3485_v25 = vadd.f32 %v4292_v11, %v6288_v39  ;;  %v3476_v22 = vpop.f32.mrb[47].mxu0 }
 0x37f   : > { %vm3588_vm8 = vcmp.ge.f32.partialorder %v3474_v38, 0.0  ;;  %v3620_v3 = vmul.f32 0.01, %v3474_v38  ;;  %v3477_v29 = vadd.f32 %v6288_v39, %v3476_v22 }
 0x380   : > { %v3654_v31 = vsel %vm3590_vm2, %v3482_v28, %v3622_v52  ;;  %vm3591_vm5 = vcmp.ge.f32.partialorder %v3485_v25, 0.0  ;;  %v3623_v20 = vmul.f32 0.01, %v3485_v25 }
 0x381   : > { %v4170_v63 = vpack.c.bf16 %v3654_v31, %v3654_v31  ;;  %v3652_v18 = vsel %vm3588_vm8, %v3474_v38, %v3620_v3  ;;  %vm3589_vm10 = vcmp.ge.f32.partialorder %v3477_v29, 0.0  ;;  %v3621_v9 = vmul.f32 0.01, %v3477_v29 }
 0x382   : > { %v4168_v37 = vpack.c.bf16 %v3652_v18, %v3652_v18  ;;  %v3655_v46 = vsel %vm3591_vm5, %v3485_v25, %v3623_v20 }
 0x383   : > { %3815 = vst.msk [vmem:[%s6297_s25 + $0x18] sm:$0xf] %vm3808_vm9, %v4170_v63  ;;  %v4171_v58 = vpack.c.bf16 %v3655_v46, %v3655_v46  ;;  %v3653_v0 = vsel %vm3589_vm10, %v3477_v29, %v3621_v9 }
 0x384   : > { %3813 = vst.msk [vmem:[%s6297_s25 + $0x10] sm:$0xf] %vm3808_vm9, %v4168_v37  ;;  %v4169_v27 = vpack.c.bf16 %v3653_v0, %v3653_v0 }
 0x385   : > { %3816 = vst.msk [vmem:[%s6297_s25 + $0x1c] sm:$0xf] %vm3808_vm9, %v4171_v58 }
 0x386   : > { %3814 = vst.msk [vmem:[%s6297_s25 + $0x14] sm:$0xf] %vm3808_vm9, %v4169_v27 }
 0x390   : > { %v4295_v13 = vpop.f32.mrb[48].mxu0 }
 0x391   : > { %v3498_v7 = vadd.f32 %v4295_v13, %v6288_v39  ;;  %v3489_v55 = vpop.f32.mrb[49].mxu0 }
 0x392   : > { %v3490_v48 = vadd.f32 %v6288_v39, %v3489_v55  ;;  %v4296_v33 = vpop.f32.mrb[50].mxu0 }
 0x393   : > { %vm3594_vm12 = vcmp.ge.f32.partialorder %v3498_v7, 0.0  ;;  %v3626_v8 = vmul.f32 0.01, %v3498_v7  ;;  %v3501_v14 = vadd.f32 %v4296_v33, %v6288_v39  ;;  %v3492_v42 = vpop.f32.mrb[51].mxu0 }
 0x394   : > { %vm3592_vm14 = vcmp.ge.f32.partialorder %v3490_v48, 0.0  ;;  %v3624_v21 = vmul.f32 0.01, %v3490_v48  ;;  %v3493_v12 = vadd.f32 %v6288_v39, %v3492_v42 }
 0x395   : > { %v3658_v47 = vsel %vm3594_vm12, %v3498_v7, %v3626_v8  ;;  %vm3595_vm11 = vcmp.ge.f32.partialorder %v3501_v14, 0.0  ;;  %v3627_v2 = vmul.f32 0.01, %v3501_v14 }
 0x396   : > { %v4174_v34 = vpack.c.bf16 %v3658_v47, %v3658_v47  ;;  %v3656_v5 = vsel %vm3592_vm14, %v3490_v48, %v3624_v21  ;;  %vm3593_vm15 = vcmp.ge.f32.partialorder %v3493_v12, 0.0  ;;  %v3625_v26 = vmul.f32 0.01, %v3493_v12 }
 0x397   : > { %v4172_v16 = vpack.c.bf16 %v3656_v5, %v3656_v5  ;;  %v3659_v44 = vsel %vm3595_vm11, %v3501_v14, %v3627_v2 }
 0x398   : > { %3819 = vst.msk [vmem:[%s6297_s25 + $0x28] sm:$0xf] %vm3808_vm9, %v4174_v34  ;;  %v4175_v17 = vpack.c.bf16 %v3659_v44, %v3659_v44  ;;  %v3657_v60 = vsel %vm3593_vm15, %v3493_v12, %v3625_v26 }
 0x399   : > { %3817 = vst.msk [vmem:[%s6297_s25 + $0x20] sm:$0xf] %vm3808_vm9, %v4172_v16  ;;  %v4173_v53 = vpack.c.bf16 %v3657_v60, %v3657_v60 }
 0x39a   : > { %3820 = vst.msk [vmem:[%s6297_s25 + $0x2c] sm:$0xf] %vm3808_vm9, %v4175_v17 }
 0x39b   : > { %3818 = vst.msk [vmem:[%s6297_s25 + $0x24] sm:$0xf] %vm3808_vm9, %v4173_v53 }
 0x3aa   : > { %v4299_v36 = vpop.f32.mrb[52].mxu0 }
 0x3ab   : > { %v3514_v1 = vadd.f32 %v4299_v36, %v6288_v39  ;;  %v3505_v43 = vpop.f32.mrb[53].mxu0 }
 0x3ac   : > { %v3506_v6 = vadd.f32 %v6288_v39, %v3505_v43  ;;  %v4300_v50 = vpop.f32.mrb[54].mxu0 }
 0x3ad   : > { %vm3598_vm13 = vcmp.ge.f32.partialorder %v3514_v1, 0.0  ;;  %v3630_v24 = vmul.f32 0.01, %v3514_v1  ;;  %v3517_v57 = vadd.f32 %v4300_v50, %v6288_v39  ;;  %v3508_v49 = vpop.f32.mrb[55].mxu0 }
 0x3ae   : > { %vm3596_vm1 = vcmp.ge.f32.partialorder %v3506_v6, 0.0  ;;  %v3628_v59 = vmul.f32 0.01, %v3506_v6  ;;  %v3509_v61 = vadd.f32 %v6288_v39, %v3508_v49 }
 0x3af   : > { %v3662_v54 = vsel %vm3598_vm13, %v3514_v1, %v3630_v24  ;;  %vm3599_vm0 = vcmp.ge.f32.partialorder %v3517_v57, 0.0  ;;  %v3631_v15 = vmul.f32 0.01, %v3517_v57 }
 0x3b0   : > { %v4178_v40 = vpack.c.bf16 %v3662_v54, %v3662_v54  ;;  %v3660_v23 = vsel %vm3596_vm1, %v3506_v6, %v3628_v59  ;;  %vm3597_vm6 = vcmp.ge.f32.partialorder %v3509_v61, 0.0  ;;  %v3629_v35 = vmul.f32 0.01, %v3509_v61 }
 0x3b1   : > { %v4176_v56 = vpack.c.bf16 %v3660_v23, %v3660_v23  ;;  %v3663_v51 = vsel %vm3599_vm0, %v3517_v57, %v3631_v15 }
 0x3b2   : > { %3823 = vst.msk [vmem:[%s6297_s25 + $0x38] sm:$0xf] %vm3808_vm9, %v4178_v40  ;;  %v4179_v19 = vpack.c.bf16 %v3663_v51, %v3663_v51  ;;  %v3661_v4 = vsel %vm3597_vm6, %v3509_v61, %v3629_v35 }
 0x3b3   : > { %3821 = vst.msk [vmem:[%s6297_s25 + $0x30] sm:$0xf] %vm3808_vm9, %v4176_v56  ;;  %v4177_v45 = vpack.c.bf16 %v3661_v4, %v3661_v4 }
 0x3b4   : > { %3824 = vst.msk [vmem:[%s6297_s25 + $0x3c] sm:$0xf] %vm3808_vm9, %v4179_v19 }
 0x3b5   : > { %3822 = vst.msk [vmem:[%s6297_s25 + $0x34] sm:$0xf] %vm3808_vm9, %v4177_v45 }
 0x3c6   : > { %v4303_v41 = vpop.f32.mrb[56].mxu0 }
 0x3c7   : > { %v3530_v30 = vadd.f32 %v4303_v41, %v6288_v39  ;;  %v3521_v32 = vpop.f32.mrb[57].mxu0 }
 0x3c8   : > { %v3522_v62 = vadd.f32 %v6288_v39, %v3521_v32  ;;  %v4304_v28 = vpop.f32.mrb[58].mxu0 }
 0x3c9   : > { %vm3602_vm3 = vcmp.ge.f32.partialorder %v3530_v30, 0.0  ;;  %v3634_v10 = vmul.f32 0.01, %v3530_v30  ;;  %v3533_v38 = vadd.f32 %v4304_v28, %v6288_v39  ;;  %v3524_v11 = vpop.f32.mrb[59].mxu0 }
 0x3ca   : > { %vm3600_vm7 = vcmp.ge.f32.partialorder %v3522_v62, 0.0  ;;  %v3632_v52 = vmul.f32 0.01, %v3522_v62  ;;  %v3525_v25 = vadd.f32 %v6288_v39, %v3524_v11 }
 0x3cb   : > { %v3666_v22 = vsel %vm3602_vm3, %v3530_v30, %v3634_v10  ;;  %vm3603_vm4 = vcmp.ge.f32.partialorder %v3533_v38, 0.0  ;;  %v3635_v3 = vmul.f32 0.01, %v3533_v38 }
 0x3cc   : > { %v4182_v29 = vpack.c.bf16 %v3666_v22, %v3666_v22  ;;  %v3664_v31 = vsel %vm3600_vm7, %v3522_v62, %v3632_v52  ;;  %vm3601_vm2 = vcmp.ge.f32.partialorder %v3525_v25, 0.0  ;;  %v3633_v20 = vmul.f32 0.01, %v3525_v25 }
 0x3cd   : > { %v4180_v63 = vpack.c.bf16 %v3664_v31, %v3664_v31  ;;  %v3667_v18 = vsel %vm3603_vm4, %v3533_v38, %v3635_v3 }
 0x3ce   : > { %3827 = vst.msk [vmem:[%s6297_s25 + $0x48] sm:$0xf] %vm3808_vm9, %v4182_v29  ;;  %v4183_v9 = vpack.c.bf16 %v3667_v18, %v3667_v18  ;;  %v3665_v37 = vsel %vm3601_vm2, %v3525_v25, %v3633_v20 }
 0x3cf   : > { %3825 = vst.msk [vmem:[%s6297_s25 + $0x40] sm:$0xf] %vm3808_vm9, %v4180_v63  ;;  %v4181_v46 = vpack.c.bf16 %v3665_v37, %v3665_v37 }
 0x3d0   : > { %3828 = vst.msk [vmem:[%s6297_s25 + $0x4c] sm:$0xf] %vm3808_vm9, %v4183_v9 }
 0x3d1   : > { %3826 = vst.msk [vmem:[%s6297_s25 + $0x44] sm:$0xf] %vm3808_vm9, %v4181_v46 }
 0x3da   : > { %v4307_v58 = vpop.f32.mrb[60].mxu0 }
 0x3db   : > { %v3546_v0 = vadd.f32 %v4307_v58, %v6288_v39  ;;  %v3537_v27 = vpop.f32.mrb[61].mxu0 }
 0x3dc   : > { %v3538_v13 = vadd.f32 %v6288_v39, %v3537_v27  ;;  %v4308_v7 = vpop.f32.mrb[62].mxu0 }
 0x3dd   : > { %vm3606_vm8 = vcmp.ge.f32.partialorder %v3546_v0, 0.0  ;;  %v3638_v55 = vmul.f32 0.01, %v3546_v0  ;;  %v3549_v48 = vadd.f32 %v4308_v7, %v6288_v39  ;;  %v3540_v33 = vpop.f32.mrb[63].mxu0 }
 0x3de   : > { %vm3604_vm5 = vcmp.ge.f32.partialorder %v3538_v13, 0.0  ;;  %v3636_v8 = vmul.f32 0.01, %v3538_v13  ;;  %v3541_v14 = vadd.f32 %v6288_v39, %v3540_v33 }
 0x3df   : > { %v3670_v42 = vsel %vm3606_vm8, %v3546_v0, %v3638_v55  ;;  %vm3607_vm10 = vcmp.ge.f32.partialorder %v3549_v48, 0.0  ;;  %v3639_v21 = vmul.f32 0.01, %v3549_v48 }
 0x3e0   : > { %v4186_v12 = vpack.c.bf16 %v3670_v42, %v3670_v42  ;;  %v3668_v47 = vsel %vm3604_vm5, %v3538_v13, %v3636_v8  ;;  %vm3605_vm12 = vcmp.ge.f32.partialorder %v3541_v14, 0.0  ;;  %v3637_v2 = vmul.f32 0.01, %v3541_v14 }
 0x3e1   : > { %v4184_v34 = vpack.c.bf16 %v3668_v47, %v3668_v47  ;;  %v3671_v5 = vsel %vm3607_vm10, %v3549_v48, %v3639_v21 }
 0x3e2   : > { %3831 = vst.msk [vmem:[%s6297_s25 + $0x58] sm:$0xf] %vm3808_vm9, %v4186_v12  ;;  %v4187_v26 = vpack.c.bf16 %v3671_v5, %v3671_v5  ;;  %v3669_v16 = vsel %vm3605_vm12, %v3541_v14, %v3637_v2 }
 0x3e3   : > { %3829 = vst.msk [vmem:[%s6297_s25 + $0x50] sm:$0xf] %vm3808_vm9, %v4184_v34  ;;  %v4185_v44 = vpack.c.bf16 %v3669_v16, %v3669_v16 }
 0x3e4   : > { %3832 = vst.msk [vmem:[%s6297_s25 + $0x5c] sm:$0xf] %vm3808_vm9, %v4187_v26 }
 0x3e5   : > { %3830 = vst.msk [vmem:[%s6297_s25 + $0x54] sm:$0xf] %vm3808_vm9, %v4185_v44 }
 0x3eb   : > { %v4311_v17 = vpop.f32.mrb[64].mxu0 }
 0x3ec   : > { %v3562_v60 = vadd.f32 %v4311_v17, %v6288_v39  ;;  %v3553_v53 = vpop.f32.mrb[65].mxu0 }
 0x3ed   : > { %v3554_v36 = vadd.f32 %v6288_v39, %v3553_v53  ;;  %v4312_v1 = vpop.f32.mrb[66].mxu0 }
 0x3ee   : > { %vm3610_vm14 = vcmp.ge.f32.partialorder %v3562_v60, 0.0  ;;  %v3642_v43 = vmul.f32 0.01, %v3562_v60  ;;  %v3565_v6 = vadd.f32 %v4312_v1, %v6288_v39  ;;  %v3556_v50 = vpop.f32.mrb[67].mxu0 }
 0x3ef   : > { %vm3608_vm11 = vcmp.ge.f32.partialorder %v3554_v36, 0.0  ;;  %v3640_v24 = vmul.f32 0.01, %v3554_v36  ;;  %v3557_v57 = vadd.f32 %v6288_v39, %v3556_v50 }
 0x3f0   : > { %v3674_v49 = vsel %vm3610_vm14, %v3562_v60, %v3642_v43  ;;  %vm3611_vm15 = vcmp.ge.f32.partialorder %v3565_v6, 0.0  ;;  %v3643_v59 = vmul.f32 0.01, %v3565_v6 }
 0x3f1   : > { %v4190_v61 = vpack.c.bf16 %v3674_v49, %v3674_v49  ;;  %v3672_v54 = vsel %vm3608_vm11, %v3554_v36, %v3640_v24  ;;  %vm3609_vm13 = vcmp.ge.f32.partialorder %v3557_v57, 0.0  ;;  %v3641_v15 = vmul.f32 0.01, %v3557_v57 }
 0x3f2   : > { %v4188_v40 = vpack.c.bf16 %v3672_v54, %v3672_v54  ;;  %v3675_v23 = vsel %vm3611_vm15, %v3565_v6, %v3643_v59 }
 0x3f3   : > { %3835 = vst.msk [vmem:[%s6297_s25 + $0x68] sm:$0xf] %vm3808_vm9, %v4190_v61  ;;  %v4191_v35 = vpack.c.bf16 %v3675_v23, %v3675_v23  ;;  %v3673_v56 = vsel %vm3609_vm13, %v3557_v57, %v3641_v15 }
 0x3f4   : > { %3833 = vst.msk [vmem:[%s6297_s25 + $0x60] sm:$0xf] %vm3808_vm9, %v4188_v40  ;;  %v4189_v51 = vpack.c.bf16 %v3673_v56, %v3673_v56 }
 0x3f5   : > { %3836 = vst.msk [vmem:[%s6297_s25 + $0x6c] sm:$0xf] %vm3808_vm9, %v4191_v35 }
 0x3f6   : > { %3834 = vst.msk [vmem:[%s6297_s25 + $0x64] sm:$0xf] %vm3808_vm9, %v4189_v51 }
 0x3fe   : > { %v4315_v19 = vpop.f32.mrb[68].mxu0 }
 0x3ff   : > { %v3578_v4 = vadd.f32 %v4315_v19, %v6288_v39  ;;  %v3569_v45 = vpop.f32.mrb[69].mxu0 }
 0x400   : > { %v3570_v41 = vadd.f32 %v6288_v39, %v3569_v45  ;;  %v4316_v30 = vpop.f32.mrb[70].mxu0 }
 0x401   : > { %vm3614_vm1 = vcmp.ge.f32.partialorder %v3578_v4, 0.0  ;;  %v3646_v32 = vmul.f32 0.01, %v3578_v4  ;;  %v3581_v62 = vadd.f32 %v4316_v30, %v6288_v39  ;;  %v3572_v28 = vpop.f32.mrb[71].mxu0 }
 0x402   : > { %vm3612_vm0 = vcmp.ge.f32.partialorder %v3570_v41, 0.0  ;;  %v3644_v10 = vmul.f32 0.01, %v3570_v41  ;;  %v3573_v38 = vadd.f32 %v6288_v39, %v3572_v28 }
 0x403   : > { %v3678_v11 = vsel %vm3614_vm1, %v3578_v4, %v3646_v32  ;;  %vm3615_vm6 = vcmp.ge.f32.partialorder %v3581_v62, 0.0  ;;  %v3647_v52 = vmul.f32 0.01, %v3581_v62 }
 0x404   : > { %v4194_v25 = vpack.c.bf16 %v3678_v11, %v3678_v11  ;;  %v3676_v22 = vsel %vm3612_vm0, %v3570_v41, %v3644_v10  ;;  %vm3613_vm3 = vcmp.ge.f32.partialorder %v3573_v38, 0.0  ;;  %v3645_v3 = vmul.f32 0.01, %v3573_v38 }
 0x405   : > { %v4192_v29 = vpack.c.bf16 %v3676_v22, %v3676_v22  ;;  %v3679_v31 = vsel %vm3615_vm6, %v3581_v62, %v3647_v52 }
 0x406   : > { %3839 = vst.msk [vmem:[%s6297_s25 + $0x78] sm:$0xf] %vm3808_vm9, %v4194_v25  ;;  %v4195_v20 = vpack.c.bf16 %v3679_v31, %v3679_v31  ;;  %v3677_v63 = vsel %vm3613_vm3, %v3573_v38, %v3645_v3 }
 0x407   : > { %3837 = vst.msk [vmem:[%s6297_s25 + $0x70] sm:$0xf] %vm3808_vm9, %v4192_v29  ;;  %v4193_v18 = vpack.c.bf16 %v3677_v63, %v3677_v63 }
 0x408   : > { %3840 = vst.msk [vmem:[%s6297_s25 + $0x7c] sm:$0xf] %vm3808_vm9, %v4195_v20 }
 0x409   : > { %3838 = vst.msk [vmem:[%s6297_s25 + $0x74] sm:$0xf] %vm3808_vm9, %v4193_v18 }
 0x40a PF: > { %s19_s13 = sadd.s32 1, %s4469_s13   ;;  %s6584_s30 = smov %s4461_s11 }
 0x40b   : > { %p16_p13 = scmp.ge.s32.totalorder %s19_s13, 6   ;;  %s6585_s10 = smov %s4465_s12 }
 0x40c   : > { %s6586_s11 = smov %s6589_s14  ;;  %s6587_s12 = smov %s6593_s15 }
 0x40d   :  { %18 = sbr.rel (!%p16_p13) target bundleno = 3 (0x3), region = 92 }

</bundles_post_ra>
